<compile_context>
chip_gen: v6e
topology: v6e:2x2x1
jax: 0.10.0
libtpu: 0.0.40
codegen_flags: <defaults>
</compile_context>

<pallas_src>
import numpy as np
import jax
import jax.numpy as jnp
from jax import lax
from jax.experimental import pallas as pl
from jax.experimental.pallas import tpu as pltpu

NJ = 21                      # joints
BB = 128                     # poses per grid step (lane axis)
NLVL = 5                     # kinematic tree depth: root + 4 phalanx levels
LROWS = 8                    # sublane rows reserved per (level, component) chunk
NCOMP = 6                    # rx, ry, rz, tx, ty, tz
WROWS = NLVL * NCOMP * LROWS  # 240 rows of packed selection weights
KCOL = 32                    # hpose(27) + bias-one(1) + pad(4)

KTREE = [0, 0, 0, 0, 0, 0, 1, 6, 7, 2, 9, 10, 3, 12, 13, 4, 15, 16, 5, 18, 19]
RVECS_INDEX = [0, 1, 2, 5, 8, 9, 11, 14, 17, 18, 20, 23, 26, 27, 29,
               32, 35, 36, 38, 41, 44]
TVECS_INDEX = [0, 5, 6, 1, 8, 9, 2, 11, 12, 3, 14, 15, 4, 17, 18]

# Level-major joint layout (parent of level-L slot p is level-(L-1) slot p).
# Level 0 replicates the root in all 8 slots so level-1 never needs a sublane broadcast.
# Slots marked -1 are zero padding (rvec=tvec=0 -> ~identity transform, discarded later).
LEVEL_JOINTS = [
    [0, 0, 0, 0, 0, 0, 0, 0],
    [1, 2, 3, 4, 5, -1, -1, -1],
    [6, 9, 12, 15, 18, -1, -1, -1],
    [7, 10, 13, 16, 19, -1, -1, -1],
    [8, 11, 14, 17, 20, -1, -1, -1],
]
ROW_OF_JOINT = np.zeros(NJ, dtype=np.int32)          # kernel output row for each joint
for _L in range(NLVL):
    for _p in range(LROWS):
        _j = LEVEL_JOINTS[_L][_p]
        if _j > 0:
            ROW_OF_JOINT[_j] = _L * LROWS + _p
# joint 0 -> row 0 (root, level 0, slot 0)


def _affine_mul(P, C):
    """Homogeneous 4x4 product with implicit [0,0,0,1] last rows; 3x4 blocks of (8,BB)."""
    out = []
    for r in range(3):
        row = []
        for c in range(3):
            row.append(P[r][0] * C[0][c] + P[r][1] * C[1][c] + P[r][2] * C[2][c])
        row.append(P[r][0] * C[0][3] + P[r][1] * C[1][3] + P[r][2] * C[2][3] + P[r][3])
        out.append(row)
    return out


def hand_skeleton_kernel(hp_ref, wpack_ref, jy_ref, j_ref, t_ref):
    hp = hp_ref[...]                                       # (KCOL, BB): batch on lanes
    prev = None
    for L in range(NLVL):
        wbase = NCOMP * LROWS * L
        w = wpack_ref[wbase:wbase + NCOMP * LROWS, :]      # (48, KCOL) weights + bias col
        # hpose -> (rvec, tvec) selection as one tiny MXU matmul (bias folded via ones row).
        rt = jnp.dot(w, hp, preferred_element_type=jnp.float32,
                     precision=lax.Precision.HIGHEST)      # (48, BB)
        rx, ry, rz = rt[0:8], rt[8:16], rt[16:24]
        tx, ty, tz = rt[24:32], rt[32:40], rt[40:48]

        # Batched Rodrigues on (8, BB) blocks (padding rows are zeros -> safe).
        eps = 1e-8
        rxe, rye, rze = rx + eps, ry + eps, rz + eps
        angle = jnp.sqrt(rxe * rxe + rye * rye + rze * rze)
        inv = 1.0 / angle                                  # one exact divide, reused
        ux, uy, uz = rx * inv, ry * inv, rz * inv
        s = jnp.sin(angle)
        omc = 1.0 - jnp.cos(angle)
        oxy, oxz, oyz = omc * (ux * uy), omc * (ux * uz), omc * (uy * uz)

        # Local 3x4 affine transforms (row 3 == [0,0,0,1] implicit).
        M = [[1.0 + omc * (-(uz * uz) - uy * uy), -s * uz + oxy, s * uy + oxz, tx],
             [s * uz + oxy, 1.0 + omc * (-(uz * uz) - ux * ux), -s * ux + oyz, ty],
             [-s * uy + oxz, s * ux + oyz, 1.0 + omc * (-(uy * uy) - ux * ux), tz]]

        # Kinematic chain: parent of slot p in level L is slot p in level L-1.
        cur = M if L == 0 else _affine_mul(prev, M)
        prev = cur

        # Lane-dense unmasked stores: one full (8,128) vreg per plane per level.
        row = LROWS * L
        for r in range(3):
            for c in range(4):
                t_ref[4 * r + c, row:row + LROWS, :] = cur[r][c]
        # joint_ = (0, -bolen, 0, 1) constant-folded: J = T[:,:,1]*jy + T[:,:,3]
        jy = jy_ref[row:row + LROWS, :]
        for r in range(3):
            j_ref[r, row:row + LROWS, :] = cur[r][1] * jy + cur[r][3]


def hand_skeleton_forward(hpose_b, wpack, jy):
    """hpose_b: (B, 27) batch of hand poses -> J (B,21,4), T (B,21,4,4)."""
    B = hpose_b.shape[0]
    Bp = -(-B // BB) * BB
    # hpose on lanes, plus a ones row (bias) and zero padding rows.
    hp = jnp.concatenate([hpose_b.T.astype(jnp.float32),
                          jnp.ones((1, B), jnp.float32),
                          jnp.zeros((KCOL - 28, B), jnp.float32)], axis=0)   # (32, B)
    if Bp != B:
        hp = jnp.pad(hp, ((0, 0), (0, Bp - B)))

    j_out, t_out = pl.pallas_call(
        hand_skeleton_kernel,
        out_shape=(jax.ShapeDtypeStruct((3, NLVL * LROWS, Bp), jnp.float32),
                   jax.ShapeDtypeStruct((12, NLVL * LROWS, Bp), jnp.float32)),
        grid=(Bp // BB,),
        in_specs=[pl.BlockSpec((KCOL, BB), lambda g: (0, g)),
                  pl.BlockSpec((WROWS, KCOL), lambda g: (0, 0)),
                  pl.BlockSpec((NLVL * LROWS, BB), lambda g: (0, 0))],
        out_specs=(pl.BlockSpec((3, NLVL * LROWS, BB), lambda g: (0, 0, g)),
                   pl.BlockSpec((12, NLVL * LROWS, BB), lambda g: (0, 0, g))),
        compiler_params=pltpu.CompilerParams(dimension_semantics=("parallel",)),
    )(hp, wpack, jy)

    # Layout plumbing back to the module's convention + constant planes.
    rows = jnp.asarray(ROW_OF_JOINT)
    j3 = jnp.transpose(j_out[:, :, :B], (2, 1, 0))[:, rows, :]            # (B, 21, 3)
    J = jnp.concatenate([j3, jnp.ones((B, NJ, 1), jnp.float32)], axis=-1)
    t12 = jnp.transpose(t_out[:, :, :B], (2, 1, 0))[:, rows, :]           # (B, 21, 12)
    t12 = t12.reshape(B, NJ, 3, 4)
    bottom = jnp.broadcast_to(jnp.asarray([0.0, 0.0, 0.0, 1.0], jnp.float32),
                              (B, NJ, 1, 4))
    T = jnp.concatenate([t12, bottom], axis=2)
    return J, T


hand_skeleton_forward_jit = jax.jit(hand_skeleton_forward)


# ---------------- host-side constant folding / packing ------------------------------
def build_constants(S, rvecs_1_5, tvecs_const, bolen):
    # Per-joint selection weights into hpose[0:27] plus bias, exactly as in the module.
    Wr = np.zeros((3, NJ, 27), np.float32)
    Wt = np.zeros((3, NJ, 27), np.float32)
    rbias = np.zeros((NJ, 3), np.float32)
    tbias = np.zeros((NJ, 3), np.float32)
    for c in range(3):
        Wr[c, 0, 3 + c] = 1.0                       # rvecs row 0 <- hpose[3:6]
        Wr[c, 6:, 6:] = S[:, c::3].T                # rvecs rows 6..20 <- hpose[6:] @ S
        Wt[c, 0, c] = 1.0                           # tvecs row 0 <- hpose[0:3]
    rbias[1:6, :] = rvecs_1_5
    tbias[1:21, :] = tvecs_const

    comps = [(Wr[0], rbias[:, 0]), (Wr[1], rbias[:, 1]), (Wr[2], rbias[:, 2]),
             (Wt[0], tbias[:, 0]), (Wt[1], tbias[:, 1]), (Wt[2], tbias[:, 2])]
    joint_y = np.zeros(NJ, np.float32)
    joint_y[1:] = -bolen                            # joint_ = (0, -bolen, 0, 1)

    wpack = np.zeros((WROWS, KCOL), np.float32)
    jy = np.zeros((NLVL * LROWS, BB), np.float32)
    for L in range(NLVL):
        for p in range(LROWS):
            j = LEVEL_JOINTS[L][p]
            if j < 0:
                continue
            for s, (mat, b) in enumerate(comps):
                row = NCOMP * LROWS * L + LROWS * s + p
                wpack[row, 0:27] = mat[j]
                wpack[row, 27] = b[j]               # bias picked up by the hp "ones" row
            jy[LROWS * L + p, :] = joint_y[j]       # lane-replicated per-joint constant
    return wpack, jy


# ---------------- pure-JAX reference (mirrors the PyTorch forward) -------------------
def reference_forward(hpose, rvecs_1_5, S, tvecs_const, joint):
    hp = lax.Precision.HIGHEST
    rvecs_6_20 = jnp.matmul(hpose[6:].reshape(1, 21), S, precision=hp).reshape(-1, 3)
    rvecs = jnp.concatenate([hpose[3:6].reshape(1, 3), rvecs_1_5, rvecs_6_20], 0)
    angle = jnp.sqrt(jnp.sum((rvecs + 1e-8) ** 2, axis=1, keepdims=True))
    rot_dir = rvecs / angle
    cos = jnp.cos(angle)[:, :, None]
    sin = jnp.sin(angle)[:, :, None]
    rx, ry, rz = rot_dir[:, 0], rot_dir[:, 1], rot_dir[:, 2]
    z = jnp.zeros_like(rx)
    K = jnp.stack([z, -rz, ry, rz, z, -rx, -ry, rx, z], axis=1).reshape(-1, 3, 3)
    rmats = jnp.eye(3)[None] + sin * K + (1.0 - cos) * jnp.matmul(K, K, precision=hp)
    tvecs = jnp.concatenate([hpose[0:3].reshape(1, 3), tvecs_const], axis=0)
    R_pad = jnp.concatenate([rmats, jnp.zeros((NJ, 1, 3))], axis=1)
    t_pad = jnp.concatenate([tvecs[:, :, None], jnp.ones((NJ, 1, 1))], axis=1)
    transforms = jnp.concatenate([R_pad, t_pad], axis=2)
    chain = [transforms[0]]
    for i in range(1, NJ):
        chain.append(jnp.matmul(chain[KTREE[i]], transforms[i], precision=hp))
    T = jnp.stack(chain)
    J = jnp.matmul(T, joint[:, :, None], precision=hp).reshape(-1, 4)
    return J, T


if __name__ == "__main__":
    # ---- deterministic parameter init (replaces yaml loading) ----
    B = 256                                                # batch of hand poses (2 grid steps)
    key = jax.random.PRNGKey(0)
    k1, k2, k3 = jax.random.split(key, 3)
    hpose_b = np.asarray(jax.random.uniform(k1, (B, 27), minval=-0.6, maxval=0.6),
                         dtype=np.float32)                 # hand_pose batch
    bolen = np.asarray(jax.random.uniform(k2, (20,), minval=0.02, maxval=0.09),
                       dtype=np.float32)                   # bone_length
    borot = np.asarray(jax.random.uniform(k3, (4,), minval=-0.3, maxval=0.3),
                       dtype=np.float32)                   # bone_rotation

    # ---- buffers exactly as in __init__ (bone_calib=False path) ----
    S = np.zeros((21, 45), dtype=np.float32)               # rvecs_6_20_
    for i in range(21):
        S[i, RVECS_INDEX[i]] = 1.0
    rvecs_1_5 = np.zeros((5, 3), dtype=np.float32)
    rvecs_1_5[[0, 1, 3, 4], 0] = borot[[0, 1, 2, 3]]
    tvecs_const = np.zeros((20, 3), dtype=np.float32)      # tvecs_
    for i in range(5, 20):
        tvecs_const[i, 1] = -bolen[TVECS_INDEX[i - 5]]
    joint = np.zeros((21, 4), dtype=np.float32)            # joint_
    joint[:, 3] = 1.0
    joint[1:, 1] = -bolen

    wpack, jy = build_constants(S, rvecs_1_5, tvecs_const, bolen)

    # TODO(synk): bone_calib=True branch and non-forward utilities (yaml load,
    # cv2 drawing, point projection, hpose_limit) are not part of this kernel.

    J, T = hand_skeleton_forward_jit(jnp.asarray(hpose_b),
                                     jnp.asarray(wpack),
                                     jnp.asarray(jy))
    J = jax.block_until_ready(J)
    T = jax.block_until_ready(T)

    ref_fn = jax.jit(jax.vmap(reference_forward, in_axes=(0, None, None, None, None)))
    J_ref, T_ref = ref_fn(jnp.asarray(hpose_b), jnp.asarray(rvecs_1_5),
                          jnp.asarray(S), jnp.asarray(tvecs_const),
                          jnp.asarray(joint))
    J_ref = jax.block_until_ready(J_ref)
    T_ref = jax.block_until_ready(T_ref)

    assert J.shape == (B, 21, 4) and T.shape == (B, 21, 4, 4)
    assert np.allclose(np.asarray(J), np.asarray(J_ref), atol=2e-4, rtol=2e-4)
    assert np.allclose(np.asarray(T), np.asarray(T_ref), atol=2e-4, rtol=2e-4)
    print("KERNEL_OK")
</pallas_src>

<mosaic_0001>
module attributes {stable_mosaic.version = 11 : i64} {
  func.func @hand_skeleton_kernel(%arg0: i32, %arg1: memref<32x128xf32, #tpu.memory_space<vmem>>, %arg2: memref<240x32xf32, #tpu.memory_space<vmem>>, %arg3: memref<40x128xf32, #tpu.memory_space<vmem>>, %arg4: memref<3x40x128xf32, #tpu.memory_space<vmem>>, %arg5: memref<12x40x128xf32, #tpu.memory_space<vmem>>) attributes {dimension_semantics = [#tpu.dimension_semantics<parallel>], iteration_bounds = array<i64: 2>, scalar_prefetch = 0 : i64, scratch_operands = 0 : i64, tpu.core_type = #tpu.core_type<tc>, window_params = [{transform_indices = @transform_0, window_bounds = array<i64: 32, 128>}, {pipeline_mode = #tpu.pipeline_mode<synchronous>, transform_indices = @transform_1, window_bounds = array<i64: 240, 32>}, {pipeline_mode = #tpu.pipeline_mode<synchronous>, transform_indices = @transform_2, window_bounds = array<i64: 40, 128>}, {transform_indices = @transform_3, window_bounds = array<i64: 3, 40, 128>}, {transform_indices = @transform_4, window_bounds = array<i64: 12, 40, 128>}]} {
    %c0 = arith.constant 0 : index
    %c0_0 = arith.constant 0 : index
    %0 = vector.load %arg1[%c0, %c0_0] : memref<32x128xf32, #tpu.memory_space<vmem>>, vector<32x128xf32>
    %c0_1 = arith.constant 0 : index
    %c0_2 = arith.constant 0 : index
    %1 = vector.load %arg2[%c0_1, %c0_2] : memref<240x32xf32, #tpu.memory_space<vmem>>, vector<48x32xf32>
    %cst = arith.constant dense<0.000000e+00> : vector<48x128xf32>
    %2 = tpu.matmul %1, %0, %cst {dimension_numbers = #tpu.dot_dimension_numbers<[1], [0], [0], [1], [0, 0, 1, 1], [], []>, precision = #tpu.contract_precision<fp32>} : vector<48x32xf32>, vector<32x128xf32>, vector<48x128xf32> -> vector<48x128xf32>
    %3 = vector.extract_strided_slice %2 {offsets = [0, 0], sizes = [8, 128], strides = [1, 1]} : vector<48x128xf32> to vector<8x128xf32>
    %4 = vector.extract_strided_slice %2 {offsets = [8, 0], sizes = [8, 128], strides = [1, 1]} : vector<48x128xf32> to vector<8x128xf32>
    %5 = vector.extract_strided_slice %2 {offsets = [16, 0], sizes = [8, 128], strides = [1, 1]} : vector<48x128xf32> to vector<8x128xf32>
    %6 = vector.extract_strided_slice %2 {offsets = [24, 0], sizes = [8, 128], strides = [1, 1]} : vector<48x128xf32> to vector<8x128xf32>
    %7 = vector.extract_strided_slice %2 {offsets = [32, 0], sizes = [8, 128], strides = [1, 1]} : vector<48x128xf32> to vector<8x128xf32>
    %8 = vector.extract_strided_slice %2 {offsets = [40, 0], sizes = [8, 128], strides = [1, 1]} : vector<48x128xf32> to vector<8x128xf32>
    %cst_3 = arith.constant 9.99999993E-9 : f32
    %9 = vector.broadcast %cst_3 : f32 to vector<8x128xf32>
    %10 = arith.addf %3, %9 : vector<8x128xf32>
    %cst_4 = arith.constant 9.99999993E-9 : f32
    %11 = vector.broadcast %cst_4 : f32 to vector<8x128xf32>
    %12 = arith.addf %4, %11 : vector<8x128xf32>
    %cst_5 = arith.constant 9.99999993E-9 : f32
    %13 = vector.broadcast %cst_5 : f32 to vector<8x128xf32>
    %14 = arith.addf %5, %13 : vector<8x128xf32>
    %15 = arith.mulf %10, %10 : vector<8x128xf32>
    %16 = arith.mulf %12, %12 : vector<8x128xf32>
    %17 = arith.addf %15, %16 : vector<8x128xf32>
    %18 = arith.mulf %14, %14 : vector<8x128xf32>
    %19 = arith.addf %17, %18 : vector<8x128xf32>
    %20 = math.sqrt %19 : vector<8x128xf32>
    %cst_6 = arith.constant 1.000000e+00 : f32
    %21 = vector.broadcast %cst_6 : f32 to vector<8x128xf32>
    %22 = arith.divf %21, %20 : vector<8x128xf32>
    %23 = arith.mulf %3, %22 : vector<8x128xf32>
    %24 = arith.mulf %4, %22 : vector<8x128xf32>
    %25 = arith.mulf %5, %22 : vector<8x128xf32>
    %26 = math.sin %20 : vector<8x128xf32>
    %27 = math.cos %20 : vector<8x128xf32>
    %cst_7 = arith.constant 1.000000e+00 : f32
    %28 = vector.broadcast %cst_7 : f32 to vector<8x128xf32>
    %29 = arith.subf %28, %27 : vector<8x128xf32>
    %30 = arith.mulf %23, %24 : vector<8x128xf32>
    %31 = arith.mulf %29, %30 : vector<8x128xf32>
    %32 = arith.mulf %23, %25 : vector<8x128xf32>
    %33 = arith.mulf %29, %32 : vector<8x128xf32>
    %34 = arith.mulf %24, %25 : vector<8x128xf32>
    %35 = arith.mulf %29, %34 : vector<8x128xf32>
    %36 = arith.mulf %25, %25 : vector<8x128xf32>
    %cst_8 = arith.constant 0.000000e+00 : f32
    %37 = vector.broadcast %cst_8 : f32 to vector<8x128xf32>
    %38 = arith.subf %37, %36 : vector<8x128xf32>
    %39 = arith.mulf %24, %24 : vector<8x128xf32>
    %40 = arith.subf %38, %39 : vector<8x128xf32>
    %41 = arith.mulf %29, %40 : vector<8x128xf32>
    %cst_9 = arith.constant 1.000000e+00 : f32
    %42 = vector.broadcast %cst_9 : f32 to vector<8x128xf32>
    %43 = arith.addf %42, %41 : vector<8x128xf32>
    %cst_10 = arith.constant 0.000000e+00 : f32
    %44 = vector.broadcast %cst_10 : f32 to vector<8x128xf32>
    %45 = arith.subf %44, %26 : vector<8x128xf32>
    %46 = arith.mulf %45, %25 : vector<8x128xf32>
    %47 = arith.addf %46, %31 : vector<8x128xf32>
    %48 = arith.mulf %26, %24 : vector<8x128xf32>
    %49 = arith.addf %48, %33 : vector<8x128xf32>
    %50 = arith.mulf %26, %25 : vector<8x128xf32>
    %51 = arith.addf %50, %31 : vector<8x128xf32>
    %52 = arith.mulf %25, %25 : vector<8x128xf32>
    %cst_11 = arith.constant 0.000000e+00 : f32
    %53 = vector.broadcast %cst_11 : f32 to vector<8x128xf32>
    %54 = arith.subf %53, %52 : vector<8x128xf32>
    %55 = arith.mulf %23, %23 : vector<8x128xf32>
    %56 = arith.subf %54, %55 : vector<8x128xf32>
    %57 = arith.mulf %29, %56 : vector<8x128xf32>
    %cst_12 = arith.constant 1.000000e+00 : f32
    %58 = vector.broadcast %cst_12 : f32 to vector<8x128xf32>
    %59 = arith.addf %58, %57 : vector<8x128xf32>
    %cst_13 = arith.constant 0.000000e+00 : f32
    %60 = vector.broadcast %cst_13 : f32 to vector<8x128xf32>
    %61 = arith.subf %60, %26 : vector<8x128xf32>
    %62 = arith.mulf %61, %23 : vector<8x128xf32>
    %63 = arith.addf %62, %35 : vector<8x128xf32>
    %cst_14 = arith.constant 0.000000e+00 : f32
    %64 = vector.broadcast %cst_14 : f32 to vector<8x128xf32>
    %65 = arith.subf %64, %26 : vector<8x128xf32>
    %66 = arith.mulf %65, %24 : vector<8x128xf32>
    %67 = arith.addf %66, %33 : vector<8x128xf32>
    %68 = arith.mulf %26, %23 : vector<8x128xf32>
    %69 = arith.addf %68, %35 : vector<8x128xf32>
    %70 = arith.mulf %24, %24 : vector<8x128xf32>
    %cst_15 = arith.constant 0.000000e+00 : f32
    %71 = vector.broadcast %cst_15 : f32 to vector<8x128xf32>
    %72 = arith.subf %71, %70 : vector<8x128xf32>
    %73 = arith.mulf %23, %23 : vector<8x128xf32>
    %74 = arith.subf %72, %73 : vector<8x128xf32>
    %75 = arith.mulf %29, %74 : vector<8x128xf32>
    %cst_16 = arith.constant 1.000000e+00 : f32
    %76 = vector.broadcast %cst_16 : f32 to vector<8x128xf32>
    %77 = arith.addf %76, %75 : vector<8x128xf32>
    %c0_17 = arith.constant 0 : index
    %c0_18 = arith.constant 0 : index
    %c0_19 = arith.constant 0 : index
    %78 = vector.load %arg5[%c0_17, %c0_18, %c0_19] : memref<12x40x128xf32, #tpu.memory_space<vmem>>, vector<1x8x128xf32>
    %79 = vector.shape_cast %78 : vector<1x8x128xf32> to vector<8x128xf32>
    %80 = vector.shape_cast %43 : vector<8x128xf32> to vector<1x8x128xf32>
    tpu.vector_store %arg5[%c0_17, %c0_18, %c0_19], %80 {strides = array<i32>} : memref<12x40x128xf32, #tpu.memory_space<vmem>>, vector<1x8x128xf32>,
    %c1 = arith.constant 1 : index
    %c0_20 = arith.constant 0 : index
    %c0_21 = arith.constant 0 : index
    %81 = vector.load %arg5[%c1, %c0_20, %c0_21] : memref<12x40x128xf32, #tpu.memory_space<vmem>>, vector<1x8x128xf32>
    %82 = vector.shape_cast %81 : vector<1x8x128xf32> to vector<8x128xf32>
    %83 = vector.shape_cast %47 : vector<8x128xf32> to vector<1x8x128xf32>
    tpu.vector_store %arg5[%c1, %c0_20, %c0_21], %83 {strides = array<i32>} : memref<12x40x128xf32, #tpu.memory_space<vmem>>, vector<1x8x128xf32>,
    %c2 = arith.constant 2 : index
    %c0_22 = arith.constant 0 : index
    %c0_23 = arith.constant 0 : index
    %84 = vector.load %arg5[%c2, %c0_22, %c0_23] : memref<12x40x128xf32, #tpu.memory_space<vmem>>, vector<1x8x128xf32>
    %85 = vector.shape_cast %84 : vector<1x8x128xf32> to vector<8x128xf32>
    %86 = vector.shape_cast %49 : vector<8x128xf32> to vector<1x8x128xf32>
    tpu.vector_store %arg5[%c2, %c0_22, %c0_23], %86 {strides = array<i32>} : memref<12x40x128xf32, #tpu.memory_space<vmem>>, vector<1x8x128xf32>,
    %c3 = arith.constant 3 : index
    %c0_24 = arith.constant 0 : index
    %c0_25 = arith.constant 0 : index
    %87 = vector.load %arg5[%c3, %c0_24, %c0_25] : memref<12x40x128xf32, #tpu.memory_space<vmem>>, vector<1x8x128xf32>
    %88 = vector.shape_cast %87 : vector<1x8x128xf32> to vector<8x128xf32>
    %89 = vector.shape_cast %6 : vector<8x128xf32> to vector<1x8x128xf32>
    tpu.vector_store %arg5[%c3, %c0_24, %c0_25], %89 {strides = array<i32>} : memref<12x40x128xf32, #tpu.memory_space<vmem>>, vector<1x8x128xf32>,
    %c4 = arith.constant 4 : index
    %c0_26 = arith.constant 0 : index
    %c0_27 = arith.constant 0 : index
    %90 = vector.load %arg5[%c4, %c0_26, %c0_27] : memref<12x40x128xf32, #tpu.memory_space<vmem>>, vector<1x8x128xf32>
    %91 = vector.shape_cast %90 : vector<1x8x128xf32> to vector<8x128xf32>
    %92 = vector.shape_cast %51 : vector<8x128xf32> to vector<1x8x128xf32>
    tpu.vector_store %arg5[%c4, %c0_26, %c0_27], %92 {strides = array<i32>} : memref<12x40x128xf32, #tpu.memory_space<vmem>>, vector<1x8x128xf32>,
    %c5 = arith.constant 5 : index
    %c0_28 = arith.constant 0 : index
    %c0_29 = arith.constant 0 : index
    %93 = vector.load %arg5[%c5, %c0_28, %c0_29] : memref<12x40x128xf32, #tpu.memory_space<vmem>>, vector<1x8x128xf32>
    %94 = vector.shape_cast %93 : vector<1x8x128xf32> to vector<8x128xf32>
    %95 = vector.shape_cast %59 : vector<8x128xf32> to vector<1x8x128xf32>
    tpu.vector_store %arg5[%c5, %c0_28, %c0_29], %95 {strides = array<i32>} : memref<12x40x128xf32, #tpu.memory_space<vmem>>, vector<1x8x128xf32>,
    %c6 = arith.constant 6 : index
    %c0_30 = arith.constant 0 : index
    %c0_31 = arith.constant 0 : index
    %96 = vector.load %arg5[%c6, %c0_30, %c0_31] : memref<12x40x128xf32, #tpu.memory_space<vmem>>, vector<1x8x128xf32>
    %97 = vector.shape_cast %96 : vector<1x8x128xf32> to vector<8x128xf32>
    %98 = vector.shape_cast %63 : vector<8x128xf32> to vector<1x8x128xf32>
    tpu.vector_store %arg5[%c6, %c0_30, %c0_31], %98 {strides = array<i32>} : memref<12x40x128xf32, #tpu.memory_space<vmem>>, vector<1x8x128xf32>,
    %c7 = arith.constant 7 : index
    %c0_32 = arith.constant 0 : index
    %c0_33 = arith.constant 0 : index
    %99 = vector.load %arg5[%c7, %c0_32, %c0_33] : memref<12x40x128xf32, #tpu.memory_space<vmem>>, vector<1x8x128xf32>
    %100 = vector.shape_cast %99 : vector<1x8x128xf32> to vector<8x128xf32>
    %101 = vector.shape_cast %7 : vector<8x128xf32> to vector<1x8x128xf32>
    tpu.vector_store %arg5[%c7, %c0_32, %c0_33], %101 {strides = array<i32>} : memref<12x40x128xf32, #tpu.memory_space<vmem>>, vector<1x8x128xf32>,
    %c8 = arith.constant 8 : index
    %c0_34 = arith.constant 0 : index
    %c0_35 = arith.constant 0 : index
    %102 = vector.load %arg5[%c8, %c0_34, %c0_35] : memref<12x40x128xf32, #tpu.memory_space<vmem>>, vector<1x8x128xf32>
    %103 = vector.shape_cast %102 : vector<1x8x128xf32> to vector<8x128xf32>
    %104 = vector.shape_cast %67 : vector<8x128xf32> to vector<1x8x128xf32>
    tpu.vector_store %arg5[%c8, %c0_34, %c0_35], %104 {strides = array<i32>} : memref<12x40x128xf32, #tpu.memory_space<vmem>>, vector<1x8x128xf32>,
    %c9 = arith.constant 9 : index
    %c0_36 = arith.constant 0 : index
    %c0_37 = arith.constant 0 : index
    %105 = vector.load %arg5[%c9, %c0_36, %c0_37] : memref<12x40x128xf32, #tpu.memory_space<vmem>>, vector<1x8x128xf32>
    %106 = vector.shape_cast %105 : vector<1x8x128xf32> to vector<8x128xf32>
    %107 = vector.shape_cast %69 : vector<8x128xf32> to vector<1x8x128xf32>
    tpu.vector_store %arg5[%c9, %c0_36, %c0_37], %107 {strides = array<i32>} : memref<12x40x128xf32, #tpu.memory_space<vmem>>, vector<1x8x128xf32>,
    %c10 = arith.constant 10 : index
    %c0_38 = arith.constant 0 : index
    %c0_39 = arith.constant 0 : index
    %108 = vector.load %arg5[%c10, %c0_38, %c0_39] : memref<12x40x128xf32, #tpu.memory_space<vmem>>, vector<1x8x128xf32>
    %109 = vector.shape_cast %108 : vector<1x8x128xf32> to vector<8x128xf32>
    %110 = vector.shape_cast %77 : vector<8x128xf32> to vector<1x8x128xf32>
    tpu.vector_store %arg5[%c10, %c0_38, %c0_39], %110 {strides = array<i32>} : memref<12x40x128xf32, #tpu.memory_space<vmem>>, vector<1x8x128xf32>,
    %c11 = arith.constant 11 : index
    %c0_40 = arith.constant 0 : index
    %c0_41 = arith.constant 0 : index
    %111 = vector.load %arg5[%c11, %c0_40, %c0_41] : memref<12x40x128xf32, #tpu.memory_space<vmem>>, vector<1x8x128xf32>
    %112 = vector.shape_cast %111 : vector<1x8x128xf32> to vector<8x128xf32>
    %113 = vector.shape_cast %8 : vector<8x128xf32> to vector<1x8x128xf32>
    tpu.vector_store %arg5[%c11, %c0_40, %c0_41], %113 {strides = array<i32>} : memref<12x40x128xf32, #tpu.memory_space<vmem>>, vector<1x8x128xf32>,
    %c0_42 = arith.constant 0 : index
    %c0_43 = arith.constant 0 : index
    %114 = vector.load %arg3[%c0_42, %c0_43] : memref<40x128xf32, #tpu.memory_space<vmem>>, vector<8x128xf32>
    %115 = arith.mulf %47, %114 : vector<8x128xf32>
    %116 = arith.addf %115, %6 : vector<8x128xf32>
    %c0_44 = arith.constant 0 : index
    %c0_45 = arith.constant 0 : index
    %c0_46 = arith.constant 0 : index
    %117 = vector.load %arg4[%c0_44, %c0_45, %c0_46] : memref<3x40x128xf32, #tpu.memory_space<vmem>>, vector<1x8x128xf32>
    %118 = vector.shape_cast %117 : vector<1x8x128xf32> to vector<8x128xf32>
    %119 = vector.shape_cast %116 : vector<8x128xf32> to vector<1x8x128xf32>
    tpu.vector_store %arg4[%c0_44, %c0_45, %c0_46], %119 {strides = array<i32>} : memref<3x40x128xf32, #tpu.memory_space<vmem>>, vector<1x8x128xf32>,
    %120 = arith.mulf %59, %114 : vector<8x128xf32>
    %121 = arith.addf %120, %7 : vector<8x128xf32>
    %c1_47 = arith.constant 1 : index
    %c0_48 = arith.constant 0 : index
    %c0_49 = arith.constant 0 : index
    %122 = vector.load %arg4[%c1_47, %c0_48, %c0_49] : memref<3x40x128xf32, #tpu.memory_space<vmem>>, vector<1x8x128xf32>
    %123 = vector.shape_cast %122 : vector<1x8x128xf32> to vector<8x128xf32>
    %124 = vector.shape_cast %121 : vector<8x128xf32> to vector<1x8x128xf32>
    tpu.vector_store %arg4[%c1_47, %c0_48, %c0_49], %124 {strides = array<i32>} : memref<3x40x128xf32, #tpu.memory_space<vmem>>, vector<1x8x128xf32>,
    %125 = arith.mulf %69, %114 : vector<8x128xf32>
    %126 = arith.addf %125, %8 : vector<8x128xf32>
    %c2_50 = arith.constant 2 : index
    %c0_51 = arith.constant 0 : index
    %c0_52 = arith.constant 0 : index
    %127 = vector.load %arg4[%c2_50, %c0_51, %c0_52] : memref<3x40x128xf32, #tpu.memory_space<vmem>>, vector<1x8x128xf32>
    %128 = vector.shape_cast %127 : vector<1x8x128xf32> to vector<8x128xf32>
    %129 = vector.shape_cast %126 : vector<8x128xf32> to vector<1x8x128xf32>
    tpu.vector_store %arg4[%c2_50, %c0_51, %c0_52], %129 {strides = array<i32>} : memref<3x40x128xf32, #tpu.memory_space<vmem>>, vector<1x8x128xf32>,
    %c48 = arith.constant 48 : index
    %c0_53 = arith.constant 0 : index
    %130 = vector.load %arg2[%c48, %c0_53] : memref<240x32xf32, #tpu.memory_space<vmem>>, vector<48x32xf32>
    %cst_54 = arith.constant dense<0.000000e+00> : vector<48x128xf32>
    %131 = tpu.matmul %130, %0, %cst_54 {dimension_numbers = #tpu.dot_dimension_numbers<[1], [0], [0], [1], [0, 0, 1, 1], [], []>, precision = #tpu.contract_precision<fp32>} : vector<48x32xf32>, vector<32x128xf32>, vector<48x128xf32> -> vector<48x128xf32>
    %132 = vector.extract_strided_slice %131 {offsets = [0, 0], sizes = [8, 128], strides = [1, 1]} : vector<48x128xf32> to vector<8x128xf32>
    %133 = vector.extract_strided_slice %131 {offsets = [8, 0], sizes = [8, 128], strides = [1, 1]} : vector<48x128xf32> to vector<8x128xf32>
    %134 = vector.extract_strided_slice %131 {offsets = [16, 0], sizes = [8, 128], strides = [1, 1]} : vector<48x128xf32> to vector<8x128xf32>
    %135 = vector.extract_strided_slice %131 {offsets = [24, 0], sizes = [8, 128], strides = [1, 1]} : vector<48x128xf32> to vector<8x128xf32>
    %136 = vector.extract_strided_slice %131 {offsets = [32, 0], sizes = [8, 128], strides = [1, 1]} : vector<48x128xf32> to vector<8x128xf32>
    %137 = vector.extract_strided_slice %131 {offsets = [40, 0], sizes = [8, 128], strides = [1, 1]} : vector<48x128xf32> to vector<8x128xf32>
    %cst_55 = arith.constant 9.99999993E-9 : f32
    %138 = vector.broadcast %cst_55 : f32 to vector<8x128xf32>
    %139 = arith.addf %132, %138 : vector<8x128xf32>
    %cst_56 = arith.constant 9.99999993E-9 : f32
    %140 = vector.broadcast %cst_56 : f32 to vector<8x128xf32>
    %141 = arith.addf %133, %140 : vector<8x128xf32>
    %cst_57 = arith.constant 9.99999993E-9 : f32
    %142 = vector.broadcast %cst_57 : f32 to vector<8x128xf32>
    %143 = arith.addf %134, %142 : vector<8x128xf32>
    %144 = arith.mulf %139, %139 : vector<8x128xf32>
    %145 = arith.mulf %141, %141 : vector<8x128xf32>
    %146 = arith.addf %144, %145 : vector<8x128xf32>
    %147 = arith.mulf %143, %143 : vector<8x128xf32>
    %148 = arith.addf %146, %147 : vector<8x128xf32>
    %149 = math.sqrt %148 : vector<8x128xf32>
    %cst_58 = arith.constant 1.000000e+00 : f32
    %150 = vector.broadcast %cst_58 : f32 to vector<8x128xf32>
    %151 = arith.divf %150, %149 : vector<8x128xf32>
    %152 = arith.mulf %132, %151 : vector<8x128xf32>
    %153 = arith.mulf %133, %151 : vector<8x128xf32>
    %154 = arith.mulf %134, %151 : vector<8x128xf32>
    %155 = math.sin %149 : vector<8x128xf32>
    %156 = math.cos %149 : vector<8x128xf32>
    %cst_59 = arith.constant 1.000000e+00 : f32
    %157 = vector.broadcast %cst_59 : f32 to vector<8x128xf32>
    %158 = arith.subf %157, %156 : vector<8x128xf32>
    %159 = arith.mulf %152, %153 : vector<8x128xf32>
    %160 = arith.mulf %158, %159 : vector<8x128xf32>
    %161 = arith.mulf %152, %154 : vector<8x128xf32>
    %162 = arith.mulf %158, %161 : vector<8x128xf32>
    %163 = arith.mulf %153, %154 : vector<8x128xf32>
    %164 = arith.mulf %158, %163 : vector<8x128xf32>
    %165 = arith.mulf %154, %154 : vector<8x128xf32>
    %cst_60 = arith.constant 0.000000e+00 : f32
    %166 = vector.broadcast %cst_60 : f32 to vector<8x128xf32>
    %167 = arith.subf %166, %165 : vector<8x128xf32>
    %168 = arith.mulf %153, %153 : vector<8x128xf32>
    %169 = arith.subf %167, %168 : vector<8x128xf32>
    %170 = arith.mulf %158, %169 : vector<8x128xf32>
    %cst_61 = arith.constant 1.000000e+00 : f32
    %171 = vector.broadcast %cst_61 : f32 to vector<8x128xf32>
    %172 = arith.addf %171, %170 : vector<8x128xf32>
    %cst_62 = arith.constant 0.000000e+00 : f32
    %173 = vector.broadcast %cst_62 : f32 to vector<8x128xf32>
    %174 = arith.subf %173, %155 : vector<8x128xf32>
    %175 = arith.mulf %174, %154 : vector<8x128xf32>
    %176 = arith.addf %175, %160 : vector<8x128xf32>
    %177 = arith.mulf %155, %153 : vector<8x128xf32>
    %178 = arith.addf %177, %162 : vector<8x128xf32>
    %179 = arith.mulf %155, %154 : vector<8x128xf32>
    %180 = arith.addf %179, %160 : vector<8x128xf32>
    %181 = arith.mulf %154, %154 : vector<8x128xf32>
    %cst_63 = arith.constant 0.000000e+00 : f32
    %182 = vector.broadcast %cst_63 : f32 to vector<8x128xf32>
    %183 = arith.subf %182, %181 : vector<8x128xf32>
    %184 = arith.mulf %152, %152 : vector<8x128xf32>
    %185 = arith.subf %183, %184 : vector<8x128xf32>
    %186 = arith.mulf %158, %185 : vector<8x128xf32>
    %cst_64 = arith.constant 1.000000e+00 : f32
    %187 = vector.broadcast %cst_64 : f32 to vector<8x128xf32>
    %188 = arith.addf %187, %186 : vector<8x128xf32>
    %cst_65 = arith.constant 0.000000e+00 : f32
    %189 = vector.broadcast %cst_65 : f32 to vector<8x128xf32>
    %190 = arith.subf %189, %155 : vector<8x128xf32>
    %191 = arith.mulf %190, %152 : vector<8x128xf32>
    %192 = arith.addf %191, %164 : vector<8x128xf32>
    %cst_66 = arith.constant 0.000000e+00 : f32
    %193 = vector.broadcast %cst_66 : f32 to vector<8x128xf32>
    %194 = arith.subf %193, %155 : vector<8x128xf32>
    %195 = arith.mulf %194, %153 : vector<8x128xf32>
    %196 = arith.addf %195, %162 : vector<8x128xf32>
    %197 = arith.mulf %155, %152 : vector<8x128xf32>
    %198 = arith.addf %197, %164 : vector<8x128xf32>
    %199 = arith.mulf %153, %153 : vector<8x128xf32>
    %cst_67 = arith.constant 0.000000e+00 : f32
    %200 = vector.broadcast %cst_67 : f32 to vector<8x128xf32>
    %201 = arith.subf %200, %199 : vector<8x128xf32>
    %202 = arith.mulf %152, %152 : vector<8x128xf32>
    %203 = arith.subf %201, %202 : vector<8x128xf32>
    %204 = arith.mulf %158, %203 : vector<8x128xf32>
    %cst_68 = arith.constant 1.000000e+00 : f32
    %205 = vector.broadcast %cst_68 : f32 to vector<8x128xf32>
    %206 = arith.addf %205, %204 : vector<8x128xf32>
    %207 = arith.mulf %43, %172 : vector<8x128xf32>
    %208 = arith.mulf %47, %180 : vector<8x128xf32>
    %209 = arith.addf %207, %208 : vector<8x128xf32>
    %210 = arith.mulf %49, %196 : vector<8x128xf32>
    %211 = arith.addf %209, %210 : vector<8x128xf32>
    %212 = arith.mulf %43, %176 : vector<8x128xf32>
    %213 = arith.mulf %47, %188 : vector<8x128xf32>
    %214 = arith.addf %212, %213 : vector<8x128xf32>
    %215 = arith.mulf %49, %198 : vector<8x128xf32>
    %216 = arith.addf %214, %215 : vector<8x128xf32>
    %217 = arith.mulf %43, %178 : vector<8x128xf32>
    %218 = arith.mulf %47, %192 : vector<8x128xf32>
    %219 = arith.addf %217, %218 : vector<8x128xf32>
    %220 = arith.mulf %49, %206 : vector<8x128xf32>
    %221 = arith.addf %219, %220 : vector<8x128xf32>
    %222 = arith.mulf %43, %135 : vector<8x128xf32>
    %223 = arith.mulf %47, %136 : vector<8x128xf32>
    %224 = arith.addf %222, %223 : vector<8x128xf32>
    %225 = arith.mulf %49, %137 : vector<8x128xf32>
    %226 = arith.addf %224, %225 : vector<8x128xf32>
    %227 = arith.addf %226, %6 : vector<8x128xf32>
    %228 = arith.mulf %51, %172 : vector<8x128xf32>
    %229 = arith.mulf %59, %180 : vector<8x128xf32>
    %230 = arith.addf %228, %229 : vector<8x128xf32>
    %231 = arith.mulf %63, %196 : vector<8x128xf32>
    %232 = arith.addf %230, %231 : vector<8x128xf32>
    %233 = arith.mulf %51, %176 : vector<8x128xf32>
    %234 = arith.mulf %59, %188 : vector<8x128xf32>
    %235 = arith.addf %233, %234 : vector<8x128xf32>
    %236 = arith.mulf %63, %198 : vector<8x128xf32>
    %237 = arith.addf %235, %236 : vector<8x128xf32>
    %238 = arith.mulf %51, %178 : vector<8x128xf32>
    %239 = arith.mulf %59, %192 : vector<8x128xf32>
    %240 = arith.addf %238, %239 : vector<8x128xf32>
    %241 = arith.mulf %63, %206 : vector<8x128xf32>
    %242 = arith.addf %240, %241 : vector<8x128xf32>
    %243 = arith.mulf %51, %135 : vector<8x128xf32>
    %244 = arith.mulf %59, %136 : vector<8x128xf32>
    %245 = arith.addf %243, %244 : vector<8x128xf32>
    %246 = arith.mulf %63, %137 : vector<8x128xf32>
    %247 = arith.addf %245, %246 : vector<8x128xf32>
    %248 = arith.addf %247, %7 : vector<8x128xf32>
    %249 = arith.mulf %67, %172 : vector<8x128xf32>
    %250 = arith.mulf %69, %180 : vector<8x128xf32>
    %251 = arith.addf %249, %250 : vector<8x128xf32>
    %252 = arith.mulf %77, %196 : vector<8x128xf32>
    %253 = arith.addf %251, %252 : vector<8x128xf32>
    %254 = arith.mulf %67, %176 : vector<8x128xf32>
    %255 = arith.mulf %69, %188 : vector<8x128xf32>
    %256 = arith.addf %254, %255 : vector<8x128xf32>
    %257 = arith.mulf %77, %198 : vector<8x128xf32>
    %258 = arith.addf %256, %257 : vector<8x128xf32>
    %259 = arith.mulf %67, %178 : vector<8x128xf32>
    %260 = arith.mulf %69, %192 : vector<8x128xf32>
    %261 = arith.addf %259, %260 : vector<8x128xf32>
    %262 = arith.mulf %77, %206 : vector<8x128xf32>
    %263 = arith.addf %261, %262 : vector<8x128xf32>
    %264 = arith.mulf %67, %135 : vector<8x128xf32>
    %265 = arith.mulf %69, %136 : vector<8x128xf32>
    %266 = arith.addf %264, %265 : vector<8x128xf32>
    %267 = arith.mulf %77, %137 : vector<8x128xf32>
    %268 = arith.addf %266, %267 : vector<8x128xf32>
    %269 = arith.addf %268, %8 : vector<8x128xf32>
    %c0_69 = arith.constant 0 : index
    %c8_70 = arith.constant 8 : index
    %c0_71 = arith.constant 0 : index
    %270 = vector.load %arg5[%c0_69, %c8_70, %c0_71] : memref<12x40x128xf32, #tpu.memory_space<vmem>>, vector<1x8x128xf32>
    %271 = vector.shape_cast %270 : vector<1x8x128xf32> to vector<8x128xf32>
    %272 = vector.shape_cast %211 : vector<8x128xf32> to vector<1x8x128xf32>
    tpu.vector_store %arg5[%c0_69, %c8_70, %c0_71], %272 {strides = array<i32>} : memref<12x40x128xf32, #tpu.memory_space<vmem>>, vector<1x8x128xf32>,
    %c1_72 = arith.constant 1 : index
    %c8_73 = arith.constant 8 : index
    %c0_74 = arith.constant 0 : index
    %273 = vector.load %arg5[%c1_72, %c8_73, %c0_74] : memref<12x40x128xf32, #tpu.memory_space<vmem>>, vector<1x8x128xf32>
    %274 = vector.shape_cast %273 : vector<1x8x128xf32> to vector<8x128xf32>
    %275 = vector.shape_cast %216 : vector<8x128xf32> to vector<1x8x128xf32>
    tpu.vector_store %arg5[%c1_72, %c8_73, %c0_74], %275 {strides = array<i32>} : memref<12x40x128xf32, #tpu.memory_space<vmem>>, vector<1x8x128xf32>,
    %c2_75 = arith.constant 2 : index
    %c8_76 = arith.constant 8 : index
    %c0_77 = arith.constant 0 : index
    %276 = vector.load %arg5[%c2_75, %c8_76, %c0_77] : memref<12x40x128xf32, #tpu.memory_space<vmem>>, vector<1x8x128xf32>
    %277 = vector.shape_cast %276 : vector<1x8x128xf32> to vector<8x128xf32>
    %278 = vector.shape_cast %221 : vector<8x128xf32> to vector<1x8x128xf32>
    tpu.vector_store %arg5[%c2_75, %c8_76, %c0_77], %278 {strides = array<i32>} : memref<12x40x128xf32, #tpu.memory_space<vmem>>, vector<1x8x128xf32>,
    %c3_78 = arith.constant 3 : index
    %c8_79 = arith.constant 8 : index
    %c0_80 = arith.constant 0 : index
    %279 = vector.load %arg5[%c3_78, %c8_79, %c0_80] : memref<12x40x128xf32, #tpu.memory_space<vmem>>, vector<1x8x128xf32>
    %280 = vector.shape_cast %279 : vector<1x8x128xf32> to vector<8x128xf32>
    %281 = vector.shape_cast %227 : vector<8x128xf32> to vector<1x8x128xf32>
    tpu.vector_store %arg5[%c3_78, %c8_79, %c0_80], %281 {strides = array<i32>} : memref<12x40x128xf32, #tpu.memory_space<vmem>>, vector<1x8x128xf32>,
    %c4_81 = arith.constant 4 : index
    %c8_82 = arith.constant 8 : index
    %c0_83 = arith.constant 0 : index
    %282 = vector.load %arg5[%c4_81, %c8_82, %c0_83] : memref<12x40x128xf32, #tpu.memory_space<vmem>>, vector<1x8x128xf32>
    %283 = vector.shape_cast %282 : vector<1x8x128xf32> to vector<8x128xf32>
    %284 = vector.shape_cast %232 : vector<8x128xf32> to vector<1x8x128xf32>
    tpu.vector_store %arg5[%c4_81, %c8_82, %c0_83], %284 {strides = array<i32>} : memref<12x40x128xf32, #tpu.memory_space<vmem>>, vector<1x8x128xf32>,
    %c5_84 = arith.constant 5 : index
    %c8_85 = arith.constant 8 : index
    %c0_86 = arith.constant 0 : index
    %285 = vector.load %arg5[%c5_84, %c8_85, %c0_86] : memref<12x40x128xf32, #tpu.memory_space<vmem>>, vector<1x8x128xf32>
    %286 = vector.shape_cast %285 : vector<1x8x128xf32> to vector<8x128xf32>
    %287 = vector.shape_cast %237 : vector<8x128xf32> to vector<1x8x128xf32>
    tpu.vector_store %arg5[%c5_84, %c8_85, %c0_86], %287 {strides = array<i32>} : memref<12x40x128xf32, #tpu.memory_space<vmem>>, vector<1x8x128xf32>,
    %c6_87 = arith.constant 6 : index
    %c8_88 = arith.constant 8 : index
    %c0_89 = arith.constant 0 : index
    %288 = vector.load %arg5[%c6_87, %c8_88, %c0_89] : memref<12x40x128xf32, #tpu.memory_space<vmem>>, vector<1x8x128xf32>
    %289 = vector.shape_cast %288 : vector<1x8x128xf32> to vector<8x128xf32>
    %290 = vector.shape_cast %242 : vector<8x128xf32> to vector<1x8x128xf32>
    tpu.vector_store %arg5[%c6_87, %c8_88, %c0_89], %290 {strides = array<i32>} : memref<12x40x128xf32, #tpu.memory_space<vmem>>, vector<1x8x128xf32>,
    %c7_90 = arith.constant 7 : index
    %c8_91 = arith.constant 8 : index
    %c0_92 = arith.constant 0 : index
    %291 = vector.load %arg5[%c7_90, %c8_91, %c0_92] : memref<12x40x128xf32, #tpu.memory_space<vmem>>, vector<1x8x128xf32>
    %292 = vector.shape_cast %291 : vector<1x8x128xf32> to vector<8x128xf32>
    %293 = vector.shape_cast %248 : vector<8x128xf32> to vector<1x8x128xf32>
    tpu.vector_store %arg5[%c7_90, %c8_91, %c0_92], %293 {strides = array<i32>} : memref<12x40x128xf32, #tpu.memory_space<vmem>>, vector<1x8x128xf32>,
    %c8_93 = arith.constant 8 : index
    %c8_94 = arith.constant 8 : index
    %c0_95 = arith.constant 0 : index
    %294 = vector.load %arg5[%c8_93, %c8_94, %c0_95] : memref<12x40x128xf32, #tpu.memory_space<vmem>>, vector<1x8x128xf32>
    %295 = vector.shape_cast %294 : vector<1x8x128xf32> to vector<8x128xf32>
    %296 = vector.shape_cast %253 : vector<8x128xf32> to vector<1x8x128xf32>
    tpu.vector_store %arg5[%c8_93, %c8_94, %c0_95], %296 {strides = array<i32>} : memref<12x40x128xf32, #tpu.memory_space<vmem>>, vector<1x8x128xf32>,
    %c9_96 = arith.constant 9 : index
    %c8_97 = arith.constant 8 : index
    %c0_98 = arith.constant 0 : index
    %297 = vector.load %arg5[%c9_96, %c8_97, %c0_98] : memref<12x40x128xf32, #tpu.memory_space<vmem>>, vector<1x8x128xf32>
    %298 = vector.shape_cast %297 : vector<1x8x128xf32> to vector<8x128xf32>
    %299 = vector.shape_cast %258 : vector<8x128xf32> to vector<1x8x128xf32>
    tpu.vector_store %arg5[%c9_96, %c8_97, %c0_98], %299 {strides = array<i32>} : memref<12x40x128xf32, #tpu.memory_space<vmem>>, vector<1x8x128xf32>,
    %c10_99 = arith.constant 10 : index
    %c8_100 = arith.constant 8 : index
    %c0_101 = arith.constant 0 : index
    %300 = vector.load %arg5[%c10_99, %c8_100, %c0_101] : memref<12x40x128xf32, #tpu.memory_space<vmem>>, vector<1x8x128xf32>
    %301 = vector.shape_cast %300 : vector<1x8x128xf32> to vector<8x128xf32>
    %302 = vector.shape_cast %263 : vector<8x128xf32> to vector<1x8x128xf32>
    tpu.vector_store %arg5[%c10_99, %c8_100, %c0_101], %302 {strides = array<i32>} : memref<12x40x128xf32, #tpu.memory_space<vmem>>, vector<1x8x128xf32>,
    %c11_102 = arith.constant 11 : index
    %c8_103 = arith.constant 8 : index
    %c0_104 = arith.constant 0 : index
    %303 = vector.load %arg5[%c11_102, %c8_103, %c0_104] : memref<12x40x128xf32, #tpu.memory_space<vmem>>, vector<1x8x128xf32>
    %304 = vector.shape_cast %303 : vector<1x8x128xf32> to vector<8x128xf32>
    %305 = vector.shape_cast %269 : vector<8x128xf32> to vector<1x8x128xf32>
    tpu.vector_store %arg5[%c11_102, %c8_103, %c0_104], %305 {strides = array<i32>} : memref<12x40x128xf32, #tpu.memory_space<vmem>>, vector<1x8x128xf32>,
    %c8_105 = arith.constant 8 : index
    %c0_106 = arith.constant 0 : index
    %306 = vector.load %arg3[%c8_105, %c0_106] : memref<40x128xf32, #tpu.memory_space<vmem>>, vector<8x128xf32>
    %307 = arith.mulf %216, %306 : vector<8x128xf32>
    %308 = arith.addf %307, %227 : vector<8x128xf32>
    %c0_107 = arith.constant 0 : index
    %c8_108 = arith.constant 8 : index
    %c0_109 = arith.constant 0 : index
    %309 = vector.load %arg4[%c0_107, %c8_108, %c0_109] : memref<3x40x128xf32, #tpu.memory_space<vmem>>, vector<1x8x128xf32>
    %310 = vector.shape_cast %309 : vector<1x8x128xf32> to vector<8x128xf32>
    %311 = vector.shape_cast %308 : vector<8x128xf32> to vector<1x8x128xf32>
    tpu.vector_store %arg4[%c0_107, %c8_108, %c0_109], %311 {strides = array<i32>} : memref<3x40x128xf32, #tpu.memory_space<vmem>>, vector<1x8x128xf32>,
    %312 = arith.mulf %237, %306 : vector<8x128xf32>
    %313 = arith.addf %312, %248 : vector<8x128xf32>
    %c1_110 = arith.constant 1 : index
    %c8_111 = arith.constant 8 : index
    %c0_112 = arith.constant 0 : index
    %314 = vector.load %arg4[%c1_110, %c8_111, %c0_112] : memref<3x40x128xf32, #tpu.memory_space<vmem>>, vector<1x8x128xf32>
    %315 = vector.shape_cast %314 : vector<1x8x128xf32> to vector<8x128xf32>
    %316 = vector.shape_cast %313 : vector<8x128xf32> to vector<1x8x128xf32>
    tpu.vector_store %arg4[%c1_110, %c8_111, %c0_112], %316 {strides = array<i32>} : memref<3x40x128xf32, #tpu.memory_space<vmem>>, vector<1x8x128xf32>,
    %317 = arith.mulf %258, %306 : vector<8x128xf32>
    %318 = arith.addf %317, %269 : vector<8x128xf32>
    %c2_113 = arith.constant 2 : index
    %c8_114 = arith.constant 8 : index
    %c0_115 = arith.constant 0 : index
    %319 = vector.load %arg4[%c2_113, %c8_114, %c0_115] : memref<3x40x128xf32, #tpu.memory_space<vmem>>, vector<1x8x128xf32>
    %320 = vector.shape_cast %319 : vector<1x8x128xf32> to vector<8x128xf32>
    %321 = vector.shape_cast %318 : vector<8x128xf32> to vector<1x8x128xf32>
    tpu.vector_store %arg4[%c2_113, %c8_114, %c0_115], %321 {strides = array<i32>} : memref<3x40x128xf32, #tpu.memory_space<vmem>>, vector<1x8x128xf32>,
    %c96 = arith.constant 96 : index
    %c0_116 = arith.constant 0 : index
    %322 = vector.load %arg2[%c96, %c0_116] : memref<240x32xf32, #tpu.memory_space<vmem>>, vector<48x32xf32>
    %cst_117 = arith.constant dense<0.000000e+00> : vector<48x128xf32>
    %323 = tpu.matmul %322, %0, %cst_117 {dimension_numbers = #tpu.dot_dimension_numbers<[1], [0], [0], [1], [0, 0, 1, 1], [], []>, precision = #tpu.contract_precision<fp32>} : vector<48x32xf32>, vector<32x128xf32>, vector<48x128xf32> -> vector<48x128xf32>
    %324 = vector.extract_strided_slice %323 {offsets = [0, 0], sizes = [8, 128], strides = [1, 1]} : vector<48x128xf32> to vector<8x128xf32>
    %325 = vector.extract_strided_slice %323 {offsets = [8, 0], sizes = [8, 128], strides = [1, 1]} : vector<48x128xf32> to vector<8x128xf32>
    %326 = vector.extract_strided_slice %323 {offsets = [16, 0], sizes = [8, 128], strides = [1, 1]} : vector<48x128xf32> to vector<8x128xf32>
    %327 = vector.extract_strided_slice %323 {offsets = [24, 0], sizes = [8, 128], strides = [1, 1]} : vector<48x128xf32> to vector<8x128xf32>
    %328 = vector.extract_strided_slice %323 {offsets = [32, 0], sizes = [8, 128], strides = [1, 1]} : vector<48x128xf32> to vector<8x128xf32>
    %329 = vector.extract_strided_slice %323 {offsets = [40, 0], sizes = [8, 128], strides = [1, 1]} : vector<48x128xf32> to vector<8x128xf32>
    %cst_118 = arith.constant 9.99999993E-9 : f32
    %330 = vector.broadcast %cst_118 : f32 to vector<8x128xf32>
    %331 = arith.addf %324, %330 : vector<8x128xf32>
    %cst_119 = arith.constant 9.99999993E-9 : f32
    %332 = vector.broadcast %cst_119 : f32 to vector<8x128xf32>
    %333 = arith.addf %325, %332 : vector<8x128xf32>
    %cst_120 = arith.constant 9.99999993E-9 : f32
    %334 = vector.broadcast %cst_120 : f32 to vector<8x128xf32>
    %335 = arith.addf %326, %334 : vector<8x128xf32>
    %336 = arith.mulf %331, %331 : vector<8x128xf32>
    %337 = arith.mulf %333, %333 : vector<8x128xf32>
    %338 = arith.addf %336, %337 : vector<8x128xf32>
    %339 = arith.mulf %335, %335 : vector<8x128xf32>
    %340 = arith.addf %338, %339 : vector<8x128xf32>
    %341 = math.sqrt %340 : vector<8x128xf32>
    %cst_121 = arith.constant 1.000000e+00 : f32
    %342 = vector.broadcast %cst_121 : f32 to vector<8x128xf32>
    %343 = arith.divf %342, %341 : vector<8x128xf32>
    %344 = arith.mulf %324, %343 : vector<8x128xf32>
    %345 = arith.mulf %325, %343 : vector<8x128xf32>
    %346 = arith.mulf %326, %343 : vector<8x128xf32>
    %347 = math.sin %341 : vector<8x128xf32>
    %348 = math.cos %341 : vector<8x128xf32>
    %cst_122 = arith.constant 1.000000e+00 : f32
    %349 = vector.broadcast %cst_122 : f32 to vector<8x128xf32>
    %350 = arith.subf %349, %348 : vector<8x128xf32>
    %351 = arith.mulf %344, %345 : vector<8x128xf32>
    %352 = arith.mulf %350, %351 : vector<8x128xf32>
    %353 = arith.mulf %344, %346 : vector<8x128xf32>
    %354 = arith.mulf %350, %353 : vector<8x128xf32>
    %355 = arith.mulf %345, %346 : vector<8x128xf32>
    %356 = arith.mulf %350, %355 : vector<8x128xf32>
    %357 = arith.mulf %346, %346 : vector<8x128xf32>
    %cst_123 = arith.constant 0.000000e+00 : f32
    %358 = vector.broadcast %cst_123 : f32 to vector<8x128xf32>
    %359 = arith.subf %358, %357 : vector<8x128xf32>
    %360 = arith.mulf %345, %345 : vector<8x128xf32>
    %361 = arith.subf %359, %360 : vector<8x128xf32>
    %362 = arith.mulf %350, %361 : vector<8x128xf32>
    %cst_124 = arith.constant 1.000000e+00 : f32
    %363 = vector.broadcast %cst_124 : f32 to vector<8x128xf32>
    %364 = arith.addf %363, %362 : vector<8x128xf32>
    %cst_125 = arith.constant 0.000000e+00 : f32
    %365 = vector.broadcast %cst_125 : f32 to vector<8x128xf32>
    %366 = arith.subf %365, %347 : vector<8x128xf32>
    %367 = arith.mulf %366, %346 : vector<8x128xf32>
    %368 = arith.addf %367, %352 : vector<8x128xf32>
    %369 = arith.mulf %347, %345 : vector<8x128xf32>
    %370 = arith.addf %369, %354 : vector<8x128xf32>
    %371 = arith.mulf %347, %346 : vector<8x128xf32>
    %372 = arith.addf %371, %352 : vector<8x128xf32>
    %373 = arith.mulf %346, %346 : vector<8x128xf32>
    %cst_126 = arith.constant 0.000000e+00 : f32
    %374 = vector.broadcast %cst_126 : f32 to vector<8x128xf32>
    %375 = arith.subf %374, %373 : vector<8x128xf32>
    %376 = arith.mulf %344, %344 : vector<8x128xf32>
    %377 = arith.subf %375, %376 : vector<8x128xf32>
    %378 = arith.mulf %350, %377 : vector<8x128xf32>
    %cst_127 = arith.constant 1.000000e+00 : f32
    %379 = vector.broadcast %cst_127 : f32 to vector<8x128xf32>
    %380 = arith.addf %379, %378 : vector<8x128xf32>
    %cst_128 = arith.constant 0.000000e+00 : f32
    %381 = vector.broadcast %cst_128 : f32 to vector<8x128xf32>
    %382 = arith.subf %381, %347 : vector<8x128xf32>
    %383 = arith.mulf %382, %344 : vector<8x128xf32>
    %384 = arith.addf %383, %356 : vector<8x128xf32>
    %cst_129 = arith.constant 0.000000e+00 : f32
    %385 = vector.broadcast %cst_129 : f32 to vector<8x128xf32>
    %386 = arith.subf %385, %347 : vector<8x128xf32>
    %387 = arith.mulf %386, %345 : vector<8x128xf32>
    %388 = arith.addf %387, %354 : vector<8x128xf32>
    %389 = arith.mulf %347, %344 : vector<8x128xf32>
    %390 = arith.addf %389, %356 : vector<8x128xf32>
    %391 = arith.mulf %345, %345 : vector<8x128xf32>
    %cst_130 = arith.constant 0.000000e+00 : f32
    %392 = vector.broadcast %cst_130 : f32 to vector<8x128xf32>
    %393 = arith.subf %392, %391 : vector<8x128xf32>
    %394 = arith.mulf %344, %344 : vector<8x128xf32>
    %395 = arith.subf %393, %394 : vector<8x128xf32>
    %396 = arith.mulf %350, %395 : vector<8x128xf32>
    %cst_131 = arith.constant 1.000000e+00 : f32
    %397 = vector.broadcast %cst_131 : f32 to vector<8x128xf32>
    %398 = arith.addf %397, %396 : vector<8x128xf32>
    %399 = arith.mulf %211, %364 : vector<8x128xf32>
    %400 = arith.mulf %216, %372 : vector<8x128xf32>
    %401 = arith.addf %399, %400 : vector<8x128xf32>
    %402 = arith.mulf %221, %388 : vector<8x128xf32>
    %403 = arith.addf %401, %402 : vector<8x128xf32>
    %404 = arith.mulf %211, %368 : vector<8x128xf32>
    %405 = arith.mulf %216, %380 : vector<8x128xf32>
    %406 = arith.addf %404, %405 : vector<8x128xf32>
    %407 = arith.mulf %221, %390 : vector<8x128xf32>
    %408 = arith.addf %406, %407 : vector<8x128xf32>
    %409 = arith.mulf %211, %370 : vector<8x128xf32>
    %410 = arith.mulf %216, %384 : vector<8x128xf32>
    %411 = arith.addf %409, %410 : vector<8x128xf32>
    %412 = arith.mulf %221, %398 : vector<8x128xf32>
    %413 = arith.addf %411, %412 : vector<8x128xf32>
    %414 = arith.mulf %211, %327 : vector<8x128xf32>
    %415 = arith.mulf %216, %328 : vector<8x128xf32>
    %416 = arith.addf %414, %415 : vector<8x128xf32>
    %417 = arith.mulf %221, %329 : vector<8x128xf32>
    %418 = arith.addf %416, %417 : vector<8x128xf32>
    %419 = arith.addf %418, %227 : vector<8x128xf32>
    %420 = arith.mulf %232, %364 : vector<8x128xf32>
    %421 = arith.mulf %237, %372 : vector<8x128xf32>
    %422 = arith.addf %420, %421 : vector<8x128xf32>
    %423 = arith.mulf %242, %388 : vector<8x128xf32>
    %424 = arith.addf %422, %423 : vector<8x128xf32>
    %425 = arith.mulf %232, %368 : vector<8x128xf32>
    %426 = arith.mulf %237, %380 : vector<8x128xf32>
    %427 = arith.addf %425, %426 : vector<8x128xf32>
    %428 = arith.mulf %242, %390 : vector<8x128xf32>
    %429 = arith.addf %427, %428 : vector<8x128xf32>
    %430 = arith.mulf %232, %370 : vector<8x128xf32>
    %431 = arith.mulf %237, %384 : vector<8x128xf32>
    %432 = arith.addf %430, %431 : vector<8x128xf32>
    %433 = arith.mulf %242, %398 : vector<8x128xf32>
    %434 = arith.addf %432, %433 : vector<8x128xf32>
    %435 = arith.mulf %232, %327 : vector<8x128xf32>
    %436 = arith.mulf %237, %328 : vector<8x128xf32>
    %437 = arith.addf %435, %436 : vector<8x128xf32>
    %438 = arith.mulf %242, %329 : vector<8x128xf32>
    %439 = arith.addf %437, %438 : vector<8x128xf32>
    %440 = arith.addf %439, %248 : vector<8x128xf32>
    %441 = arith.mulf %253, %364 : vector<8x128xf32>
    %442 = arith.mulf %258, %372 : vector<8x128xf32>
    %443 = arith.addf %441, %442 : vector<8x128xf32>
    %444 = arith.mulf %263, %388 : vector<8x128xf32>
    %445 = arith.addf %443, %444 : vector<8x128xf32>
    %446 = arith.mulf %253, %368 : vector<8x128xf32>
    %447 = arith.mulf %258, %380 : vector<8x128xf32>
    %448 = arith.addf %446, %447 : vector<8x128xf32>
    %449 = arith.mulf %263, %390 : vector<8x128xf32>
    %450 = arith.addf %448, %449 : vector<8x128xf32>
    %451 = arith.mulf %253, %370 : vector<8x128xf32>
    %452 = arith.mulf %258, %384 : vector<8x128xf32>
    %453 = arith.addf %451, %452 : vector<8x128xf32>
    %454 = arith.mulf %263, %398 : vector<8x128xf32>
    %455 = arith.addf %453, %454 : vector<8x128xf32>
    %456 = arith.mulf %253, %327 : vector<8x128xf32>
    %457 = arith.mulf %258, %328 : vector<8x128xf32>
    %458 = arith.addf %456, %457 : vector<8x128xf32>
    %459 = arith.mulf %263, %329 : vector<8x128xf32>
    %460 = arith.addf %458, %459 : vector<8x128xf32>
    %461 = arith.addf %460, %269 : vector<8x128xf32>
    %c0_132 = arith.constant 0 : index
    %c16 = arith.constant 16 : index
    %c0_133 = arith.constant 0 : index
    %462 = vector.load %arg5[%c0_132, %c16, %c0_133] : memref<12x40x128xf32, #tpu.memory_space<vmem>>, vector<1x8x128xf32>
    %463 = vector.shape_cast %462 : vector<1x8x128xf32> to vector<8x128xf32>
    %464 = vector.shape_cast %403 : vector<8x128xf32> to vector<1x8x128xf32>
    tpu.vector_store %arg5[%c0_132, %c16, %c0_133], %464 {strides = array<i32>} : memref<12x40x128xf32, #tpu.memory_space<vmem>>, vector<1x8x128xf32>,
    %c1_134 = arith.constant 1 : index
    %c16_135 = arith.constant 16 : index
    %c0_136 = arith.constant 0 : index
    %465 = vector.load %arg5[%c1_134, %c16_135, %c0_136] : memref<12x40x128xf32, #tpu.memory_space<vmem>>, vector<1x8x128xf32>
    %466 = vector.shape_cast %465 : vector<1x8x128xf32> to vector<8x128xf32>
    %467 = vector.shape_cast %408 : vector<8x128xf32> to vector<1x8x128xf32>
    tpu.vector_store %arg5[%c1_134, %c16_135, %c0_136], %467 {strides = array<i32>} : memref<12x40x128xf32, #tpu.memory_space<vmem>>, vector<1x8x128xf32>,
    %c2_137 = arith.constant 2 : index
    %c16_138 = arith.constant 16 : index
    %c0_139 = arith.constant 0 : index
    %468 = vector.load %arg5[%c2_137, %c16_138, %c0_139] : memref<12x40x128xf32, #tpu.memory_space<vmem>>, vector<1x8x128xf32>
    %469 = vector.shape_cast %468 : vector<1x8x128xf32> to vector<8x128xf32>
    %470 = vector.shape_cast %413 : vector<8x128xf32> to vector<1x8x128xf32>
    tpu.vector_store %arg5[%c2_137, %c16_138, %c0_139], %470 {strides = array<i32>} : memref<12x40x128xf32, #tpu.memory_space<vmem>>, vector<1x8x128xf32>,
    %c3_140 = arith.constant 3 : index
    %c16_141 = arith.constant 16 : index
    %c0_142 = arith.constant 0 : index
    %471 = vector.load %arg5[%c3_140, %c16_141, %c0_142] : memref<12x40x128xf32, #tpu.memory_space<vmem>>, vector<1x8x128xf32>
    %472 = vector.shape_cast %471 : vector<1x8x128xf32> to vector<8x128xf32>
    %473 = vector.shape_cast %419 : vector<8x128xf32> to vector<1x8x128xf32>
    tpu.vector_store %arg5[%c3_140, %c16_141, %c0_142], %473 {strides = array<i32>} : memref<12x40x128xf32, #tpu.memory_space<vmem>>, vector<1x8x128xf32>,
    %c4_143 = arith.constant 4 : index
    %c16_144 = arith.constant 16 : index
    %c0_145 = arith.constant 0 : index
    %474 = vector.load %arg5[%c4_143, %c16_144, %c0_145] : memref<12x40x128xf32, #tpu.memory_space<vmem>>, vector<1x8x128xf32>
    %475 = vector.shape_cast %474 : vector<1x8x128xf32> to vector<8x128xf32>
    %476 = vector.shape_cast %424 : vector<8x128xf32> to vector<1x8x128xf32>
    tpu.vector_store %arg5[%c4_143, %c16_144, %c0_145], %476 {strides = array<i32>} : memref<12x40x128xf32, #tpu.memory_space<vmem>>, vector<1x8x128xf32>,
    %c5_146 = arith.constant 5 : index
    %c16_147 = arith.constant 16 : index
    %c0_148 = arith.constant 0 : index
    %477 = vector.load %arg5[%c5_146, %c16_147, %c0_148] : memref<12x40x128xf32, #tpu.memory_space<vmem>>, vector<1x8x128xf32>
    %478 = vector.shape_cast %477 : vector<1x8x128xf32> to vector<8x128xf32>
    %479 = vector.shape_cast %429 : vector<8x128xf32> to vector<1x8x128xf32>
    tpu.vector_store %arg5[%c5_146, %c16_147, %c0_148], %479 {strides = array<i32>} : memref<12x40x128xf32, #tpu.memory_space<vmem>>, vector<1x8x128xf32>,
    %c6_149 = arith.constant 6 : index
    %c16_150 = arith.constant 16 : index
    %c0_151 = arith.constant 0 : index
    %480 = vector.load %arg5[%c6_149, %c16_150, %c0_151] : memref<12x40x128xf32, #tpu.memory_space<vmem>>, vector<1x8x128xf32>
    %481 = vector.shape_cast %480 : vector<1x8x128xf32> to vector<8x128xf32>
    %482 = vector.shape_cast %434 : vector<8x128xf32> to vector<1x8x128xf32>
    tpu.vector_store %arg5[%c6_149, %c16_150, %c0_151], %482 {strides = array<i32>} : memref<12x40x128xf32, #tpu.memory_space<vmem>>, vector<1x8x128xf32>,
    %c7_152 = arith.constant 7 : index
    %c16_153 = arith.constant 16 : index
    %c0_154 = arith.constant 0 : index
    %483 = vector.load %arg5[%c7_152, %c16_153, %c0_154] : memref<12x40x128xf32, #tpu.memory_space<vmem>>, vector<1x8x128xf32>
    %484 = vector.shape_cast %483 : vector<1x8x128xf32> to vector<8x128xf32>
    %485 = vector.shape_cast %440 : vector<8x128xf32> to vector<1x8x128xf32>
    tpu.vector_store %arg5[%c7_152, %c16_153, %c0_154], %485 {strides = array<i32>} : memref<12x40x128xf32, #tpu.memory_space<vmem>>, vector<1x8x128xf32>,
    %c8_155 = arith.constant 8 : index
    %c16_156 = arith.constant 16 : index
    %c0_157 = arith.constant 0 : index
    %486 = vector.load %arg5[%c8_155, %c16_156, %c0_157] : memref<12x40x128xf32, #tpu.memory_space<vmem>>, vector<1x8x128xf32>
    %487 = vector.shape_cast %486 : vector<1x8x128xf32> to vector<8x128xf32>
    %488 = vector.shape_cast %445 : vector<8x128xf32> to vector<1x8x128xf32>
    tpu.vector_store %arg5[%c8_155, %c16_156, %c0_157], %488 {strides = array<i32>} : memref<12x40x128xf32, #tpu.memory_space<vmem>>, vector<1x8x128xf32>,
    %c9_158 = arith.constant 9 : index
    %c16_159 = arith.constant 16 : index
    %c0_160 = arith.constant 0 : index
    %489 = vector.load %arg5[%c9_158, %c16_159, %c0_160] : memref<12x40x128xf32, #tpu.memory_space<vmem>>, vector<1x8x128xf32>
    %490 = vector.shape_cast %489 : vector<1x8x128xf32> to vector<8x128xf32>
    %491 = vector.shape_cast %450 : vector<8x128xf32> to vector<1x8x128xf32>
    tpu.vector_store %arg5[%c9_158, %c16_159, %c0_160], %491 {strides = array<i32>} : memref<12x40x128xf32, #tpu.memory_space<vmem>>, vector<1x8x128xf32>,
    %c10_161 = arith.constant 10 : index
    %c16_162 = arith.constant 16 : index
    %c0_163 = arith.constant 0 : index
    %492 = vector.load %arg5[%c10_161, %c16_162, %c0_163] : memref<12x40x128xf32, #tpu.memory_space<vmem>>, vector<1x8x128xf32>
    %493 = vector.shape_cast %492 : vector<1x8x128xf32> to vector<8x128xf32>
    %494 = vector.shape_cast %455 : vector<8x128xf32> to vector<1x8x128xf32>
    tpu.vector_store %arg5[%c10_161, %c16_162, %c0_163], %494 {strides = array<i32>} : memref<12x40x128xf32, #tpu.memory_space<vmem>>, vector<1x8x128xf32>,
    %c11_164 = arith.constant 11 : index
    %c16_165 = arith.constant 16 : index
    %c0_166 = arith.constant 0 : index
    %495 = vector.load %arg5[%c11_164, %c16_165, %c0_166] : memref<12x40x128xf32, #tpu.memory_space<vmem>>, vector<1x8x128xf32>
    %496 = vector.shape_cast %495 : vector<1x8x128xf32> to vector<8x128xf32>
    %497 = vector.shape_cast %461 : vector<8x128xf32> to vector<1x8x128xf32>
    tpu.vector_store %arg5[%c11_164, %c16_165, %c0_166], %497 {strides = array<i32>} : memref<12x40x128xf32, #tpu.memory_space<vmem>>, vector<1x8x128xf32>,
    %c16_167 = arith.constant 16 : index
    %c0_168 = arith.constant 0 : index
    %498 = vector.load %arg3[%c16_167, %c0_168] : memref<40x128xf32, #tpu.memory_space<vmem>>, vector<8x128xf32>
    %499 = arith.mulf %408, %498 : vector<8x128xf32>
    %500 = arith.addf %499, %419 : vector<8x128xf32>
    %c0_169 = arith.constant 0 : index
    %c16_170 = arith.constant 16 : index
    %c0_171 = arith.constant 0 : index
    %501 = vector.load %arg4[%c0_169, %c16_170, %c0_171] : memref<3x40x128xf32, #tpu.memory_space<vmem>>, vector<1x8x128xf32>
    %502 = vector.shape_cast %501 : vector<1x8x128xf32> to vector<8x128xf32>
    %503 = vector.shape_cast %500 : vector<8x128xf32> to vector<1x8x128xf32>
    tpu.vector_store %arg4[%c0_169, %c16_170, %c0_171], %503 {strides = array<i32>} : memref<3x40x128xf32, #tpu.memory_space<vmem>>, vector<1x8x128xf32>,
    %504 = arith.mulf %429, %498 : vector<8x128xf32>
    %505 = arith.addf %504, %440 : vector<8x128xf32>
    %c1_172 = arith.constant 1 : index
    %c16_173 = arith.constant 16 : index
    %c0_174 = arith.constant 0 : index
    %506 = vector.load %arg4[%c1_172, %c16_173, %c0_174] : memref<3x40x128xf32, #tpu.memory_space<vmem>>, vector<1x8x128xf32>
    %507 = vector.shape_cast %506 : vector<1x8x128xf32> to vector<8x128xf32>
    %508 = vector.shape_cast %505 : vector<8x128xf32> to vector<1x8x128xf32>
    tpu.vector_store %arg4[%c1_172, %c16_173, %c0_174], %508 {strides = array<i32>} : memref<3x40x128xf32, #tpu.memory_space<vmem>>, vector<1x8x128xf32>,
    %509 = arith.mulf %450, %498 : vector<8x128xf32>
    %510 = arith.addf %509, %461 : vector<8x128xf32>
    %c2_175 = arith.constant 2 : index
    %c16_176 = arith.constant 16 : index
    %c0_177 = arith.constant 0 : index
    %511 = vector.load %arg4[%c2_175, %c16_176, %c0_177] : memref<3x40x128xf32, #tpu.memory_space<vmem>>, vector<1x8x128xf32>
    %512 = vector.shape_cast %511 : vector<1x8x128xf32> to vector<8x128xf32>
    %513 = vector.shape_cast %510 : vector<8x128xf32> to vector<1x8x128xf32>
    tpu.vector_store %arg4[%c2_175, %c16_176, %c0_177], %513 {strides = array<i32>} : memref<3x40x128xf32, #tpu.memory_space<vmem>>, vector<1x8x128xf32>,
    %c144 = arith.constant 144 : index
    %c0_178 = arith.constant 0 : index
    %514 = vector.load %arg2[%c144, %c0_178] : memref<240x32xf32, #tpu.memory_space<vmem>>, vector<48x32xf32>
    %cst_179 = arith.constant dense<0.000000e+00> : vector<48x128xf32>
    %515 = tpu.matmul %514, %0, %cst_179 {dimension_numbers = #tpu.dot_dimension_numbers<[1], [0], [0], [1], [0, 0, 1, 1], [], []>, precision = #tpu.contract_precision<fp32>} : vector<48x32xf32>, vector<32x128xf32>, vector<48x128xf32> -> vector<48x128xf32>
    %516 = vector.extract_strided_slice %515 {offsets = [0, 0], sizes = [8, 128], strides = [1, 1]} : vector<48x128xf32> to vector<8x128xf32>
    %517 = vector.extract_strided_slice %515 {offsets = [8, 0], sizes = [8, 128], strides = [1, 1]} : vector<48x128xf32> to vector<8x128xf32>
    %518 = vector.extract_strided_slice %515 {offsets = [16, 0], sizes = [8, 128], strides = [1, 1]} : vector<48x128xf32> to vector<8x128xf32>
    %519 = vector.extract_strided_slice %515 {offsets = [24, 0], sizes = [8, 128], strides = [1, 1]} : vector<48x128xf32> to vector<8x128xf32>
    %520 = vector.extract_strided_slice %515 {offsets = [32, 0], sizes = [8, 128], strides = [1, 1]} : vector<48x128xf32> to vector<8x128xf32>
    %521 = vector.extract_strided_slice %515 {offsets = [40, 0], sizes = [8, 128], strides = [1, 1]} : vector<48x128xf32> to vector<8x128xf32>
    %cst_180 = arith.constant 9.99999993E-9 : f32
    %522 = vector.broadcast %cst_180 : f32 to vector<8x128xf32>
    %523 = arith.addf %516, %522 : vector<8x128xf32>
    %cst_181 = arith.constant 9.99999993E-9 : f32
    %524 = vector.broadcast %cst_181 : f32 to vector<8x128xf32>
    %525 = arith.addf %517, %524 : vector<8x128xf32>
    %cst_182 = arith.constant 9.99999993E-9 : f32
    %526 = vector.broadcast %cst_182 : f32 to vector<8x128xf32>
    %527 = arith.addf %518, %526 : vector<8x128xf32>
    %528 = arith.mulf %523, %523 : vector<8x128xf32>
    %529 = arith.mulf %525, %525 : vector<8x128xf32>
    %530 = arith.addf %528, %529 : vector<8x128xf32>
    %531 = arith.mulf %527, %527 : vector<8x128xf32>
    %532 = arith.addf %530, %531 : vector<8x128xf32>
    %533 = math.sqrt %532 : vector<8x128xf32>
    %cst_183 = arith.constant 1.000000e+00 : f32
    %534 = vector.broadcast %cst_183 : f32 to vector<8x128xf32>
    %535 = arith.divf %534, %533 : vector<8x128xf32>
    %536 = arith.mulf %516, %535 : vector<8x128xf32>
    %537 = arith.mulf %517, %535 : vector<8x128xf32>
    %538 = arith.mulf %518, %535 : vector<8x128xf32>
    %539 = math.sin %533 : vector<8x128xf32>
    %540 = math.cos %533 : vector<8x128xf32>
    %cst_184 = arith.constant 1.000000e+00 : f32
    %541 = vector.broadcast %cst_184 : f32 to vector<8x128xf32>
    %542 = arith.subf %541, %540 : vector<8x128xf32>
    %543 = arith.mulf %536, %537 : vector<8x128xf32>
    %544 = arith.mulf %542, %543 : vector<8x128xf32>
    %545 = arith.mulf %536, %538 : vector<8x128xf32>
    %546 = arith.mulf %542, %545 : vector<8x128xf32>
    %547 = arith.mulf %537, %538 : vector<8x128xf32>
    %548 = arith.mulf %542, %547 : vector<8x128xf32>
    %549 = arith.mulf %538, %538 : vector<8x128xf32>
    %cst_185 = arith.constant 0.000000e+00 : f32
    %550 = vector.broadcast %cst_185 : f32 to vector<8x128xf32>
    %551 = arith.subf %550, %549 : vector<8x128xf32>
    %552 = arith.mulf %537, %537 : vector<8x128xf32>
    %553 = arith.subf %551, %552 : vector<8x128xf32>
    %554 = arith.mulf %542, %553 : vector<8x128xf32>
    %cst_186 = arith.constant 1.000000e+00 : f32
    %555 = vector.broadcast %cst_186 : f32 to vector<8x128xf32>
    %556 = arith.addf %555, %554 : vector<8x128xf32>
    %cst_187 = arith.constant 0.000000e+00 : f32
    %557 = vector.broadcast %cst_187 : f32 to vector<8x128xf32>
    %558 = arith.subf %557, %539 : vector<8x128xf32>
    %559 = arith.mulf %558, %538 : vector<8x128xf32>
    %560 = arith.addf %559, %544 : vector<8x128xf32>
    %561 = arith.mulf %539, %537 : vector<8x128xf32>
    %562 = arith.addf %561, %546 : vector<8x128xf32>
    %563 = arith.mulf %539, %538 : vector<8x128xf32>
    %564 = arith.addf %563, %544 : vector<8x128xf32>
    %565 = arith.mulf %538, %538 : vector<8x128xf32>
    %cst_188 = arith.constant 0.000000e+00 : f32
    %566 = vector.broadcast %cst_188 : f32 to vector<8x128xf32>
    %567 = arith.subf %566, %565 : vector<8x128xf32>
    %568 = arith.mulf %536, %536 : vector<8x128xf32>
    %569 = arith.subf %567, %568 : vector<8x128xf32>
    %570 = arith.mulf %542, %569 : vector<8x128xf32>
    %cst_189 = arith.constant 1.000000e+00 : f32
    %571 = vector.broadcast %cst_189 : f32 to vector<8x128xf32>
    %572 = arith.addf %571, %570 : vector<8x128xf32>
    %cst_190 = arith.constant 0.000000e+00 : f32
    %573 = vector.broadcast %cst_190 : f32 to vector<8x128xf32>
    %574 = arith.subf %573, %539 : vector<8x128xf32>
    %575 = arith.mulf %574, %536 : vector<8x128xf32>
    %576 = arith.addf %575, %548 : vector<8x128xf32>
    %cst_191 = arith.constant 0.000000e+00 : f32
    %577 = vector.broadcast %cst_191 : f32 to vector<8x128xf32>
    %578 = arith.subf %577, %539 : vector<8x128xf32>
    %579 = arith.mulf %578, %537 : vector<8x128xf32>
    %580 = arith.addf %579, %546 : vector<8x128xf32>
    %581 = arith.mulf %539, %536 : vector<8x128xf32>
    %582 = arith.addf %581, %548 : vector<8x128xf32>
    %583 = arith.mulf %537, %537 : vector<8x128xf32>
    %cst_192 = arith.constant 0.000000e+00 : f32
    %584 = vector.broadcast %cst_192 : f32 to vector<8x128xf32>
    %585 = arith.subf %584, %583 : vector<8x128xf32>
    %586 = arith.mulf %536, %536 : vector<8x128xf32>
    %587 = arith.subf %585, %586 : vector<8x128xf32>
    %588 = arith.mulf %542, %587 : vector<8x128xf32>
    %cst_193 = arith.constant 1.000000e+00 : f32
    %589 = vector.broadcast %cst_193 : f32 to vector<8x128xf32>
    %590 = arith.addf %589, %588 : vector<8x128xf32>
    %591 = arith.mulf %403, %556 : vector<8x128xf32>
    %592 = arith.mulf %408, %564 : vector<8x128xf32>
    %593 = arith.addf %591, %592 : vector<8x128xf32>
    %594 = arith.mulf %413, %580 : vector<8x128xf32>
    %595 = arith.addf %593, %594 : vector<8x128xf32>
    %596 = arith.mulf %403, %560 : vector<8x128xf32>
    %597 = arith.mulf %408, %572 : vector<8x128xf32>
    %598 = arith.addf %596, %597 : vector<8x128xf32>
    %599 = arith.mulf %413, %582 : vector<8x128xf32>
    %600 = arith.addf %598, %599 : vector<8x128xf32>
    %601 = arith.mulf %403, %562 : vector<8x128xf32>
    %602 = arith.mulf %408, %576 : vector<8x128xf32>
    %603 = arith.addf %601, %602 : vector<8x128xf32>
    %604 = arith.mulf %413, %590 : vector<8x128xf32>
    %605 = arith.addf %603, %604 : vector<8x128xf32>
    %606 = arith.mulf %403, %519 : vector<8x128xf32>
    %607 = arith.mulf %408, %520 : vector<8x128xf32>
    %608 = arith.addf %606, %607 : vector<8x128xf32>
    %609 = arith.mulf %413, %521 : vector<8x128xf32>
    %610 = arith.addf %608, %609 : vector<8x128xf32>
    %611 = arith.addf %610, %419 : vector<8x128xf32>
    %612 = arith.mulf %424, %556 : vector<8x128xf32>
    %613 = arith.mulf %429, %564 : vector<8x128xf32>
    %614 = arith.addf %612, %613 : vector<8x128xf32>
    %615 = arith.mulf %434, %580 : vector<8x128xf32>
    %616 = arith.addf %614, %615 : vector<8x128xf32>
    %617 = arith.mulf %424, %560 : vector<8x128xf32>
    %618 = arith.mulf %429, %572 : vector<8x128xf32>
    %619 = arith.addf %617, %618 : vector<8x128xf32>
    %620 = arith.mulf %434, %582 : vector<8x128xf32>
    %621 = arith.addf %619, %620 : vector<8x128xf32>
    %622 = arith.mulf %424, %562 : vector<8x128xf32>
    %623 = arith.mulf %429, %576 : vector<8x128xf32>
    %624 = arith.addf %622, %623 : vector<8x128xf32>
    %625 = arith.mulf %434, %590 : vector<8x128xf32>
    %626 = arith.addf %624, %625 : vector<8x128xf32>
    %627 = arith.mulf %424, %519 : vector<8x128xf32>
    %628 = arith.mulf %429, %520 : vector<8x128xf32>
    %629 = arith.addf %627, %628 : vector<8x128xf32>
    %630 = arith.mulf %434, %521 : vector<8x128xf32>
    %631 = arith.addf %629, %630 : vector<8x128xf32>
    %632 = arith.addf %631, %440 : vector<8x128xf32>
    %633 = arith.mulf %445, %556 : vector<8x128xf32>
    %634 = arith.mulf %450, %564 : vector<8x128xf32>
    %635 = arith.addf %633, %634 : vector<8x128xf32>
    %636 = arith.mulf %455, %580 : vector<8x128xf32>
    %637 = arith.addf %635, %636 : vector<8x128xf32>
    %638 = arith.mulf %445, %560 : vector<8x128xf32>
    %639 = arith.mulf %450, %572 : vector<8x128xf32>
    %640 = arith.addf %638, %639 : vector<8x128xf32>
    %641 = arith.mulf %455, %582 : vector<8x128xf32>
    %642 = arith.addf %640, %641 : vector<8x128xf32>
    %643 = arith.mulf %445, %562 : vector<8x128xf32>
    %644 = arith.mulf %450, %576 : vector<8x128xf32>
    %645 = arith.addf %643, %644 : vector<8x128xf32>
    %646 = arith.mulf %455, %590 : vector<8x128xf32>
    %647 = arith.addf %645, %646 : vector<8x128xf32>
    %648 = arith.mulf %445, %519 : vector<8x128xf32>
    %649 = arith.mulf %450, %520 : vector<8x128xf32>
    %650 = arith.addf %648, %649 : vector<8x128xf32>
    %651 = arith.mulf %455, %521 : vector<8x128xf32>
    %652 = arith.addf %650, %651 : vector<8x128xf32>
    %653 = arith.addf %652, %461 : vector<8x128xf32>
    %c0_194 = arith.constant 0 : index
    %c24 = arith.constant 24 : index
    %c0_195 = arith.constant 0 : index
    %654 = vector.load %arg5[%c0_194, %c24, %c0_195] : memref<12x40x128xf32, #tpu.memory_space<vmem>>, vector<1x8x128xf32>
    %655 = vector.shape_cast %654 : vector<1x8x128xf32> to vector<8x128xf32>
    %656 = vector.shape_cast %595 : vector<8x128xf32> to vector<1x8x128xf32>
    tpu.vector_store %arg5[%c0_194, %c24, %c0_195], %656 {strides = array<i32>} : memref<12x40x128xf32, #tpu.memory_space<vmem>>, vector<1x8x128xf32>,
    %c1_196 = arith.constant 1 : index
    %c24_197 = arith.constant 24 : index
    %c0_198 = arith.constant 0 : index
    %657 = vector.load %arg5[%c1_196, %c24_197, %c0_198] : memref<12x40x128xf32, #tpu.memory_space<vmem>>, vector<1x8x128xf32>
    %658 = vector.shape_cast %657 : vector<1x8x128xf32> to vector<8x128xf32>
    %659 = vector.shape_cast %600 : vector<8x128xf32> to vector<1x8x128xf32>
    tpu.vector_store %arg5[%c1_196, %c24_197, %c0_198], %659 {strides = array<i32>} : memref<12x40x128xf32, #tpu.memory_space<vmem>>, vector<1x8x128xf32>,
    %c2_199 = arith.constant 2 : index
    %c24_200 = arith.constant 24 : index
    %c0_201 = arith.constant 0 : index
    %660 = vector.load %arg5[%c2_199, %c24_200, %c0_201] : memref<12x40x128xf32, #tpu.memory_space<vmem>>, vector<1x8x128xf32>
    %661 = vector.shape_cast %660 : vector<1x8x128xf32> to vector<8x128xf32>
    %662 = vector.shape_cast %605 : vector<8x128xf32> to vector<1x8x128xf32>
    tpu.vector_store %arg5[%c2_199, %c24_200, %c0_201], %662 {strides = array<i32>} : memref<12x40x128xf32, #tpu.memory_space<vmem>>, vector<1x8x128xf32>,
    %c3_202 = arith.constant 3 : index
    %c24_203 = arith.constant 24 : index
    %c0_204 = arith.constant 0 : index
    %663 = vector.load %arg5[%c3_202, %c24_203, %c0_204] : memref<12x40x128xf32, #tpu.memory_space<vmem>>, vector<1x8x128xf32>
    %664 = vector.shape_cast %663 : vector<1x8x128xf32> to vector<8x128xf32>
    %665 = vector.shape_cast %611 : vector<8x128xf32> to vector<1x8x128xf32>
    tpu.vector_store %arg5[%c3_202, %c24_203, %c0_204], %665 {strides = array<i32>} : memref<12x40x128xf32, #tpu.memory_space<vmem>>, vector<1x8x128xf32>,
    %c4_205 = arith.constant 4 : index
    %c24_206 = arith.constant 24 : index
    %c0_207 = arith.constant 0 : index
    %666 = vector.load %arg5[%c4_205, %c24_206, %c0_207] : memref<12x40x128xf32, #tpu.memory_space<vmem>>, vector<1x8x128xf32>
    %667 = vector.shape_cast %666 : vector<1x8x128xf32> to vector<8x128xf32>
    %668 = vector.shape_cast %616 : vector<8x128xf32> to vector<1x8x128xf32>
    tpu.vector_store %arg5[%c4_205, %c24_206, %c0_207], %668 {strides = array<i32>} : memref<12x40x128xf32, #tpu.memory_space<vmem>>, vector<1x8x128xf32>,
    %c5_208 = arith.constant 5 : index
    %c24_209 = arith.constant 24 : index
    %c0_210 = arith.constant 0 : index
    %669 = vector.load %arg5[%c5_208, %c24_209, %c0_210] : memref<12x40x128xf32, #tpu.memory_space<vmem>>, vector<1x8x128xf32>
    %670 = vector.shape_cast %669 : vector<1x8x128xf32> to vector<8x128xf32>
    %671 = vector.shape_cast %621 : vector<8x128xf32> to vector<1x8x128xf32>
    tpu.vector_store %arg5[%c5_208, %c24_209, %c0_210], %671 {strides = array<i32>} : memref<12x40x128xf32, #tpu.memory_space<vmem>>, vector<1x8x128xf32>,
    %c6_211 = arith.constant 6 : index
    %c24_212 = arith.constant 24 : index
    %c0_213 = arith.constant 0 : index
    %672 = vector.load %arg5[%c6_211, %c24_212, %c0_213] : memref<12x40x128xf32, #tpu.memory_space<vmem>>, vector<1x8x128xf32>
    %673 = vector.shape_cast %672 : vector<1x8x128xf32> to vector<8x128xf32>
    %674 = vector.shape_cast %626 : vector<8x128xf32> to vector<1x8x128xf32>
    tpu.vector_store %arg5[%c6_211, %c24_212, %c0_213], %674 {strides = array<i32>} : memref<12x40x128xf32, #tpu.memory_space<vmem>>, vector<1x8x128xf32>,
    %c7_214 = arith.constant 7 : index
    %c24_215 = arith.constant 24 : index
    %c0_216 = arith.constant 0 : index
    %675 = vector.load %arg5[%c7_214, %c24_215, %c0_216] : memref<12x40x128xf32, #tpu.memory_space<vmem>>, vector<1x8x128xf32>
    %676 = vector.shape_cast %675 : vector<1x8x128xf32> to vector<8x128xf32>
    %677 = vector.shape_cast %632 : vector<8x128xf32> to vector<1x8x128xf32>
    tpu.vector_store %arg5[%c7_214, %c24_215, %c0_216], %677 {strides = array<i32>} : memref<12x40x128xf32, #tpu.memory_space<vmem>>, vector<1x8x128xf32>,
    %c8_217 = arith.constant 8 : index
    %c24_218 = arith.constant 24 : index
    %c0_219 = arith.constant 0 : index
    %678 = vector.load %arg5[%c8_217, %c24_218, %c0_219] : memref<12x40x128xf32, #tpu.memory_space<vmem>>, vector<1x8x128xf32>
    %679 = vector.shape_cast %678 : vector<1x8x128xf32> to vector<8x128xf32>
    %680 = vector.shape_cast %637 : vector<8x128xf32> to vector<1x8x128xf32>
    tpu.vector_store %arg5[%c8_217, %c24_218, %c0_219], %680 {strides = array<i32>} : memref<12x40x128xf32, #tpu.memory_space<vmem>>, vector<1x8x128xf32>,
    %c9_220 = arith.constant 9 : index
    %c24_221 = arith.constant 24 : index
    %c0_222 = arith.constant 0 : index
    %681 = vector.load %arg5[%c9_220, %c24_221, %c0_222] : memref<12x40x128xf32, #tpu.memory_space<vmem>>, vector<1x8x128xf32>
    %682 = vector.shape_cast %681 : vector<1x8x128xf32> to vector<8x128xf32>
    %683 = vector.shape_cast %642 : vector<8x128xf32> to vector<1x8x128xf32>
    tpu.vector_store %arg5[%c9_220, %c24_221, %c0_222], %683 {strides = array<i32>} : memref<12x40x128xf32, #tpu.memory_space<vmem>>, vector<1x8x128xf32>,
    %c10_223 = arith.constant 10 : index
    %c24_224 = arith.constant 24 : index
    %c0_225 = arith.constant 0 : index
    %684 = vector.load %arg5[%c10_223, %c24_224, %c0_225] : memref<12x40x128xf32, #tpu.memory_space<vmem>>, vector<1x8x128xf32>
    %685 = vector.shape_cast %684 : vector<1x8x128xf32> to vector<8x128xf32>
    %686 = vector.shape_cast %647 : vector<8x128xf32> to vector<1x8x128xf32>
    tpu.vector_store %arg5[%c10_223, %c24_224, %c0_225], %686 {strides = array<i32>} : memref<12x40x128xf32, #tpu.memory_space<vmem>>, vector<1x8x128xf32>,
    %c11_226 = arith.constant 11 : index
    %c24_227 = arith.constant 24 : index
    %c0_228 = arith.constant 0 : index
    %687 = vector.load %arg5[%c11_226, %c24_227, %c0_228] : memref<12x40x128xf32, #tpu.memory_space<vmem>>, vector<1x8x128xf32>
    %688 = vector.shape_cast %687 : vector<1x8x128xf32> to vector<8x128xf32>
    %689 = vector.shape_cast %653 : vector<8x128xf32> to vector<1x8x128xf32>
    tpu.vector_store %arg5[%c11_226, %c24_227, %c0_228], %689 {strides = array<i32>} : memref<12x40x128xf32, #tpu.memory_space<vmem>>, vector<1x8x128xf32>,
    %c24_229 = arith.constant 24 : index
    %c0_230 = arith.constant 0 : index
    %690 = vector.load %arg3[%c24_229, %c0_230] : memref<40x128xf32, #tpu.memory_space<vmem>>, vector<8x128xf32>
    %691 = arith.mulf %600, %690 : vector<8x128xf32>
    %692 = arith.addf %691, %611 : vector<8x128xf32>
    %c0_231 = arith.constant 0 : index
    %c24_232 = arith.constant 24 : index
    %c0_233 = arith.constant 0 : index
    %693 = vector.load %arg4[%c0_231, %c24_232, %c0_233] : memref<3x40x128xf32, #tpu.memory_space<vmem>>, vector<1x8x128xf32>
    %694 = vector.shape_cast %693 : vector<1x8x128xf32> to vector<8x128xf32>
    %695 = vector.shape_cast %692 : vector<8x128xf32> to vector<1x8x128xf32>
    tpu.vector_store %arg4[%c0_231, %c24_232, %c0_233], %695 {strides = array<i32>} : memref<3x40x128xf32, #tpu.memory_space<vmem>>, vector<1x8x128xf32>,
    %696 = arith.mulf %621, %690 : vector<8x128xf32>
    %697 = arith.addf %696, %632 : vector<8x128xf32>
    %c1_234 = arith.constant 1 : index
    %c24_235 = arith.constant 24 : index
    %c0_236 = arith.constant 0 : index
    %698 = vector.load %arg4[%c1_234, %c24_235, %c0_236] : memref<3x40x128xf32, #tpu.memory_space<vmem>>, vector<1x8x128xf32>
    %699 = vector.shape_cast %698 : vector<1x8x128xf32> to vector<8x128xf32>
    %700 = vector.shape_cast %697 : vector<8x128xf32> to vector<1x8x128xf32>
    tpu.vector_store %arg4[%c1_234, %c24_235, %c0_236], %700 {strides = array<i32>} : memref<3x40x128xf32, #tpu.memory_space<vmem>>, vector<1x8x128xf32>,
    %701 = arith.mulf %642, %690 : vector<8x128xf32>
    %702 = arith.addf %701, %653 : vector<8x128xf32>
    %c2_237 = arith.constant 2 : index
    %c24_238 = arith.constant 24 : index
    %c0_239 = arith.constant 0 : index
    %703 = vector.load %arg4[%c2_237, %c24_238, %c0_239] : memref<3x40x128xf32, #tpu.memory_space<vmem>>, vector<1x8x128xf32>
    %704 = vector.shape_cast %703 : vector<1x8x128xf32> to vector<8x128xf32>
    %705 = vector.shape_cast %702 : vector<8x128xf32> to vector<1x8x128xf32>
    tpu.vector_store %arg4[%c2_237, %c24_238, %c0_239], %705 {strides = array<i32>} : memref<3x40x128xf32, #tpu.memory_space<vmem>>, vector<1x8x128xf32>,
    %c192 = arith.constant 192 : index
    %c0_240 = arith.constant 0 : index
    %706 = vector.load %arg2[%c192, %c0_240] : memref<240x32xf32, #tpu.memory_space<vmem>>, vector<48x32xf32>
    %cst_241 = arith.constant dense<0.000000e+00> : vector<48x128xf32>
    %707 = tpu.matmul %706, %0, %cst_241 {dimension_numbers = #tpu.dot_dimension_numbers<[1], [0], [0], [1], [0, 0, 1, 1], [], []>, precision = #tpu.contract_precision<fp32>} : vector<48x32xf32>, vector<32x128xf32>, vector<48x128xf32> -> vector<48x128xf32>
    %708 = vector.extract_strided_slice %707 {offsets = [0, 0], sizes = [8, 128], strides = [1, 1]} : vector<48x128xf32> to vector<8x128xf32>
    %709 = vector.extract_strided_slice %707 {offsets = [8, 0], sizes = [8, 128], strides = [1, 1]} : vector<48x128xf32> to vector<8x128xf32>
    %710 = vector.extract_strided_slice %707 {offsets = [16, 0], sizes = [8, 128], strides = [1, 1]} : vector<48x128xf32> to vector<8x128xf32>
    %711 = vector.extract_strided_slice %707 {offsets = [24, 0], sizes = [8, 128], strides = [1, 1]} : vector<48x128xf32> to vector<8x128xf32>
    %712 = vector.extract_strided_slice %707 {offsets = [32, 0], sizes = [8, 128], strides = [1, 1]} : vector<48x128xf32> to vector<8x128xf32>
    %713 = vector.extract_strided_slice %707 {offsets = [40, 0], sizes = [8, 128], strides = [1, 1]} : vector<48x128xf32> to vector<8x128xf32>
    %cst_242 = arith.constant 9.99999993E-9 : f32
    %714 = vector.broadcast %cst_242 : f32 to vector<8x128xf32>
    %715 = arith.addf %708, %714 : vector<8x128xf32>
    %cst_243 = arith.constant 9.99999993E-9 : f32
    %716 = vector.broadcast %cst_243 : f32 to vector<8x128xf32>
    %717 = arith.addf %709, %716 : vector<8x128xf32>
    %cst_244 = arith.constant 9.99999993E-9 : f32
    %718 = vector.broadcast %cst_244 : f32 to vector<8x128xf32>
    %719 = arith.addf %710, %718 : vector<8x128xf32>
    %720 = arith.mulf %715, %715 : vector<8x128xf32>
    %721 = arith.mulf %717, %717 : vector<8x128xf32>
    %722 = arith.addf %720, %721 : vector<8x128xf32>
    %723 = arith.mulf %719, %719 : vector<8x128xf32>
    %724 = arith.addf %722, %723 : vector<8x128xf32>
    %725 = math.sqrt %724 : vector<8x128xf32>
    %cst_245 = arith.constant 1.000000e+00 : f32
    %726 = vector.broadcast %cst_245 : f32 to vector<8x128xf32>
    %727 = arith.divf %726, %725 : vector<8x128xf32>
    %728 = arith.mulf %708, %727 : vector<8x128xf32>
    %729 = arith.mulf %709, %727 : vector<8x128xf32>
    %730 = arith.mulf %710, %727 : vector<8x128xf32>
    %731 = math.sin %725 : vector<8x128xf32>
    %732 = math.cos %725 : vector<8x128xf32>
    %cst_246 = arith.constant 1.000000e+00 : f32
    %733 = vector.broadcast %cst_246 : f32 to vector<8x128xf32>
    %734 = arith.subf %733, %732 : vector<8x128xf32>
    %735 = arith.mulf %728, %729 : vector<8x128xf32>
    %736 = arith.mulf %734, %735 : vector<8x128xf32>
    %737 = arith.mulf %728, %730 : vector<8x128xf32>
    %738 = arith.mulf %734, %737 : vector<8x128xf32>
    %739 = arith.mulf %729, %730 : vector<8x128xf32>
    %740 = arith.mulf %734, %739 : vector<8x128xf32>
    %741 = arith.mulf %730, %730 : vector<8x128xf32>
    %cst_247 = arith.constant 0.000000e+00 : f32
    %742 = vector.broadcast %cst_247 : f32 to vector<8x128xf32>
    %743 = arith.subf %742, %741 : vector<8x128xf32>
    %744 = arith.mulf %729, %729 : vector<8x128xf32>
    %745 = arith.subf %743, %744 : vector<8x128xf32>
    %746 = arith.mulf %734, %745 : vector<8x128xf32>
    %cst_248 = arith.constant 1.000000e+00 : f32
    %747 = vector.broadcast %cst_248 : f32 to vector<8x128xf32>
    %748 = arith.addf %747, %746 : vector<8x128xf32>
    %cst_249 = arith.constant 0.000000e+00 : f32
    %749 = vector.broadcast %cst_249 : f32 to vector<8x128xf32>
    %750 = arith.subf %749, %731 : vector<8x128xf32>
    %751 = arith.mulf %750, %730 : vector<8x128xf32>
    %752 = arith.addf %751, %736 : vector<8x128xf32>
    %753 = arith.mulf %731, %729 : vector<8x128xf32>
    %754 = arith.addf %753, %738 : vector<8x128xf32>
    %755 = arith.mulf %731, %730 : vector<8x128xf32>
    %756 = arith.addf %755, %736 : vector<8x128xf32>
    %757 = arith.mulf %730, %730 : vector<8x128xf32>
    %cst_250 = arith.constant 0.000000e+00 : f32
    %758 = vector.broadcast %cst_250 : f32 to vector<8x128xf32>
    %759 = arith.subf %758, %757 : vector<8x128xf32>
    %760 = arith.mulf %728, %728 : vector<8x128xf32>
    %761 = arith.subf %759, %760 : vector<8x128xf32>
    %762 = arith.mulf %734, %761 : vector<8x128xf32>
    %cst_251 = arith.constant 1.000000e+00 : f32
    %763 = vector.broadcast %cst_251 : f32 to vector<8x128xf32>
    %764 = arith.addf %763, %762 : vector<8x128xf32>
    %cst_252 = arith.constant 0.000000e+00 : f32
    %765 = vector.broadcast %cst_252 : f32 to vector<8x128xf32>
    %766 = arith.subf %765, %731 : vector<8x128xf32>
    %767 = arith.mulf %766, %728 : vector<8x128xf32>
    %768 = arith.addf %767, %740 : vector<8x128xf32>
    %cst_253 = arith.constant 0.000000e+00 : f32
    %769 = vector.broadcast %cst_253 : f32 to vector<8x128xf32>
    %770 = arith.subf %769, %731 : vector<8x128xf32>
    %771 = arith.mulf %770, %729 : vector<8x128xf32>
    %772 = arith.addf %771, %738 : vector<8x128xf32>
    %773 = arith.mulf %731, %728 : vector<8x128xf32>
    %774 = arith.addf %773, %740 : vector<8x128xf32>
    %775 = arith.mulf %729, %729 : vector<8x128xf32>
    %cst_254 = arith.constant 0.000000e+00 : f32
    %776 = vector.broadcast %cst_254 : f32 to vector<8x128xf32>
    %777 = arith.subf %776, %775 : vector<8x128xf32>
    %778 = arith.mulf %728, %728 : vector<8x128xf32>
    %779 = arith.subf %777, %778 : vector<8x128xf32>
    %780 = arith.mulf %734, %779 : vector<8x128xf32>
    %cst_255 = arith.constant 1.000000e+00 : f32
    %781 = vector.broadcast %cst_255 : f32 to vector<8x128xf32>
    %782 = arith.addf %781, %780 : vector<8x128xf32>
    %783 = arith.mulf %595, %748 : vector<8x128xf32>
    %784 = arith.mulf %600, %756 : vector<8x128xf32>
    %785 = arith.addf %783, %784 : vector<8x128xf32>
    %786 = arith.mulf %605, %772 : vector<8x128xf32>
    %787 = arith.addf %785, %786 : vector<8x128xf32>
    %788 = arith.mulf %595, %752 : vector<8x128xf32>
    %789 = arith.mulf %600, %764 : vector<8x128xf32>
    %790 = arith.addf %788, %789 : vector<8x128xf32>
    %791 = arith.mulf %605, %774 : vector<8x128xf32>
    %792 = arith.addf %790, %791 : vector<8x128xf32>
    %793 = arith.mulf %595, %754 : vector<8x128xf32>
    %794 = arith.mulf %600, %768 : vector<8x128xf32>
    %795 = arith.addf %793, %794 : vector<8x128xf32>
    %796 = arith.mulf %605, %782 : vector<8x128xf32>
    %797 = arith.addf %795, %796 : vector<8x128xf32>
    %798 = arith.mulf %595, %711 : vector<8x128xf32>
    %799 = arith.mulf %600, %712 : vector<8x128xf32>
    %800 = arith.addf %798, %799 : vector<8x128xf32>
    %801 = arith.mulf %605, %713 : vector<8x128xf32>
    %802 = arith.addf %800, %801 : vector<8x128xf32>
    %803 = arith.addf %802, %611 : vector<8x128xf32>
    %804 = arith.mulf %616, %748 : vector<8x128xf32>
    %805 = arith.mulf %621, %756 : vector<8x128xf32>
    %806 = arith.addf %804, %805 : vector<8x128xf32>
    %807 = arith.mulf %626, %772 : vector<8x128xf32>
    %808 = arith.addf %806, %807 : vector<8x128xf32>
    %809 = arith.mulf %616, %752 : vector<8x128xf32>
    %810 = arith.mulf %621, %764 : vector<8x128xf32>
    %811 = arith.addf %809, %810 : vector<8x128xf32>
    %812 = arith.mulf %626, %774 : vector<8x128xf32>
    %813 = arith.addf %811, %812 : vector<8x128xf32>
    %814 = arith.mulf %616, %754 : vector<8x128xf32>
    %815 = arith.mulf %621, %768 : vector<8x128xf32>
    %816 = arith.addf %814, %815 : vector<8x128xf32>
    %817 = arith.mulf %626, %782 : vector<8x128xf32>
    %818 = arith.addf %816, %817 : vector<8x128xf32>
    %819 = arith.mulf %616, %711 : vector<8x128xf32>
    %820 = arith.mulf %621, %712 : vector<8x128xf32>
    %821 = arith.addf %819, %820 : vector<8x128xf32>
    %822 = arith.mulf %626, %713 : vector<8x128xf32>
    %823 = arith.addf %821, %822 : vector<8x128xf32>
    %824 = arith.addf %823, %632 : vector<8x128xf32>
    %825 = arith.mulf %637, %748 : vector<8x128xf32>
    %826 = arith.mulf %642, %756 : vector<8x128xf32>
    %827 = arith.addf %825, %826 : vector<8x128xf32>
    %828 = arith.mulf %647, %772 : vector<8x128xf32>
    %829 = arith.addf %827, %828 : vector<8x128xf32>
    %830 = arith.mulf %637, %752 : vector<8x128xf32>
    %831 = arith.mulf %642, %764 : vector<8x128xf32>
    %832 = arith.addf %830, %831 : vector<8x128xf32>
    %833 = arith.mulf %647, %774 : vector<8x128xf32>
    %834 = arith.addf %832, %833 : vector<8x128xf32>
    %835 = arith.mulf %637, %754 : vector<8x128xf32>
    %836 = arith.mulf %642, %768 : vector<8x128xf32>
    %837 = arith.addf %835, %836 : vector<8x128xf32>
    %838 = arith.mulf %647, %782 : vector<8x128xf32>
    %839 = arith.addf %837, %838 : vector<8x128xf32>
    %840 = arith.mulf %637, %711 : vector<8x128xf32>
    %841 = arith.mulf %642, %712 : vector<8x128xf32>
    %842 = arith.addf %840, %841 : vector<8x128xf32>
    %843 = arith.mulf %647, %713 : vector<8x128xf32>
    %844 = arith.addf %842, %843 : vector<8x128xf32>
    %845 = arith.addf %844, %653 : vector<8x128xf32>
    %c0_256 = arith.constant 0 : index
    %c32 = arith.constant 32 : index
    %c0_257 = arith.constant 0 : index
    %846 = vector.load %arg5[%c0_256, %c32, %c0_257] : memref<12x40x128xf32, #tpu.memory_space<vmem>>, vector<1x8x128xf32>
    %847 = vector.shape_cast %846 : vector<1x8x128xf32> to vector<8x128xf32>
    %848 = vector.shape_cast %787 : vector<8x128xf32> to vector<1x8x128xf32>
    tpu.vector_store %arg5[%c0_256, %c32, %c0_257], %848 {strides = array<i32>} : memref<12x40x128xf32, #tpu.memory_space<vmem>>, vector<1x8x128xf32>,
    %c1_258 = arith.constant 1 : index
    %c32_259 = arith.constant 32 : index
    %c0_260 = arith.constant 0 : index
    %849 = vector.load %arg5[%c1_258, %c32_259, %c0_260] : memref<12x40x128xf32, #tpu.memory_space<vmem>>, vector<1x8x128xf32>
    %850 = vector.shape_cast %849 : vector<1x8x128xf32> to vector<8x128xf32>
    %851 = vector.shape_cast %792 : vector<8x128xf32> to vector<1x8x128xf32>
    tpu.vector_store %arg5[%c1_258, %c32_259, %c0_260], %851 {strides = array<i32>} : memref<12x40x128xf32, #tpu.memory_space<vmem>>, vector<1x8x128xf32>,
    %c2_261 = arith.constant 2 : index
    %c32_262 = arith.constant 32 : index
    %c0_263 = arith.constant 0 : index
    %852 = vector.load %arg5[%c2_261, %c32_262, %c0_263] : memref<12x40x128xf32, #tpu.memory_space<vmem>>, vector<1x8x128xf32>
    %853 = vector.shape_cast %852 : vector<1x8x128xf32> to vector<8x128xf32>
    %854 = vector.shape_cast %797 : vector<8x128xf32> to vector<1x8x128xf32>
    tpu.vector_store %arg5[%c2_261, %c32_262, %c0_263], %854 {strides = array<i32>} : memref<12x40x128xf32, #tpu.memory_space<vmem>>, vector<1x8x128xf32>,
    %c3_264 = arith.constant 3 : index
    %c32_265 = arith.constant 32 : index
    %c0_266 = arith.constant 0 : index
    %855 = vector.load %arg5[%c3_264, %c32_265, %c0_266] : memref<12x40x128xf32, #tpu.memory_space<vmem>>, vector<1x8x128xf32>
    %856 = vector.shape_cast %855 : vector<1x8x128xf32> to vector<8x128xf32>
    %857 = vector.shape_cast %803 : vector<8x128xf32> to vector<1x8x128xf32>
    tpu.vector_store %arg5[%c3_264, %c32_265, %c0_266], %857 {strides = array<i32>} : memref<12x40x128xf32, #tpu.memory_space<vmem>>, vector<1x8x128xf32>,
    %c4_267 = arith.constant 4 : index
    %c32_268 = arith.constant 32 : index
    %c0_269 = arith.constant 0 : index
    %858 = vector.load %arg5[%c4_267, %c32_268, %c0_269] : memref<12x40x128xf32, #tpu.memory_space<vmem>>, vector<1x8x128xf32>
    %859 = vector.shape_cast %858 : vector<1x8x128xf32> to vector<8x128xf32>
    %860 = vector.shape_cast %808 : vector<8x128xf32> to vector<1x8x128xf32>
    tpu.vector_store %arg5[%c4_267, %c32_268, %c0_269], %860 {strides = array<i32>} : memref<12x40x128xf32, #tpu.memory_space<vmem>>, vector<1x8x128xf32>,
    %c5_270 = arith.constant 5 : index
    %c32_271 = arith.constant 32 : index
    %c0_272 = arith.constant 0 : index
    %861 = vector.load %arg5[%c5_270, %c32_271, %c0_272] : memref<12x40x128xf32, #tpu.memory_space<vmem>>, vector<1x8x128xf32>
    %862 = vector.shape_cast %861 : vector<1x8x128xf32> to vector<8x128xf32>
    %863 = vector.shape_cast %813 : vector<8x128xf32> to vector<1x8x128xf32>
    tpu.vector_store %arg5[%c5_270, %c32_271, %c0_272], %863 {strides = array<i32>} : memref<12x40x128xf32, #tpu.memory_space<vmem>>, vector<1x8x128xf32>,
    %c6_273 = arith.constant 6 : index
    %c32_274 = arith.constant 32 : index
    %c0_275 = arith.constant 0 : index
    %864 = vector.load %arg5[%c6_273, %c32_274, %c0_275] : memref<12x40x128xf32, #tpu.memory_space<vmem>>, vector<1x8x128xf32>
    %865 = vector.shape_cast %864 : vector<1x8x128xf32> to vector<8x128xf32>
    %866 = vector.shape_cast %818 : vector<8x128xf32> to vector<1x8x128xf32>
    tpu.vector_store %arg5[%c6_273, %c32_274, %c0_275], %866 {strides = array<i32>} : memref<12x40x128xf32, #tpu.memory_space<vmem>>, vector<1x8x128xf32>,
    %c7_276 = arith.constant 7 : index
    %c32_277 = arith.constant 32 : index
    %c0_278 = arith.constant 0 : index
    %867 = vector.load %arg5[%c7_276, %c32_277, %c0_278] : memref<12x40x128xf32, #tpu.memory_space<vmem>>, vector<1x8x128xf32>
    %868 = vector.shape_cast %867 : vector<1x8x128xf32> to vector<8x128xf32>
    %869 = vector.shape_cast %824 : vector<8x128xf32> to vector<1x8x128xf32>
    tpu.vector_store %arg5[%c7_276, %c32_277, %c0_278], %869 {strides = array<i32>} : memref<12x40x128xf32, #tpu.memory_space<vmem>>, vector<1x8x128xf32>,
    %c8_279 = arith.constant 8 : index
    %c32_280 = arith.constant 32 : index
    %c0_281 = arith.constant 0 : index
    %870 = vector.load %arg5[%c8_279, %c32_280, %c0_281] : memref<12x40x128xf32, #tpu.memory_space<vmem>>, vector<1x8x128xf32>
    %871 = vector.shape_cast %870 : vector<1x8x128xf32> to vector<8x128xf32>
    %872 = vector.shape_cast %829 : vector<8x128xf32> to vector<1x8x128xf32>
    tpu.vector_store %arg5[%c8_279, %c32_280, %c0_281], %872 {strides = array<i32>} : memref<12x40x128xf32, #tpu.memory_space<vmem>>, vector<1x8x128xf32>,
    %c9_282 = arith.constant 9 : index
    %c32_283 = arith.constant 32 : index
    %c0_284 = arith.constant 0 : index
    %873 = vector.load %arg5[%c9_282, %c32_283, %c0_284] : memref<12x40x128xf32, #tpu.memory_space<vmem>>, vector<1x8x128xf32>
    %874 = vector.shape_cast %873 : vector<1x8x128xf32> to vector<8x128xf32>
    %875 = vector.shape_cast %834 : vector<8x128xf32> to vector<1x8x128xf32>
    tpu.vector_store %arg5[%c9_282, %c32_283, %c0_284], %875 {strides = array<i32>} : memref<12x40x128xf32, #tpu.memory_space<vmem>>, vector<1x8x128xf32>,
    %c10_285 = arith.constant 10 : index
    %c32_286 = arith.constant 32 : index
    %c0_287 = arith.constant 0 : index
    %876 = vector.load %arg5[%c10_285, %c32_286, %c0_287] : memref<12x40x128xf32, #tpu.memory_space<vmem>>, vector<1x8x128xf32>
    %877 = vector.shape_cast %876 : vector<1x8x128xf32> to vector<8x128xf32>
    %878 = vector.shape_cast %839 : vector<8x128xf32> to vector<1x8x128xf32>
    tpu.vector_store %arg5[%c10_285, %c32_286, %c0_287], %878 {strides = array<i32>} : memref<12x40x128xf32, #tpu.memory_space<vmem>>, vector<1x8x128xf32>,
    %c11_288 = arith.constant 11 : index
    %c32_289 = arith.constant 32 : index
    %c0_290 = arith.constant 0 : index
    %879 = vector.load %arg5[%c11_288, %c32_289, %c0_290] : memref<12x40x128xf32, #tpu.memory_space<vmem>>, vector<1x8x128xf32>
    %880 = vector.shape_cast %879 : vector<1x8x128xf32> to vector<8x128xf32>
    %881 = vector.shape_cast %845 : vector<8x128xf32> to vector<1x8x128xf32>
    tpu.vector_store %arg5[%c11_288, %c32_289, %c0_290], %881 {strides = array<i32>} : memref<12x40x128xf32, #tpu.memory_space<vmem>>, vector<1x8x128xf32>,
    %c32_291 = arith.constant 32 : index
    %c0_292 = arith.constant 0 : index
    %882 = vector.load %arg3[%c32_291, %c0_292] : memref<40x128xf32, #tpu.memory_space<vmem>>, vector<8x128xf32>
    %883 = arith.mulf %792, %882 : vector<8x128xf32>
    %884 = arith.addf %883, %803 : vector<8x128xf32>
    %c0_293 = arith.constant 0 : index
    %c32_294 = arith.constant 32 : index
    %c0_295 = arith.constant 0 : index
    %885 = vector.load %arg4[%c0_293, %c32_294, %c0_295] : memref<3x40x128xf32, #tpu.memory_space<vmem>>, vector<1x8x128xf32>
    %886 = vector.shape_cast %885 : vector<1x8x128xf32> to vector<8x128xf32>
    %887 = vector.shape_cast %884 : vector<8x128xf32> to vector<1x8x128xf32>
    tpu.vector_store %arg4[%c0_293, %c32_294, %c0_295], %887 {strides = array<i32>} : memref<3x40x128xf32, #tpu.memory_space<vmem>>, vector<1x8x128xf32>,
    %888 = arith.mulf %813, %882 : vector<8x128xf32>
    %889 = arith.addf %888, %824 : vector<8x128xf32>
    %c1_296 = arith.constant 1 : index
    %c32_297 = arith.constant 32 : index
    %c0_298 = arith.constant 0 : index
    %890 = vector.load %arg4[%c1_296, %c32_297, %c0_298] : memref<3x40x128xf32, #tpu.memory_space<vmem>>, vector<1x8x128xf32>
    %891 = vector.shape_cast %890 : vector<1x8x128xf32> to vector<8x128xf32>
    %892 = vector.shape_cast %889 : vector<8x128xf32> to vector<1x8x128xf32>
    tpu.vector_store %arg4[%c1_296, %c32_297, %c0_298], %892 {strides = array<i32>} : memref<3x40x128xf32, #tpu.memory_space<vmem>>, vector<1x8x128xf32>,
    %893 = arith.mulf %834, %882 : vector<8x128xf32>
    %894 = arith.addf %893, %845 : vector<8x128xf32>
    %c2_299 = arith.constant 2 : index
    %c32_300 = arith.constant 32 : index
    %c0_301 = arith.constant 0 : index
    %895 = vector.load %arg4[%c2_299, %c32_300, %c0_301] : memref<3x40x128xf32, #tpu.memory_space<vmem>>, vector<1x8x128xf32>
    %896 = vector.shape_cast %895 : vector<1x8x128xf32> to vector<8x128xf32>
    %897 = vector.shape_cast %894 : vector<8x128xf32> to vector<1x8x128xf32>
    tpu.vector_store %arg4[%c2_299, %c32_300, %c0_301], %897 {strides = array<i32>} : memref<3x40x128xf32, #tpu.memory_space<vmem>>, vector<1x8x128xf32>,
    return
  }
  func.func @transform_0(%arg0: i32) -> (i32, i32) {
    %c0_i32 = arith.constant 0 : i32
    %c0_i32_0 = arith.constant 0 : i32
    return %c0_i32, %arg0 : i32, i32
  }
  func.func @transform_1(%arg0: i32) -> (i32, i32) {
    %c0_i32 = arith.constant 0 : i32
    %c0_i32_0 = arith.constant 0 : i32
    %c0_i32_1 = arith.constant 0 : i32
    return %c0_i32, %c0_i32_0 : i32, i32
  }
  func.func @transform_2(%arg0: i32) -> (i32, i32) {
    %c0_i32 = arith.constant 0 : i32
    %c0_i32_0 = arith.constant 0 : i32
    %c0_i32_1 = arith.constant 0 : i32
    return %c0_i32, %c0_i32_0 : i32, i32
  }
  func.func @transform_3(%arg0: i32) -> (i32, i32, i32) {
    %c0_i32 = arith.constant 0 : i32
    %c0_i32_0 = arith.constant 0 : i32
    %c0_i32_1 = arith.constant 0 : i32
    return %c0_i32, %c0_i32_0, %arg0 : i32, i32, i32
  }
  func.func @transform_4(%arg0: i32) -> (i32, i32, i32) {
    %c0_i32 = arith.constant 0 : i32
    %c0_i32_0 = arith.constant 0 : i32
    %c0_i32_1 = arith.constant 0 : i32
    return %c0_i32, %c0_i32_0, %arg0 : i32, i32, i32
  }
}

</mosaic_0001>

<bundles_post_ra>
// kernel: hand_skeleton_forward.1
= control target key start
LH: loop header
LB: loop body
LE: loop exit
PB: predicated region body
PF: predicated region fallthrough
CT: control target
= control target key end

     0   :  { %10 = vsyncpa [#allocation4], 0  ;;  %s7160_s15 = smov 0   ;;  %s7162_s16 = smov 0   ;;  %s9594_s0 = inlined_call_operand.vmem [shape: f32[32,256], index: 0, kind: input, shape index: {}]   ;;  %s9595_s1 = inlined_call_operand.vmem [shape: f32[240,32], index: 1, kind: input, shape index: {}]   ;;  %s9596_s2 = inlined_call_operand.hbm [shape: f32[40,128], index: 2, kind: input, shape index: {}]   ;;  %s9597_s3 = inlined_call_operand.vmem [shape: f32[3,40,256], index: 3, kind: output, shape index: {0}]   ;;  %s9598_s4 = inlined_call_operand.vmem [shape: f32[12,40,256], index: 4, kind: output, shape index: {1}]  }
   0x1   :  { %s7164_s17 = smov 0  }
   0x2 LB: > { %s7176_s18 = sadd.s32 4294967295, %s7124_s17   ;;  %s7179_s19 = sadd.s32 1, %s7124_s17   ;;  %s7124_s17 = sphi %s7164_s17, %s9753_s17   ;;  %s7120_s16 = sphi %s7162_s16, %s9752_s16   ;;  %s7116_s15 = sphi %s7160_s15, %s9751_s15  }
   0x3   : > { %s20_s20 = ssub.s32 %s7124_s17, %s7179_s19  ;;  %s23_s21 = sadd.s32 1, %s7120_s16 }
   0x4   : > { %p21_p0 = scmp.eq.s32.totalorder %s20_s20, 0  ;;  %p30_p1 = scmp.ne.s32.totalorder %s7120_s16, %s7116_s15 }
   0x5   : > { %p31_p2 = scmp.eq.s32.totalorder %s7124_s17, 0  ;;  %p102_p3 = scmp.eq.s32.totalorder %s7176_s18, 1 }
   0x6   : > { %s7189_s22 = scalar_select %p21_p0, %s7120_s16, %s23_s21  }
   0x7   : > { %p7191_p4 = por %p31_p2, %p30_p1  ;;  %p7195_p5 = por %p102_p3, %p30_p1 }
   0x8   : > { %p6040_p6 = scmp.ge.s32.totalorder %s7124_s17, 1  ;;  %p141_p7 = scmp.lt.s32.totalorder %s7124_s17, 3 }
   0x9   : > { %s9643_s24 = scalar_select %p7195_p5, 1, 0 }
   0xa   : > { %p6997_p8 = scmp.eq.s32.totalorder %s7176_s18, 0  ;;  %p7202_p9 = pnand %p6040_p6, %p141_p7 }
   0xb   : > { %s7126_s26 = smov [#allocation3]  }
   0xc   : > { %s156_s27 = sshll.u32 %s7126_s26, 4  ;;  %p6993_p10 = pneg %p7202_p9  ;;  %s157_s27 = int_to_ptr.vmem [resolvable:$true] %s156_s27 }
   0xd   : > { %s7083_s28 = scalar_lea.vmem %s157_s27, 640  ;;  %p7091_p2 = scmp.lt.s32.totalorder %s157_s27, %s157_s27 }
   0xe   : > { %p6994_p11 = pnand %p6997_p8, %p6993_p10  ;;  %p7084_p13 = scmp.ne.s32.totalorder %s157_s27, %s7083_s28 }
   0xf   : > { %p7092_p3 = scmp.lt.s32.totalorder %s7083_s28, %s7083_s28 }
  0x10   : > { %p7074_p12 = pneg %p6994_p11 }
  0x11   : > { %p7093_p5 = por %p7092_p3, %p7091_p2 }
  0x12   : > { %p7086_p0 = pnand %p7084_p13, %p7074_p12 }
  0x14   : > { %p7087_p1 = pneg %p7086_p0 }
  0x16   : > { %p7094_p6 = pnand %p7093_p5, %p7087_p1 }
  0x18   : > { %7097 = shalt.err (!%p7094_p6)
}
  0x19   : > { %s7127_s29 = smov 128   ;;  %s7128_s30 = smov 8  }
  0x1a   : > { %6996 = dma.hbm_to_vmem [thread:$0]  (!%p6994_p11), %s9596_s2, 640, %s157_s27, [#allocation4], %s7127_s29, %s7127_s29, %s7128_s30  }
  0x1b   : > { %p6042_p7 = scmp.ge.s32.totalorder %s7124_s17, 2 }
  0x1d   : > { %166 = sbr.rel (%p6042_p7) target bundleno = 40 (0x28), region = 24 }
  0x22   : > { %169 = sbr.rel (!%p7191_p4) target bundleno = 40 (0x28), region = 28  ;;  %s171_s7 = sand.u32 (%p7191_p4), 1, %s7120_s16  }
  0x23   : > { %s6044_s8 = sshll.u32 (%p7191_p4), %s7124_s17, 3  ;;  %s6043_s9 = sshll.u32 (%p7191_p4), %s171_s7, 5 }
  0x24   : > { %s175_s12 = scalar_lea.vmem (%p7191_p4), %s9594_s0, %s6044_s8  ;;  %s173_s13 = scalar_lea.vmem (%p7191_p4), [#allocation2], %s6043_s9 }
  0x25   : > { %v210_v0 = vld [vmem:[%s175_s12] sm:$0xff] (%p7191_p4)  ;;  %v212_v1 = vld [vmem:[%s175_s12 + $0x10] sm:$0xff] (%p7191_p4) }
  0x26   : > { %v214_v2 = vld [vmem:[%s175_s12 + $0x20] sm:$0xff] (%p7191_p4)  ;;  %211 = vst [vmem:[%s173_s13] sm:$0xff] (%p7191_p4), %v210_v0  ;;  %213 = vst [vmem:[%s173_s13 + $0x8] sm:$0xff] (%p7191_p4), %v212_v1  ;;  %v216_v3 = vld [vmem:[%s175_s12 + $0x30] sm:$0xff] (%p7191_p4) }
  0x27   : > { %215 = vst [vmem:[%s173_s13 + $0x10] sm:$0xff] %v214_v2  ;;  %217 = vst [vmem:[%s173_s13 + $0x18] sm:$0xff] %v216_v3 }
  0x28 PF: > { %226 = sbr.rel (%p7202_p9) target bundleno = 718 (0x2ce), region = 66 }
  0x2d   : > { %s7224_s14 = sand.u32 1, %s7116_s15  }
  0x2e   : > { %s6046_s17 = sshll.u32 %s7224_s14, 5 }
  0x2f   : > { %s231_s20 = scalar_lea.vmem [#allocation2], %s6046_s17 }
  0x30   : > { %7111 = dma.done.wait (%p6997_p8), [#allocation4], 640  }
  0x31   : > { %7113 = vsyncadd (%p6997_p8), [#allocation4], 4294966656  ;;  %vm271_vm0 = vcmask 261120   ;;  %v264_v4 = vld [vmem:[%s231_s20 + $0x18] sm:$0xff]  ;;  %v263_v5 = vld [vmem:[%s231_s20 + $0x10] sm:$0xff]  ;;  %s6968_s15 = smul.u32 480, %s7224_s14 }
  0x32   : > { %v262_v6 = vld [vmem:[%s231_s20 + $0x8] sm:$0xff]  ;;  %v7231_v7 = vand.u32 4294901760, %v264_v4  ;;  %v7233_v8 = vand.u32 4294901760, %v263_v5  ;;  %v261_v10 = vld [vmem:[%s231_s20] sm:$0xff]  ;;  %v267_v16 = vld [vmem:[%s9595_s1 + $0x10] sm:$0xff]  ;;  %s6967_s23 = smul.u32 120, %s7224_s14 }
  0x33   : > { %v7235_v9 = vand.u32 4294901760, %v262_v6  ;;  %v265_v11 = vld [vmem:[%s9595_s1] sm:$0xff]  ;;  %v266_v12 = vld [vmem:[%s9595_s1 + $0x8] sm:$0xff]  ;;  %v7243_v13 = vand.u32 4294901760, %v261_v10  ;;  %v268_v17 = vld [vmem:[%s9595_s1 + $0x18] sm:$0xff]  ;;  %v279_v23 = vsel %vm271_vm0, %v267_v16, 0 }
  0x34   : > { %v273_v14 = vsel %vm271_vm0, %v265_v11, 0  ;;  %v276_v15 = vsel %vm271_vm0, %v266_v12, 0  ;;  %6457 = vmatprep.subr.mxu0 %v7231_v7  ;;  %v7255_v18 = vsub.f32 %v264_v4, %v7231_v7  ;;  %v7262_v21 = vsub.f32 %v263_v5, %v7233_v8  ;;  %v269_v42 = vld [vmem:[%s9595_s1 + $0x20] sm:$0xff]  ;;  %v270_v43 = vld [vmem:[%s9595_s1 + $0x28] sm:$0xff]  ;;  %s8098_s21 = scalar_lea.vmem [#allocation6], %s6968_s15  ;;  %s8517_s25 = scalar_lea.vmem [#allocation5], %s6967_s23 }
  0x35   : > { %v7257_v19 = vand.u32 4294901760, %v273_v14  ;;  %v7259_v20 = vand.u32 4294901760, %v276_v15  ;;  %6458 = vmatpush3.msra.mxu0 %v7231_v7  ;;  %v7266_v22 = vsub.f32 %v262_v6, %v7235_v9  ;;  %v282_v24 = vsel %vm271_vm0, %v268_v17, 0  ;;  %v1286_v6 = vld [vmem:[%s9595_s1 + $0x30] sm:$0xff]  ;;  %v1288_v11 = vld [vmem:[%s9595_s1 + $0x40] sm:$0xff]  ;;  %v1289_v16 = vld [vmem:[%s9595_s1 + $0x48] sm:$0xff] }
  0x36   : > { %v7271_v25 = vsub.f32 %v261_v10, %v7243_v13  ;;  %6459 = vmatprep.subr.mxu0 %v7233_v8  ;;  %v7275_v26 = vand.u32 4294901760, %v7255_v18  ;;  %v7284_v29 = vand.u32 4294901760, %v7262_v21  ;;  %v7291_v31 = vand.u32 4294901760, %v279_v23  ;;  %v1287_v10 = vld [vmem:[%s9595_s1 + $0x38] sm:$0xff]  ;;  %p9749_p4 = scmp.ne.s32.totalorder %s9643_s24, 0 }
  0x37   : > { %v7278_v27 = vsub.f32 %v273_v14, %v7257_v19  ;;  %v7281_v28 = vsub.f32 %v276_v15, %v7259_v20  ;;  %6482 = vmatprep.mubr.f32.mxu1 %v7257_v19  ;;  %6460 = vmatpush3.msra.mxu0 %v7233_v8  ;;  %v7289_v30 = vand.u32 4294901760, %v7266_v22  ;;  %v7293_v32 = vand.u32 4294901760, %v282_v24  ;;  %s6153_s14 = sshll.u32 (%p9749_p4), %s7176_s18, 3 }
  0x38   : > { %v7296_v33 = vand.u32 4294901760, %v7271_v25  ;;  %6461 = vmatprep.subr.mxu0 %v7235_v9  ;;  %v447_v34 = vsub.f32 %v7255_v18, %v7275_v26  ;;  %v454_v37 = vsub.f32 %v7262_v21, %v7284_v29  ;;  %v7309_v39 = vsub.f32 %v279_v23, %v7291_v31  ;;  %s5578_s28 = scalar_lea.vmem (%p9749_p4), %s9597_s3, %s6153_s14 }
  0x39   : > { %v361_v35 = vand.u32 4294901760, %v7278_v27  ;;  %v371_v36 = vand.u32 4294901760, %v7281_v28  ;;  %6462 = vmatpush3.msra.mxu0 %v7235_v9  ;;  %v461_v38 = vsub.f32 %v7266_v22, %v7289_v30  ;;  %v7312_v40 = vsub.f32 %v282_v24, %v7293_v32 }
  0x3a   : > { %v468_v41 = vsub.f32 %v7271_v25, %v7296_v33  ;;  %6463 = vmatprep.subr.mxu0 %v7243_v13  ;;  %v7323_v44 = vand.u32 4294901760, %v447_v34  ;;  %v7331_v47 = vand.u32 4294901760, %v454_v37  ;;  %v381_v49 = vand.u32 4294901760, %v7309_v39  ;;  %v1291_v34 = vld [vmem:[%s9595_s1 + $0x58] sm:$0xff] }
  0x3b   : > { %v362_v45 = vsub.f32 %v7278_v27, %v361_v35  ;;  %v372_v46 = vsub.f32 %v7281_v28, %v371_v36  ;;  %6464 = vmatpush3.msra.mxu0 %v7243_v13  ;;  %v7334_v48 = vand.u32 4294901760, %v461_v38  ;;  %v391_v50 = vand.u32 4294901760, %v7312_v40 }
  0x3c   : > { %6474 = vmatprep.subr.mxu1 %v7323_v44  ;;  %6491 = vmatprep.subr.mxu0 %v7255_v18  ;;  %v285_v53 = vsel %vm271_vm0, %v269_v42, 0  ;;  %v288_v54 = vsel %vm271_vm0, %v270_v43, 0  ;;  %v382_v55 = vsub.f32 %v7309_v39, %v381_v49  ;;  %v7354_v59 = vand.u32 4294901760, %v468_v41 }
  0x3d   : > { %v363_v51 = vand.u32 4294901760, %v362_v45  ;;  %v373_v52 = vand.u32 4294901760, %v372_v46  ;;  %6475 = vmatpush3.msra.mxu1 %v7323_v44  ;;  %v392_v56 = vsub.f32 %v7312_v40, %v391_v50  ;;  %v7349_v57 = vand.u32 4294901760, %v285_v53 }
  0x3e   : > { %v7351_v58 = vand.u32 4294901760, %v288_v54  ;;  %6476 = vmatprep.subr.mxu1 %v7331_v47  ;;  %v383_v60 = vand.u32 4294901760, %v382_v55  ;;  %v1293_v12 = vsel %vm271_vm0, %v1286_v6, 0  ;;  %v1296_v14 = vsel %vm271_vm0, %v1287_v10, 0  ;;  %v2359_v6 = vld [vmem:[%s9595_s1 + $0x78] sm:$0xff] }
  0x3f   : > { %6465 = vmatprep.mubr.f32.mxu0 %v363_v51  ;;  %6477 = vmatpush3.msra.mxu1 %v7331_v47  ;;  %v393_v61 = vand.u32 4294901760, %v392_v56  ;;  %v7358_v62 = vsub.f32 %v285_v53, %v7349_v57  ;;  %v1299_v15 = vsel %vm271_vm0, %v1288_v11, 0  ;;  %v7424_v17 = vand.u32 4294901760, %v1293_v12 }
  0x40   : > { %6466 = vmatmul.mubr.f32.vlgmr.msra.gmra.mxu0 %v373_v52  ;;  %v7361_v63 = vsub.f32 %v288_v54, %v7351_v58  ;;  %6478 = vmatprep.subr.mxu1 %v7334_v48  ;;  %v7428_v23 = vand.u32 4294901760, %v1296_v14  ;;  %v7433_v24 = vand.u32 4294901760, %v1299_v15 }
  0x41   : > { %6492 = vmatpush3.msra.mxu0 %v7255_v18  ;;  %6468 = vmatprep.mubr.f32.mxu0 %v383_v60  ;;  %v401_v0 = vand.u32 4294901760, %v7358_v62 }
  0x42   : > { %6479 = vmatpush3.msra.mxu1 %v7334_v48  ;;  %v411_v1 = vand.u32 4294901760, %v7361_v63  ;;  %6493 = vmatprep.subr.mxu0 %v7262_v21 }
  0x43   : > { %6480 = vmatprep.subr.mxu1 %v7354_v59  ;;  %v402_v2 = vsub.f32 %v7358_v62, %v401_v0  ;;  %6494 = vmatpush3.msra.mxu0 %v7262_v21 }
  0x44   : > { %6469 = vmatmul.mubr.f32.gmra.mxu0 %v393_v61  ;;  %6481 = vmatpush3.msra.mxu1 %v7354_v59  ;;  %v412_v3 = vsub.f32 %v7361_v63, %v411_v1 }
  0x45   : > { %6483 = vmatmul.mubr.f32.vlgmr.msra.gmra.mxu1 %v7259_v20  ;;  %6508 = vmatprep.subr.mxu1 %v7231_v7  ;;  %v403_v4 = vand.u32 4294901760, %v402_v2  ;;  %v2358_v2 = vld [vmem:[%s9595_s1 + $0x70] sm:$0xff] }
  0x46   : > { %6509 = vmatpush3.msra.mxu1 %v7231_v7  ;;  %v413_v5 = vand.u32 4294901760, %v412_v3  ;;  %6495 = vmatprep.subr.mxu0 %v7266_v22 }
  0x47   : > { %6485 = vmatprep.mubr.f32.mxu1 %v7291_v31  ;;  %6471 = vmatprep.mubr.f32.mxu0 %v403_v4 }
  0x48   : > { %6496 = vmatpush3.msra.mxu0 %v7266_v22  ;;  %6510 = vmatprep.subr.mxu1 %v7233_v8 }
  0x49   : > { %6472 = vmatmul.mubr.f32.gmra.mxu0 %v413_v5  ;;  %6486 = vmatmul.mubr.f32.gmra.mxu1 %v7293_v32  ;;  %v2369_v5 = vsel %vm271_vm0, %v2358_v2, 0 }
  0x4a   : > { %6497 = vmatprep.subr.mxu0 %v7271_v25  ;;  %6511 = vmatpush3.msra.mxu1 %v7233_v8 }
  0x4b   : > { %6498 = vmatpush3.msra.mxu0 %v7271_v25  ;;  %6499 = vmatprep.mubr.f32.mxu0 %v7278_v27  ;;  %v1302_v27 = vsel %vm271_vm0, %v1289_v16, 0  ;;  %v2361_v16 = vld [vmem:[%s9595_s1 + $0x88] sm:$0xff] }
  0x4c   : > { %6512 = vmatprep.subr.mxu1 %v7235_v9  ;;  %6488 = vmatprep.mubr.f32.mxu1 %v7349_v57  ;;  %v7455_v37 = vand.u32 4294901760, %v1302_v27 }
  0x4d   : > { %6500 = vmatmul.mubr.f32.vlgmr.msra.gmra.mxu0 %v7281_v28  ;;  %6513 = vmatpush3.msra.mxu1 %v7235_v9  ;;  %v1290_v28 = vld [vmem:[%s9595_s1 + $0x50] sm:$0xff] }
  0x4e   : > { %6502 = vmatprep.mubr.f32.mxu0 %v7309_v39  ;;  %6489 = vmatmul.mubr.f32.gmra.mxu1 %v7351_v58  ;;  %v1305_v38 = vsel %vm271_vm0, %v1290_v28, 0  ;;  %v7461_v39 = vsub.f32 %v1299_v15, %v7433_v24  ;;  %v7477_v45 = vsub.f32 %v1302_v27, %v7455_v37  ;;  %v2360_v15 = vld [vmem:[%s9595_s1 + $0x80] sm:$0xff] }
  0x4f   : > { %6514 = vmatprep.subr.mxu1 %v7243_v13  ;;  %6525 = vmatprep.subr.mxu0 %v7275_v26  ;;  %v7470_v42 = vand.u32 4294901760, %v1305_v38 }
  0x50   : > { %6515 = vmatpush3.msra.mxu1 %v7243_v13  ;;  %6516 = vmatprep.mubr.f32.mxu1 %v361_v35  ;;  %v7448_v35 = vsub.f32 %v1293_v12, %v7424_v17  ;;  %v7595_v12 = vand.u32 4294901760, %v2369_v5 }
  0x51   : > { %6503 = vmatmul.mubr.f32.gmra.mxu0 %v7312_v40  ;;  %6542 = vmatprep.subr.mxu1 %v7231_v7  ;;  %v1308_v40 = vsel %vm271_vm0, %v1291_v34, 0  ;;  %v7492_v51 = vsub.f32 %v1305_v38, %v7470_v42  ;;  %v2378_v38 = vsel %vm271_vm0, %v2361_v16, 0 }
  0x52   : > { %6526 = vmatpush3.msra.mxu0 %v7275_v26  ;;  %6517 = vmatmul.mubr.f32.vlgmr.msra.gmra.mxu1 %v371_v36  ;;  %v7453_v36 = vsub.f32 %v1296_v14, %v7428_v23  ;;  %v1381_v41 = vand.u32 4294901760, %v7448_v35  ;;  %v7479_v46 = vand.u32 4294901760, %v1308_v40  ;;  %v2372_v14 = vsel %vm271_vm0, %v2359_v6, 0  ;;  %v3431_v6 = vld [vmem:[%s9595_s1 + $0xb8] sm:$0xff] }
  0x53   : > { %6527 = vmatprep.subr.mxu0 %v7284_v29  ;;  %6505 = vmatprep.mubr.f32.mxu0 %v7358_v62  ;;  %v1421_v55 = vand.u32 4294901760, %v7492_v51  ;;  %v7617_v34 = vand.u32 4294901760, %v2372_v14 }
  0x54   : > { %6528 = vmatpush3.msra.mxu0 %v7284_v29  ;;  %6543 = vmatpush3.msra.mxu1 %v7231_v7  ;;  %v1391_v43 = vand.u32 4294901760, %v7453_v36  ;;  %v7501_v53 = vsub.f32 %v1308_v40, %v7479_v46 }
  0x55   : > { %6506 = vmatmul.mubr.f32.gmra.mxu0 %v7361_v63  ;;  %6529 = vmatprep.subr.mxu0 %v7289_v30 }
  0x56   : > { %6519 = vmatprep.mubr.f32.mxu1 %v381_v49  ;;  %6530 = vmatpush3.msra.mxu0 %v7289_v30  ;;  %v1401_v49 = vand.u32 4294901760, %v7461_v39  ;;  %v1392_v52 = vsub.f32 %v7453_v36, %v1391_v43  ;;  %v1431_v61 = vand.u32 4294901760, %v7501_v53 }
  0x57   : > { %6544 = vmatprep.subr.mxu1 %v7233_v8  ;;  %6520 = vmatmul.mubr.f32.gmra.mxu1 %v391_v50  ;;  %v1382_v50 = vsub.f32 %v7448_v35, %v1381_v41 }
  0x58   : > { %6531 = vmatprep.subr.mxu0 %v7296_v33  ;;  %6545 = vmatpush3.msra.mxu1 %v7233_v8  ;;  %v1402_v54 = vsub.f32 %v7461_v39, %v1401_v49  ;;  %v1393_v56 = vand.u32 4294901760, %v1392_v52 }
  0x59   : > { %6532 = vmatpush3.msra.mxu0 %v7296_v33  ;;  %6533 = vmatprep.mubr.f32.mxu0 %v7257_v19 }
  0x5a   : > { %6546 = vmatprep.subr.mxu1 %v7235_v9  ;;  %6534 = vmatmul.mubr.f32.vlgmr.msra.gmra.mxu0 %v7259_v20  ;;  %v1403_v62 = vand.u32 4294901760, %v1402_v54 }
  0x5b   : > { %6522 = vmatprep.mubr.f32.mxu1 %v401_v0  ;;  %6547 = vmatpush3.msra.mxu1 %v7235_v9 }
  0x5c   : > { %6536 = vmatprep.mubr.f32.mxu0 %v7291_v31  ;;  %6523 = vmatmul.mubr.f32.gmra.mxu1 %v411_v1  ;;  %v2357_v1 = vld [vmem:[%s9595_s1 + $0x68] sm:$0xff] }
  0x5d   : > { %6548 = vmatprep.subr.mxu1 %v7243_v13  ;;  %6559 = vmatprep.subr.mxu0 %v7231_v7  ;;  %v2366_v4 = vsel %vm271_vm0, %v2357_v1, 0 }
  0x5e   : > { %6549 = vmatpush3.msra.mxu1 %v7243_v13  ;;  %6537 = vmatmul.mubr.f32.gmra.mxu0 %v7293_v32  ;;  %v7590_v11 = vand.u32 4294901760, %v2366_v4 }
  0x5f   : > { %6550 = vmatprep.mubr.f32.mxu1 %v7257_v19  ;;  %6560 = vmatpush3.msra.mxu0 %v7231_v7  ;;  %v1411_v19 = vand.u32 4294901760, %v7477_v45 }
  0x60   : > { %6576 = vmatprep.subr.mxu1 %v7323_v44  ;;  %6551 = vmatmul.mubr.f32.vlgmr.msra.gmra.mxu1 %v7259_v20  ;;  %v1383_v20 = vand.u32 4294901760, %v1382_v50  ;;  %v7615_v28 = vsub.f32 %v2366_v4, %v7590_v11 }
  0x61   : > { %6561 = vmatprep.subr.mxu0 %v7233_v8  ;;  %6539 = vmatprep.mubr.f32.mxu0 %v7349_v57  ;;  %v1412_v60 = vsub.f32 %v7477_v45, %v1411_v19 }
  0x62   : > { %6562 = vmatpush3.msra.mxu0 %v7233_v8  ;;  %6577 = vmatpush3.msra.mxu1 %v7323_v44 }
  0x63   : > { %6540 = vmatmul.mubr.f32.gmra.mxu0 %v7351_v58  ;;  %6563 = vmatprep.subr.mxu0 %v7235_v9  ;;  %v1413_v63 = vand.u32 4294901760, %v1412_v60 }
  0x64   : > { %6553 = vmatprep.mubr.f32.mxu1 %v7291_v31  ;;  %6564 = vmatpush3.msra.mxu0 %v7235_v9  ;;  %v1422_v31 = vsub.f32 %v7492_v51, %v1421_v55 }
  0x65   : > { %6578 = vmatprep.subr.mxu1 %v7331_v47  ;;  %6554 = vmatmul.mubr.f32.gmra.mxu1 %v7293_v32  ;;  %v1432_v32 = vsub.f32 %v7501_v53, %v1431_v61 }
  0x66   : > { %6565 = vmatprep.subr.mxu0 %v7243_v13  ;;  %6579 = vmatpush3.msra.mxu1 %v7331_v47  ;;  %v1423_v0 = vand.u32 4294901760, %v1422_v31  ;;  %v3427_v31 = vld [vmem:[%s9595_s1 + $0x98] sm:$0xff] }
  0x67   : > { %6566 = vmatpush3.msra.mxu0 %v7243_v13  ;;  %6567 = vmatprep.mubr.f32.mxu0 %v1383_v20 }
  0x68   : > { %6580 = vmatprep.subr.mxu1 %v7334_v48  ;;  %6568 = vmatmul.mubr.f32.vlgmr.msra.gmra.mxu0 %v1393_v56 }
  0x69   : > { %6556 = vmatprep.mubr.f32.mxu1 %v7349_v57  ;;  %6581 = vmatpush3.msra.mxu1 %v7334_v48  ;;  %v1433_v57 = vand.u32 4294901760, %v1432_v32 }
  0x6a   : > { %6570 = vmatprep.mubr.f32.mxu0 %v1403_v62  ;;  %6557 = vmatmul.mubr.f32.gmra.mxu1 %v7351_v58  ;;  %v2356_v58 = vld [vmem:[%s9595_s1 + $0x60] sm:$0xff] }
  0x6b   : > { %6582 = vmatprep.subr.mxu1 %v7354_v59  ;;  %6593 = vmatprep.subr.mxu0 %v7255_v18  ;;  %v2363_v3 = vsel %vm271_vm0, %v2356_v58, 0  ;;  %v3429_v58 = vld [vmem:[%s9595_s1 + $0xa8] sm:$0xff] }
  0x6c   : > { %6583 = vmatpush3.msra.mxu1 %v7354_v59  ;;  %6571 = vmatmul.mubr.f32.gmra.mxu0 %v1413_v63  ;;  %v7586_v10 = vand.u32 4294901760, %v2363_v3  ;;  %v3428_v63 = vld [vmem:[%s9595_s1 + $0xa0] sm:$0xff]  ;;  %v3442_v4 = vsel %vm271_vm0, %v3429_v58, 0  ;;  %v4501_v58 = vld [vmem:[%s9595_s1 + $0xe8] sm:$0xff] }
  0x6d   : > { %6584 = vmatprep.mubr.f32.mxu1 %v7424_v17  ;;  %6594 = vmatpush3.msra.mxu0 %v7255_v18  ;;  %v7779_v16 = vand.u32 4294901760, %v3442_v4 }
  0x6e   : > { %6610 = vmatprep.subr.mxu1 %v7231_v7  ;;  %6585 = vmatmul.mubr.f32.vlgmr.msra.gmra.mxu1 %v7428_v23  ;;  %v7610_v27 = vsub.f32 %v2363_v3, %v7586_v10 }
  0x6f   : > { %6595 = vmatprep.subr.mxu0 %v7262_v21  ;;  %6573 = vmatprep.mubr.f32.mxu0 %v1423_v0  ;;  %v3436_v0 = vsel %vm271_vm0, %v3427_v31, 0 }
  0x70   : > { %6596 = vmatpush3.msra.mxu0 %v7262_v21  ;;  %6611 = vmatpush3.msra.mxu1 %v7231_v7  ;;  %v7752_v2 = vand.u32 4294901760, %v3436_v0 }
  0x71   : > { %6574 = vmatmul.mubr.f32.gmra.mxu0 %v1433_v57  ;;  %6597 = vmatprep.subr.mxu0 %v7266_v22  ;;  %v3439_v57 = vsel %vm271_vm0, %v3428_v63, 0 }
  0x72   : > { %6587 = vmatprep.mubr.f32.mxu1 %v7433_v24  ;;  %6598 = vmatpush3.msra.mxu0 %v7266_v22  ;;  %v7757_v3 = vand.u32 4294901760, %v3439_v57 }
  0x73   : > { %6612 = vmatprep.subr.mxu1 %v7233_v8  ;;  %6588 = vmatmul.mubr.f32.gmra.mxu1 %v7455_v37 }
  0x74   : > { %6599 = vmatprep.subr.mxu0 %v7271_v25  ;;  %6613 = vmatpush3.msra.mxu1 %v7233_v8 }
  0x75   : > { %6600 = vmatpush3.msra.mxu0 %v7271_v25  ;;  %6601 = vmatprep.mubr.f32.mxu0 %v7448_v35  ;;  %v2375_v35 = vsel %vm271_vm0, %v2360_v15, 0  ;;  %v7777_v15 = vsub.f32 %v3436_v0, %v7752_v2 }
  0x76   : > { %6614 = vmatprep.subr.mxu1 %v7235_v9  ;;  %6602 = vmatmul.mubr.f32.vlgmr.msra.gmra.mxu0 %v7453_v36  ;;  %v7623_v36 = vsub.f32 %v2369_v5, %v7595_v12  ;;  %v7632_v40 = vand.u32 4294901760, %v2375_v35  ;;  %v3430_v5 = vld [vmem:[%s9595_s1 + $0xb0] sm:$0xff] }
  0x77   : > { %6590 = vmatprep.mubr.f32.mxu1 %v7470_v42  ;;  %6615 = vmatpush3.msra.mxu1 %v7235_v9 }
  0x78   : > { %6604 = vmatprep.mubr.f32.mxu0 %v7461_v39  ;;  %6591 = vmatmul.mubr.f32.gmra.mxu1 %v7479_v46  ;;  %v2451_v39 = vand.u32 4294901760, %v7610_v27 }
  0x79   : > { %6616 = vmatprep.subr.mxu1 %v7243_v13  ;;  %6627 = vmatprep.subr.mxu0 %v7275_v26 }
  0x7a   : > { %6617 = vmatpush3.msra.mxu1 %v7243_v13  ;;  %6605 = vmatmul.mubr.f32.gmra.mxu0 %v7477_v45  ;;  %v7641_v45 = vand.u32 4294901760, %v2378_v38  ;;  %v2452_v50 = vsub.f32 %v7610_v27, %v2451_v39 }
  0x7b   : > { %6618 = vmatprep.mubr.f32.mxu1 %v1381_v41  ;;  %6628 = vmatpush3.msra.mxu0 %v7275_v26  ;;  %v2461_v41 = vand.u32 4294901760, %v7615_v28 }
  0x7c   : > { %6644 = vmatprep.subr.mxu1 %v7231_v7  ;;  %6619 = vmatmul.mubr.f32.vlgmr.msra.gmra.mxu1 %v1391_v43  ;;  %v7639_v43 = vsub.f32 %v2372_v14, %v7617_v34 }
  0x7d   : > { %6629 = vmatprep.subr.mxu0 %v7284_v29  ;;  %6607 = vmatprep.mubr.f32.mxu0 %v7492_v51  ;;  %v7654_v51 = vsub.f32 %v2375_v35, %v7632_v40  ;;  %v2462_v52 = vsub.f32 %v7615_v28, %v2461_v41  ;;  %v3448_v35 = vsel %vm271_vm0, %v3431_v6, 0 }
  0x7e   : > { %6630 = vmatpush3.msra.mxu0 %v7284_v29  ;;  %6645 = vmatpush3.msra.mxu1 %v7231_v7 }
  0x7f   : > { %6608 = vmatmul.mubr.f32.gmra.mxu0 %v7501_v53  ;;  %6631 = vmatprep.subr.mxu0 %v7289_v30  ;;  %v2491_v54 = vand.u32 4294901760, %v7654_v51  ;;  %v2463_v20 = vand.u32 4294901760, %v2462_v52 }
  0x80   : > { %6621 = vmatprep.mubr.f32.mxu1 %v1401_v49  ;;  %6632 = vmatpush3.msra.mxu0 %v7289_v30  ;;  %v2471_v49 = vand.u32 4294901760, %v7623_v36 }
  0x81   : > { %6646 = vmatprep.subr.mxu1 %v7233_v8  ;;  %6622 = vmatmul.mubr.f32.gmra.mxu1 %v1411_v19  ;;  %v7663_v19 = vsub.f32 %v2378_v38, %v7641_v45 }
  0x82   : > { %6633 = vmatprep.subr.mxu0 %v7296_v33  ;;  %6647 = vmatpush3.msra.mxu1 %v7233_v8  ;;  %v2472_v53 = vsub.f32 %v7623_v36, %v2471_v49 }
  0x83   : > { %6634 = vmatpush3.msra.mxu0 %v7296_v33  ;;  %6635 = vmatprep.mubr.f32.mxu0 %v7424_v17  ;;  %v2501_v56 = vand.u32 4294901760, %v7663_v19 }
  0x84   : > { %6648 = vmatprep.subr.mxu1 %v7235_v9  ;;  %6636 = vmatmul.mubr.f32.vlgmr.msra.gmra.mxu0 %v7428_v23  ;;  %v2473_v60 = vand.u32 4294901760, %v2472_v53 }
  0x85   : > { %6624 = vmatprep.mubr.f32.mxu1 %v1421_v55  ;;  %6649 = vmatpush3.msra.mxu1 %v7235_v9 }
  0x86   : > { %6638 = vmatprep.mubr.f32.mxu0 %v7433_v24  ;;  %6625 = vmatmul.mubr.f32.gmra.mxu1 %v1431_v61 }
  0x87   : > { %6650 = vmatprep.subr.mxu1 %v7243_v13  ;;  %6661 = vmatprep.subr.mxu0 %v7231_v7 }
  0x88   : > { %6651 = vmatpush3.msra.mxu1 %v7243_v13  ;;  %6639 = vmatmul.mubr.f32.gmra.mxu0 %v7455_v37 }
  0x89   : > { %6652 = vmatprep.mubr.f32.mxu1 %v7424_v17  ;;  %6662 = vmatpush3.msra.mxu0 %v7231_v7  ;;  %v2481_v17 = vand.u32 4294901760, %v7639_v43 }
  0x8a   : > { %6678 = vmatprep.subr.mxu1 %v7323_v44  ;;  %6653 = vmatmul.mubr.f32.vlgmr.msra.gmra.mxu1 %v7428_v23  ;;  %v2453_v23 = vand.u32 4294901760, %v2452_v50 }
  0x8b   : > { %6663 = vmatprep.subr.mxu0 %v7233_v8  ;;  %6641 = vmatprep.mubr.f32.mxu0 %v7470_v42  ;;  %v2482_v55 = vsub.f32 %v7639_v43, %v2481_v17 }
  0x8c   : > { %6664 = vmatpush3.msra.mxu0 %v7233_v8  ;;  %6679 = vmatpush3.msra.mxu1 %v7323_v44 }
  0x8d   : > { %6642 = vmatmul.mubr.f32.gmra.mxu0 %v7479_v46  ;;  %6665 = vmatprep.subr.mxu0 %v7235_v9  ;;  %v2483_v61 = vand.u32 4294901760, %v2482_v55 }
  0x8e   : > { %6655 = vmatprep.mubr.f32.mxu1 %v7433_v24  ;;  %6666 = vmatpush3.msra.mxu0 %v7235_v9  ;;  %v2492_v24 = vsub.f32 %v7654_v51, %v2491_v54 }
  0x8f   : > { %6680 = vmatprep.subr.mxu1 %v7331_v47  ;;  %6656 = vmatmul.mubr.f32.gmra.mxu1 %v7455_v37  ;;  %v2502_v37 = vsub.f32 %v7663_v19, %v2501_v56 }
  0x90   : > { %6667 = vmatprep.subr.mxu0 %v7243_v13  ;;  %6681 = vmatpush3.msra.mxu1 %v7331_v47  ;;  %v2493_v62 = vand.u32 4294901760, %v2492_v24  ;;  %v4497_v24 = vld [vmem:[%s9595_s1 + $0xc8] sm:$0xff] }
  0x91   : > { %6668 = vmatpush3.msra.mxu0 %v7243_v13  ;;  %6669 = vmatprep.mubr.f32.mxu0 %v2453_v23 }
  0x92   : > { %6682 = vmatprep.subr.mxu1 %v7334_v48  ;;  %6670 = vmatmul.mubr.f32.vlgmr.msra.gmra.mxu0 %v2463_v20 }
  0x93   : > { %6658 = vmatprep.mubr.f32.mxu1 %v7470_v42  ;;  %6683 = vmatpush3.msra.mxu1 %v7334_v48  ;;  %v2503_v42 = vand.u32 4294901760, %v2502_v37 }
  0x94   : > { %6672 = vmatprep.mubr.f32.mxu0 %v2473_v60  ;;  %6659 = vmatmul.mubr.f32.gmra.mxu1 %v7479_v46  ;;  %v3426_v46 = vld [vmem:[%s9595_s1 + $0x90] sm:$0xff] }
  0x95   : > { %6684 = vmatprep.subr.mxu1 %v7354_v59  ;;  %6695 = vmatprep.subr.mxu0 %v7255_v18  ;;  %v3433_v32 = vsel %vm271_vm0, %v3426_v46, 0  ;;  %v4499_v46 = vld [vmem:[%s9595_s1 + $0xd8] sm:$0xff] }
  0x96   : > { %6685 = vmatpush3.msra.mxu1 %v7354_v59  ;;  %6673 = vmatmul.mubr.f32.gmra.mxu0 %v2483_v61  ;;  %v7748_v1 = vand.u32 4294901760, %v3433_v32  ;;  %v4498_v61 = vld [vmem:[%s9595_s1 + $0xd0] sm:$0xff]  ;;  %v4512_v0 = vsel %vm271_vm0, %v4499_v46, 0 }
  0x97   : > { %6686 = vmatprep.mubr.f32.mxu1 %v7586_v10  ;;  %6696 = vmatpush3.msra.mxu0 %v7255_v18  ;;  %v7941_v6 = vand.u32 4294901760, %v4512_v0 }
  0x98   : > { %6712 = vmatprep.subr.mxu1 %v7231_v7  ;;  %6687 = vmatmul.mubr.f32.vlgmr.msra.gmra.mxu1 %v7590_v11  ;;  %v7772_v14 = vsub.f32 %v3433_v32, %v7748_v1 }
  0x99   : > { %6697 = vmatprep.subr.mxu0 %v7262_v21  ;;  %6675 = vmatprep.mubr.f32.mxu0 %v2493_v62  ;;  %v4506_v62 = vsel %vm271_vm0, %v4497_v24, 0 }
  0x9a   : > { %6698 = vmatpush3.msra.mxu0 %v7262_v21  ;;  %6713 = vmatpush3.msra.mxu1 %v7231_v7  ;;  %v7914_v63 = vand.u32 4294901760, %v4506_v62 }
  0x9b   : > { %6676 = vmatmul.mubr.f32.gmra.mxu0 %v2503_v42  ;;  %6699 = vmatprep.subr.mxu0 %v7266_v22  ;;  %v4509_v42 = vsel %vm271_vm0, %v4498_v61, 0 }
  0x9c   : > { %6689 = vmatprep.mubr.f32.mxu1 %v7595_v12  ;;  %6700 = vmatpush3.msra.mxu0 %v7266_v22  ;;  %v7919_v32 = vand.u32 4294901760, %v4509_v42 }
  0x9d   : > { %6714 = vmatprep.subr.mxu1 %v7233_v8  ;;  %6690 = vmatmul.mubr.f32.gmra.mxu1 %v7617_v34 }
  0x9e   : > { %6701 = vmatprep.subr.mxu0 %v7271_v25  ;;  %6715 = vmatpush3.msra.mxu1 %v7233_v8 }
  0x9f   : > { %6702 = vmatpush3.msra.mxu0 %v7271_v25  ;;  %6703 = vmatprep.mubr.f32.mxu0 %v7610_v27  ;;  %v3445_v27 = vsel %vm271_vm0, %v3430_v5, 0  ;;  %v7939_v5 = vsub.f32 %v4506_v62, %v7914_v63 }
  0xa0   : > { %6716 = vmatprep.subr.mxu1 %v7235_v9  ;;  %6704 = vmatmul.mubr.f32.vlgmr.msra.gmra.mxu0 %v7615_v28  ;;  %v7785_v28 = vsub.f32 %v3439_v57, %v7757_v3  ;;  %v7794_v38 = vand.u32 4294901760, %v3445_v27  ;;  %v4500_v57 = vld [vmem:[%s9595_s1 + $0xe0] sm:$0xff] }
  0xa1   : > { %6692 = vmatprep.mubr.f32.mxu1 %v7632_v40  ;;  %6717 = vmatpush3.msra.mxu1 %v7235_v9 }
  0xa2   : > { %6706 = vmatprep.mubr.f32.mxu0 %v7623_v36  ;;  %6693 = vmatmul.mubr.f32.gmra.mxu1 %v7641_v45  ;;  %v3521_v36 = vand.u32 4294901760, %v7772_v14 }
  0xa3   : > { %6718 = vmatprep.subr.mxu1 %v7243_v13  ;;  %6729 = vmatprep.subr.mxu0 %v7275_v26 }
  0xa4   : > { %6719 = vmatpush3.msra.mxu1 %v7243_v13  ;;  %6707 = vmatmul.mubr.f32.gmra.mxu0 %v7639_v43  ;;  %v7803_v43 = vand.u32 4294901760, %v3448_v35  ;;  %v3522_v50 = vsub.f32 %v7772_v14, %v3521_v36 }
  0xa5   : > { %6720 = vmatprep.mubr.f32.mxu1 %v2451_v39  ;;  %6730 = vmatpush3.msra.mxu0 %v7275_v26  ;;  %v3531_v39 = vand.u32 4294901760, %v7777_v15 }
  0xa6   : > { %6746 = vmatprep.subr.mxu1 %v7231_v7  ;;  %6721 = vmatmul.mubr.f32.vlgmr.msra.gmra.mxu1 %v2461_v41  ;;  %v7801_v41 = vsub.f32 %v3442_v4, %v7779_v16 }
  0xa7   : > { %6731 = vmatprep.subr.mxu0 %v7284_v29  ;;  %6709 = vmatprep.mubr.f32.mxu0 %v7654_v51  ;;  %v7816_v51 = vsub.f32 %v3445_v27, %v7794_v38  ;;  %v3532_v52 = vsub.f32 %v7777_v15, %v3531_v39  ;;  %v4518_v27 = vsel %vm271_vm0, %v4501_v58, 0 }
  0xa8   : > { %6732 = vmatpush3.msra.mxu0 %v7284_v29  ;;  %6747 = vmatpush3.msra.mxu1 %v7231_v7 }
  0xa9   : > { %6710 = vmatmul.mubr.f32.gmra.mxu0 %v7663_v19  ;;  %6733 = vmatprep.subr.mxu0 %v7289_v30  ;;  %v3561_v53 = vand.u32 4294901760, %v7816_v51  ;;  %v3533_v23 = vand.u32 4294901760, %v3532_v52 }
  0xaa   : > { %6723 = vmatprep.mubr.f32.mxu1 %v2471_v49  ;;  %6734 = vmatpush3.msra.mxu0 %v7289_v30  ;;  %v3541_v49 = vand.u32 4294901760, %v7785_v28 }
  0xab   : > { %6748 = vmatprep.subr.mxu1 %v7233_v8  ;;  %6724 = vmatmul.mubr.f32.gmra.mxu1 %v2481_v17  ;;  %v7825_v17 = vsub.f32 %v3448_v35, %v7803_v43 }
  0xac   : > { %6735 = vmatprep.subr.mxu0 %v7296_v33  ;;  %6749 = vmatpush3.msra.mxu1 %v7233_v8  ;;  %v3542_v19 = vsub.f32 %v7785_v28, %v3541_v49 }
  0xad   : > { %6736 = vmatpush3.msra.mxu0 %v7296_v33  ;;  %6737 = vmatprep.mubr.f32.mxu0 %v7586_v10  ;;  %v3571_v20 = vand.u32 4294901760, %v7825_v17 }
  0xae   : > { %6750 = vmatprep.subr.mxu1 %v7235_v9  ;;  %6738 = vmatmul.mubr.f32.vlgmr.msra.gmra.mxu0 %v7590_v11  ;;  %v3543_v55 = vand.u32 4294901760, %v3542_v19 }
  0xaf   : > { %6726 = vmatprep.mubr.f32.mxu1 %v2491_v54  ;;  %6751 = vmatpush3.msra.mxu1 %v7235_v9 }
  0xb0   : > { %6740 = vmatprep.mubr.f32.mxu0 %v7595_v12  ;;  %6727 = vmatmul.mubr.f32.gmra.mxu1 %v2501_v56 }
  0xb1   : > { %6752 = vmatprep.subr.mxu1 %v7243_v13  ;;  %6763 = vmatprep.subr.mxu0 %v7231_v7 }
  0xb2   : > { %6753 = vmatpush3.msra.mxu1 %v7243_v13  ;;  %6741 = vmatmul.mubr.f32.gmra.mxu0 %v7617_v34 }
  0xb3   : > { %6754 = vmatprep.mubr.f32.mxu1 %v7586_v10  ;;  %6764 = vmatpush3.msra.mxu0 %v7231_v7  ;;  %v3551_v10 = vand.u32 4294901760, %v7801_v41 }
  0xb4   : > { %6780 = vmatprep.subr.mxu1 %v7323_v44  ;;  %6755 = vmatmul.mubr.f32.vlgmr.msra.gmra.mxu1 %v7590_v11  ;;  %v3523_v11 = vand.u32 4294901760, %v3522_v50 }
  0xb5   : > { %6765 = vmatprep.subr.mxu0 %v7233_v8  ;;  %6743 = vmatprep.mubr.f32.mxu0 %v7632_v40  ;;  %v3552_v54 = vsub.f32 %v7801_v41, %v3551_v10 }
  0xb6   : > { %6766 = vmatpush3.msra.mxu0 %v7233_v8  ;;  %6781 = vmatpush3.msra.mxu1 %v7323_v44 }
  0xb7   : > { %6744 = vmatmul.mubr.f32.gmra.mxu0 %v7641_v45  ;;  %6767 = vmatprep.subr.mxu0 %v7235_v9  ;;  %v3553_v56 = vand.u32 4294901760, %v3552_v54 }
  0xb8   : > { %6757 = vmatprep.mubr.f32.mxu1 %v7595_v12  ;;  %6768 = vmatpush3.msra.mxu0 %v7235_v9  ;;  %v3562_v12 = vsub.f32 %v7816_v51, %v3561_v53 }
  0xb9   : > { %6782 = vmatprep.subr.mxu1 %v7331_v47  ;;  %6758 = vmatmul.mubr.f32.gmra.mxu1 %v7617_v34  ;;  %v3572_v34 = vsub.f32 %v7825_v17, %v3571_v20 }
  0xba   : > { %6769 = vmatprep.subr.mxu0 %v7243_v13  ;;  %6783 = vmatpush3.msra.mxu1 %v7331_v47  ;;  %v3563_v60 = vand.u32 4294901760, %v3562_v12 }
  0xbb   : > { %6770 = vmatpush3.msra.mxu0 %v7243_v13  ;;  %6771 = vmatprep.mubr.f32.mxu0 %v3523_v11 }
  0xbc   : > { %6784 = vmatprep.subr.mxu1 %v7334_v48  ;;  %6772 = vmatmul.mubr.f32.vlgmr.msra.gmra.mxu0 %v3533_v23 }
  0xbd   : > { %6760 = vmatprep.mubr.f32.mxu1 %v7632_v40  ;;  %6785 = vmatpush3.msra.mxu1 %v7334_v48  ;;  %v3573_v40 = vand.u32 4294901760, %v3572_v34 }
  0xbe   : > { %6774 = vmatprep.mubr.f32.mxu0 %v3543_v55  ;;  %6761 = vmatmul.mubr.f32.gmra.mxu1 %v7641_v45  ;;  %v4496_v45 = vld [vmem:[%s9595_s1 + $0xc0] sm:$0xff] }
  0xbf   : > { %6786 = vmatprep.subr.mxu1 %v7354_v59  ;;  %6797 = vmatprep.subr.mxu0 %v7255_v18  ;;  %v4503_v37 = vsel %vm271_vm0, %v4496_v45, 0 }
  0xc0   : > { %6787 = vmatpush3.msra.mxu1 %v7354_v59  ;;  %6775 = vmatmul.mubr.f32.gmra.mxu0 %v3553_v56  ;;  %v7910_v31 = vand.u32 4294901760, %v4503_v37 }
  0xc1   : > { %6788 = vmatprep.mubr.f32.mxu1 %v7748_v1  ;;  %6798 = vmatpush3.msra.mxu0 %v7255_v18 }
  0xc2   : > { %6814 = vmatprep.subr.mxu1 %v7231_v7  ;;  %6789 = vmatmul.mubr.f32.vlgmr.msra.gmra.mxu1 %v7752_v2  ;;  %v7934_v4 = vsub.f32 %v4503_v37, %v7910_v31 }
  0xc3   : > { %6799 = vmatprep.subr.mxu0 %v7262_v21  ;;  %6777 = vmatprep.mubr.f32.mxu0 %v3563_v60 }
  0xc4   : > { %6800 = vmatpush3.msra.mxu0 %v7262_v21  ;;  %6815 = vmatpush3.msra.mxu1 %v7231_v7 }
  0xc5   : > { %6778 = vmatmul.mubr.f32.gmra.mxu0 %v3573_v40  ;;  %6801 = vmatprep.subr.mxu0 %v7266_v22 }
  0xc6   : > { %6791 = vmatprep.mubr.f32.mxu1 %v7757_v3  ;;  %6802 = vmatpush3.msra.mxu0 %v7266_v22 }
  0xc7   : > { %6816 = vmatprep.subr.mxu1 %v7233_v8  ;;  %6792 = vmatmul.mubr.f32.gmra.mxu1 %v7779_v16 }
  0xc8   : > { %6803 = vmatprep.subr.mxu0 %v7271_v25  ;;  %6817 = vmatpush3.msra.mxu1 %v7233_v8 }
  0xc9   : > { %6804 = vmatpush3.msra.mxu0 %v7271_v25  ;;  %6805 = vmatprep.mubr.f32.mxu0 %v7772_v14  ;;  %v4515_v14 = vsel %vm271_vm0, %v4500_v57, 0 }
  0xca   : > { %6818 = vmatprep.subr.mxu1 %v7235_v9  ;;  %6806 = vmatmul.mubr.f32.vlgmr.msra.gmra.mxu0 %v7777_v15  ;;  %v7947_v15 = vsub.f32 %v4509_v42, %v7919_v32  ;;  %v7956_v35 = vand.u32 4294901760, %v4515_v14 }
  0xcb   : > { %6794 = vmatprep.mubr.f32.mxu1 %v7794_v38  ;;  %6819 = vmatpush3.msra.mxu1 %v7235_v9 }
  0xcc   : > { %6808 = vmatprep.mubr.f32.mxu0 %v7785_v28  ;;  %6795 = vmatmul.mubr.f32.gmra.mxu1 %v7803_v43  ;;  %v4591_v28 = vand.u32 4294901760, %v7934_v4 }
  0xcd   : > { %6820 = vmatprep.subr.mxu1 %v7243_v13  ;;  %6831 = vmatprep.subr.mxu0 %v7275_v26 }
  0xce   : > { %6821 = vmatpush3.msra.mxu1 %v7243_v13  ;;  %6809 = vmatmul.mubr.f32.gmra.mxu0 %v7801_v41  ;;  %v7965_v41 = vand.u32 4294901760, %v4518_v27  ;;  %v4592_v50 = vsub.f32 %v7934_v4, %v4591_v28 }
  0xcf   : > { %6822 = vmatprep.mubr.f32.mxu1 %v3521_v36  ;;  %6832 = vmatpush3.msra.mxu0 %v7275_v26  ;;  %v4601_v36 = vand.u32 4294901760, %v7939_v5 }
  0xd0   : > { %6848 = vmatprep.subr.mxu1 %v7231_v7  ;;  %6823 = vmatmul.mubr.f32.vlgmr.msra.gmra.mxu1 %v3531_v39  ;;  %v7963_v39 = vsub.f32 %v4512_v0, %v7941_v6 }
  0xd1   : > { %6833 = vmatprep.subr.mxu0 %v7284_v29  ;;  %6811 = vmatprep.mubr.f32.mxu0 %v7816_v51  ;;  %v7978_v51 = vsub.f32 %v4515_v14, %v7956_v35  ;;  %v4602_v52 = vsub.f32 %v7939_v5, %v4601_v36 }
  0xd2   : > { %6834 = vmatpush3.msra.mxu0 %v7284_v29  ;;  %6849 = vmatpush3.msra.mxu1 %v7231_v7 }
  0xd3   : > { %6812 = vmatmul.mubr.f32.gmra.mxu0 %v7825_v17  ;;  %6835 = vmatprep.subr.mxu0 %v7289_v30  ;;  %v4631_v19 = vand.u32 4294901760, %v7978_v51  ;;  %v4603_v11 = vand.u32 4294901760, %v4602_v52 }
  0xd4   : > { %6825 = vmatprep.mubr.f32.mxu1 %v3541_v49  ;;  %6836 = vmatpush3.msra.mxu0 %v7289_v30  ;;  %v4611_v49 = vand.u32 4294901760, %v7947_v15 }
  0xd5   : > { %6850 = vmatprep.subr.mxu1 %v7233_v8  ;;  %6826 = vmatmul.mubr.f32.gmra.mxu1 %v3551_v10  ;;  %v7987_v10 = vsub.f32 %v4518_v27, %v7965_v41 }
  0xd6   : > { %6837 = vmatprep.subr.mxu0 %v7296_v33  ;;  %6851 = vmatpush3.msra.mxu1 %v7233_v8  ;;  %v4612_v17 = vsub.f32 %v7947_v15, %v4611_v49 }
  0xd7   : > { %6838 = vmatpush3.msra.mxu0 %v7296_v33  ;;  %6839 = vmatprep.mubr.f32.mxu0 %v7748_v1 }
  0xd8   : > { %6852 = vmatprep.subr.mxu1 %v7235_v9  ;;  %6840 = vmatmul.mubr.f32.vlgmr.msra.gmra.mxu0 %v7752_v2  ;;  %v4613_v23 = vand.u32 4294901760, %v4612_v17 }
  0xd9   : > { %6828 = vmatprep.mubr.f32.mxu1 %v3561_v53  ;;  %6853 = vmatpush3.msra.mxu1 %v7235_v9 }
  0xda   : > { %6842 = vmatprep.mubr.f32.mxu0 %v7757_v3  ;;  %6829 = vmatmul.mubr.f32.gmra.mxu1 %v3571_v20 }
  0xdb   : > { %6854 = vmatprep.subr.mxu1 %v7243_v13  ;;  %6865 = vmatprep.subr.mxu0 %v7231_v7 }
  0xdc   : > { %6855 = vmatpush3.msra.mxu1 %v7243_v13  ;;  %6843 = vmatmul.mubr.f32.gmra.mxu0 %v7779_v16 }
  0xdd   : > { %6856 = vmatprep.mubr.f32.mxu1 %v7748_v1  ;;  %6866 = vmatpush3.msra.mxu0 %v7231_v7  ;;  %v4621_v1 = vand.u32 4294901760, %v7963_v39 }
  0xde   : > { %6882 = vmatprep.subr.mxu1 %v7323_v44  ;;  %6857 = vmatmul.mubr.f32.vlgmr.msra.gmra.mxu1 %v7752_v2  ;;  %v4593_v2 = vand.u32 4294901760, %v4592_v50 }
  0xdf   : > { %6867 = vmatprep.subr.mxu0 %v7233_v8  ;;  %6845 = vmatprep.mubr.f32.mxu0 %v7794_v38  ;;  %v4622_v53 = vsub.f32 %v7963_v39, %v4621_v1 }
  0xe0   : > { %6868 = vmatpush3.msra.mxu0 %v7233_v8  ;;  %6883 = vmatpush3.msra.mxu1 %v7323_v44  ;;  %v4641_v44 = vand.u32 4294901760, %v7987_v10 }
  0xe1   : > { %6846 = vmatmul.mubr.f32.gmra.mxu0 %v7803_v43  ;;  %6869 = vmatprep.subr.mxu0 %v7235_v9  ;;  %v4623_v54 = vand.u32 4294901760, %v4622_v53 }
  0xe2   : > { %6859 = vmatprep.mubr.f32.mxu1 %v7757_v3  ;;  %6870 = vmatpush3.msra.mxu0 %v7235_v9  ;;  %v4632_v3 = vsub.f32 %v7978_v51, %v4631_v19 }
  0xe3   : > { %6884 = vmatprep.subr.mxu1 %v7331_v47  ;;  %6860 = vmatmul.mubr.f32.gmra.mxu1 %v7779_v16  ;;  %v4642_v16 = vsub.f32 %v7987_v10, %v4641_v44 }
  0xe4   : > { %6871 = vmatprep.subr.mxu0 %v7243_v13  ;;  %6885 = vmatpush3.msra.mxu1 %v7331_v47  ;;  %v4633_v47 = vand.u32 4294901760, %v4632_v3 }
  0xe5   : > { %6872 = vmatpush3.msra.mxu0 %v7243_v13  ;;  %6873 = vmatprep.mubr.f32.mxu0 %v4593_v2 }
  0xe6   : > { %6886 = vmatprep.subr.mxu1 %v7334_v48  ;;  %6874 = vmatmul.mubr.f32.vlgmr.msra.gmra.mxu0 %v4603_v11 }
  0xe7   : > { %6862 = vmatprep.mubr.f32.mxu1 %v7794_v38  ;;  %6887 = vmatpush3.msra.mxu1 %v7334_v48  ;;  %v4643_v38 = vand.u32 4294901760, %v4642_v16 }
  0xe8   : > { %6876 = vmatprep.mubr.f32.mxu0 %v4613_v23  ;;  %6863 = vmatmul.mubr.f32.gmra.mxu1 %v7803_v43 }
  0xe9   : > { %6888 = vmatprep.subr.mxu1 %v7354_v59  ;;  %6899 = vmatprep.subr.mxu0 %v7255_v18 }
  0xea   : > { %6889 = vmatpush3.msra.mxu1 %v7354_v59  ;;  %6877 = vmatmul.mubr.f32.gmra.mxu0 %v4623_v54 }
  0xeb   : > { %6890 = vmatprep.mubr.f32.mxu1 %v7910_v31  ;;  %6900 = vmatpush3.msra.mxu0 %v7255_v18 }
  0xec   : > { %6916 = vmatprep.subr.mxu1 %v7231_v7  ;;  %6891 = vmatmul.mubr.f32.vlgmr.msra.gmra.mxu1 %v7914_v63 }
  0xed   : > { %6901 = vmatprep.subr.mxu0 %v7262_v21  ;;  %6879 = vmatprep.mubr.f32.mxu0 %v4633_v47 }
  0xee   : > { %6902 = vmatpush3.msra.mxu0 %v7262_v21  ;;  %6917 = vmatpush3.msra.mxu1 %v7231_v7 }
  0xef   : > { %6880 = vmatmul.mubr.f32.gmra.mxu0 %v4643_v38  ;;  %6903 = vmatprep.subr.mxu0 %v7266_v22 }
  0xf0   : > { %6893 = vmatprep.mubr.f32.mxu1 %v7919_v32  ;;  %6904 = vmatpush3.msra.mxu0 %v7266_v22 }
  0xf1   : > { %6918 = vmatprep.subr.mxu1 %v7233_v8  ;;  %6894 = vmatmul.mubr.f32.gmra.mxu1 %v7941_v6 }
  0xf2   : > { %6905 = vmatprep.subr.mxu0 %v7271_v25  ;;  %6919 = vmatpush3.msra.mxu1 %v7233_v8 }
  0xf3   : > { %6906 = vmatpush3.msra.mxu0 %v7271_v25  ;;  %6907 = vmatprep.mubr.f32.mxu0 %v7934_v4 }
  0xf4   : > { %6920 = vmatprep.subr.mxu1 %v7235_v9  ;;  %6908 = vmatmul.mubr.f32.vlgmr.msra.gmra.mxu0 %v7939_v5 }
  0xf5   : > { %6896 = vmatprep.mubr.f32.mxu1 %v7956_v35  ;;  %6921 = vmatpush3.msra.mxu1 %v7235_v9 }
  0xf6   : > { %6910 = vmatprep.mubr.f32.mxu0 %v7947_v15  ;;  %6897 = vmatmul.mubr.f32.gmra.mxu1 %v7965_v41 }
  0xf7   : > { %6922 = vmatprep.subr.mxu1 %v7243_v13  ;;  %6933 = vmatprep.subr.mxu0 %v7275_v26 }
  0xf8   : > { %6923 = vmatpush3.msra.mxu1 %v7243_v13  ;;  %6911 = vmatmul.mubr.f32.gmra.mxu0 %v7963_v39 }
  0xf9   : > { %6924 = vmatprep.mubr.f32.mxu1 %v4591_v28  ;;  %6934 = vmatpush3.msra.mxu0 %v7275_v26 }
  0xfa   : > { %6950 = vmatprep.subr.mxu1 %v7231_v7  ;;  %6925 = vmatmul.mubr.f32.vlgmr.msra.gmra.mxu1 %v4601_v36 }
  0xfb   : > { %6935 = vmatprep.subr.mxu0 %v7284_v29  ;;  %6913 = vmatprep.mubr.f32.mxu0 %v7978_v51 }
  0xfc   : > { %6936 = vmatpush3.msra.mxu0 %v7284_v29  ;;  %6951 = vmatpush3.msra.mxu1 %v7231_v7 }
  0xfd   : > { %6914 = vmatmul.mubr.f32.gmra.mxu0 %v7987_v10  ;;  %6937 = vmatprep.subr.mxu0 %v7289_v30 }
  0xfe   : > { %6927 = vmatprep.mubr.f32.mxu1 %v4611_v49  ;;  %6938 = vmatpush3.msra.mxu0 %v7289_v30 }
  0xff   : > { %6952 = vmatprep.subr.mxu1 %v7233_v8  ;;  %6928 = vmatmul.mubr.f32.gmra.mxu1 %v4621_v1 }
 0x100   : > { %6939 = vmatprep.subr.mxu0 %v7296_v33  ;;  %v6467_v18 = vpop.f32.mrf.mxu0  ;;  %6953 = vmatpush3.msra.mxu1 %v7233_v8 }
 0x101   : > { %6940 = vmatpush3.msra.mxu0 %v7296_v33  ;;  %6941 = vmatprep.mubr.f32.mxu0 %v7910_v31 }
 0x102   : > { %6954 = vmatprep.subr.mxu1 %v7235_v9  ;;  %v365_v7 = vpop.f32.mrf.mxu0  ;;  %6942 = vmatmul.mubr.f32.vlgmr.msra.gmra.mxu0 %v7914_v63 }
 0x103   : > { %6930 = vmatprep.mubr.f32.mxu1 %v4631_v19  ;;  %6955 = vmatpush3.msra.mxu1 %v7235_v9 }
 0x104   : > { %6944 = vmatprep.mubr.f32.mxu0 %v7919_v32  ;;  %v6470_v21 = vpop.f32.mrf.mxu0  ;;  %6931 = vmatmul.mubr.f32.gmra.mxu1 %v4641_v44 }
 0x105   : > { %6956 = vmatprep.subr.mxu1 %v7243_v13  ;;  %v6484_v8 = vpop.f32.mrf.mxu1  ;;  %6958 = vmatprep.mubr.f32.mxu1 %v7910_v31 }
 0x106   : > { %6957 = vmatpush3.msra.mxu1 %v7243_v13  ;;  %v385_v22 = vpop.f32.mrf.mxu0  ;;  %6945 = vmatmul.mubr.f32.gmra.mxu0 %v7941_v6  ;;  %v513_v45 = vadd.f32 %v6484_v8, %v6467_v18 }
 0x107   : > { %v506_v25 = vpop.f32.mrf.mxu1  ;;  %6947 = vmatprep.mubr.f32.mxu0 %v7956_v35 }
 0x108   : > { %6959 = vmatmul.mubr.f32.vlgmr.msra.gmra.mxu1 %v7914_v63  ;;  %v507_v61 = vadd.f32 %v506_v25, %v365_v7 }
 0x109   : > { %v6473_v9 = vpop.f32.mrf.mxu0  ;;  %6961 = vmatprep.mubr.f32.mxu1 %v7919_v32  ;;  %v6487_v26 = vpop.f32.mrf.mxu1 }
 0x10a   : > { %6948 = vmatmul.mubr.f32.gmra.mxu0 %v7965_v41  ;;  %v525_v31 = vadd.f32 %v6487_v26, %v6470_v21 }
 0x10b   : > { %v405_v29 = vpop.f32.mrf.mxu0  ;;  %v518_v30 = vpop.f32.mrf.mxu1 }
 0x10c   : > { %6962 = vmatmul.mubr.f32.gmra.mxu1 %v7941_v6  ;;  %v519_v58 = vadd.f32 %v518_v30, %v385_v22 }
 0x10d   : > { %v6501_v13 = vpop.f32.mrf.mxu0  ;;  %6964 = vmatprep.mubr.f32.mxu1 %v7956_v35 }
 0x10e   : > { %v6490_v33 = vpop.f32.mrf.mxu1  ;;  %v624_v37 = vadd.f32 %v6501_v13, %v513_v45 }
 0x10f   : > { %v616_v48 = vpop.f32.mrf.mxu0 }
 0x110   : > { %6965 = vmatmul.mubr.f32.gmra.mxu1 %v7965_v41  ;;  %v530_v59 = vpop.f32.mrf.mxu1  ;;  %v617_v46 = vadd.f32 %v616_v48, %v507_v61  ;;  %v537_v41 = vadd.f32 %v6490_v33, %v6473_v9 }
 0x111   : > { %v6504_v43 = vpop.f32.mrf.mxu0  ;;  %v531_v1 = vadd.f32 %v530_v59, %v405_v29 }
 0x112   : > { %v6518_v55 = vpop.f32.mrf.mxu1  ;;  %v638_v4 = vadd.f32 %v6504_v43, %v525_v31 }
 0x113   : > { %v630_v20 = vpop.f32.mrf.mxu0  ;;  %v737_v63 = vadd.f32 %v6518_v55, %v624_v37 }
 0x114   : > { %v728_v56 = vpop.f32.mrf.mxu1  ;;  %v631_v27 = vadd.f32 %v630_v20, %v519_v58 }
 0x115   : > { %v6507_v12 = vpop.f32.mrf.mxu0  ;;  %v729_v57 = vadd.f32 %v728_v56, %v617_v46 }
 0x116   : > { %v652_v10 = vadd.f32 %v6507_v12, %v537_v41 }
 0x117   : > { %v644_v34 = vpop.f32.mrf.mxu0  ;;  %v6521_v60 = vpop.f32.mrf.mxu1 }
 0x118   : > { %v753_v28 = vadd.f32 %v6521_v60, %v638_v4  ;;  %v645_v44 = vadd.f32 %v644_v34, %v531_v1 }
 0x119   : > { %v744_v40 = vpop.f32.mrf.mxu1 }
 0x11a   : > { %v6535_v24 = vpop.f32.mrf.mxu0  ;;  %v745_v50 = vadd.f32 %v744_v40, %v631_v27 }
 0x11b   : > { %v858_v5 = vadd.f32 %v6535_v24, %v737_v63 }
 0x11c   : > { %v6524_v62 = vpop.f32.mrf.mxu1  ;;  %v851_v42 = vpop.f32.mrf.mxu0 }
 0x11d   : > { %v852_v15 = vadd.f32 %v851_v42, %v729_v57  ;;  %v769_v23 = vadd.f32 %v6524_v62, %v652_v10 }
 0x11e   : > { %v760_v32 = vpop.f32.mrf.mxu1  ;;  %v6538_v0 = vpop.f32.mrf.mxu0 }
 0x11f   : > { %v870_v51 = vadd.f32 %v6538_v0, %v753_v28  ;;  %v761_v38 = vadd.f32 %v760_v32, %v645_v44 }
 0x120   : > { %v863_v6 = vpop.f32.mrf.mxu0  ;;  %v6552_v14 = vpop.f32.mrf.mxu1 }
 0x121   : > { %v8090_v35 = vadd.f32 %v6552_v14, %v858_v5  ;;  %v864_v19 = vadd.f32 %v863_v6, %v745_v50 }
 0x122   : > { %v956_v39 = vpop.f32.mrf.mxu1 }
 0x123   : > { %v6541_v36 = vpop.f32.mrf.mxu0  ;;  %v8092_v49 = vadd.f32 %v956_v39, %v852_v15  ;;  %v991_v11 = vadd.f32 1e-08, %v8090_v35 }
 0x124   : > { %v882_v18 = vadd.f32 %v6541_v36, %v769_v23 }
 0x125   : > { %v875_v52 = vpop.f32.mrf.mxu0  ;;  %v990_v17 = vadd.f32 1e-08, %v8092_v49  ;;  %v6555_v2 = vpop.f32.mrf.mxu1  ;;  %v994_v7 = vmul.f32 %v991_v11, %v991_v11 }
 0x126   : > { %v8096_v53 = vadd.f32 %v6555_v2, %v870_v51  ;;  %v876_v25 = vadd.f32 %v875_v52, %v761_v38 }
 0x127   : > { %v968_v3 = vpop.f32.mrf.mxu1  ;;  %v993_v54 = vmul.f32 %v990_v17, %v990_v17 }
 0x128   : > { %6058 = vst [vmem:[%s8098_s21 + $0x78] sm:$0xff] %v8096_v53  ;;  %v8102_v16 = vadd.f32 %v968_v3, %v864_v19  ;;  %v6569_v47 = vpop.f32.mrf.mxu0 }
 0x129   : > { %v995_v26 = vadd.f32 %v994_v7, %v993_v54 }
 0x12a   : > { %v992_v21 = vadd.f32 1e-08, %v8102_v16  ;;  %v6558_v8 = vpop.f32.mrf.mxu1  ;;  %v1385_v22 = vpop.f32.mrf.mxu0 }
 0x12b   : > { %v8105_v9 = vadd.f32 %v6558_v8, %v882_v18 }
 0x12c   : > { %v996_v29 = vmul.f32 %v992_v21, %v992_v21  ;;  %v980_v30 = vpop.f32.mrf.mxu1  ;;  %v6572_v13 = vpop.f32.mrf.mxu0 }
 0x12d   : > { %6066 = vst [vmem:[%s8098_s21 + $0x1b8] sm:$0xff] %v8105_v9  ;;  %v8109_v33 = vadd.f32 %v980_v30, %v876_v25 }
 0x12e   : > { %v997_v48 = vadd.f32 %v996_v29, %v995_v26  ;;  %v1405_v59 = vpop.f32.mrf.mxu0  ;;  %v6586_v43 = vpop.f32.mrf.mxu1 }
 0x12f   : > { %6062 = vst [vmem:[%s8098_s21 + $0x118] sm:$0xff] %v8109_v33  ;;  %v1533_v52 = vadd.f32 %v6586_v43, %v6569_v47 }
 0x130   : > { %7032 = vrsqrt.f32 %v997_v48  ;;  %v1526_v55 = vpop.f32.mrf.mxu1  ;;  %vm1000_vm1 = vcmp.eq.f32.partialorder %v997_v48, inf  ;;  %v1003_v4 = vand.u32 2147483648, %v997_v48  ;;  %vm1002_vm2 = vcmp.eq.f32.partialorder %v997_v48, 0.0 }
 0x131   : > { %v6575_v20 = vpop.f32.mrf.mxu0  ;;  %v1527_v17 = vadd.f32 %v1526_v55, %v1385_v22 }
 0x133   : > { %v1425_v12 = vpop.f32.mrf.mxu0  ;;  %v6589_v56 = vpop.f32.mrf.mxu1 }
 0x134   : > { %v1545_v34 = vadd.f32 %v6589_v56, %v6572_v13 }
 0x135   : > { %v1538_v60 = vpop.f32.mrf.mxu1 }
 0x136   : > { %v6603_v40 = vpop.f32.mrf.mxu0  ;;  %v1539_v19 = vadd.f32 %v1538_v60, %v1405_v59 }
 0x137   : > { %v1644_v11 = vadd.f32 %v6603_v40, %v1533_v52 }
 0x138   : > { %v6592_v45 = vpop.f32.mrf.mxu1  ;;  %v1636_v24 = vpop.f32.mrf.mxu0 }
 0x139   : > { %v1557_v61 = vadd.f32 %v6592_v45, %v6575_v20  ;;  %v1637_v3 = vadd.f32 %v1636_v24, %v1527_v17 }
 0x13a   : > { %v1550_v37 = vpop.f32.mrf.mxu1  ;;  %v6606_v62 = vpop.f32.mrf.mxu0 }
 0x13b   : > { %v1551_v42 = vadd.f32 %v1550_v37, %v1425_v12  ;;  %v1658_v46 = vadd.f32 %v6606_v62, %v1545_v34  ;;  %v9609_v62 = vmov 2475754826  }
 0x13c   : > { %v1650_v31 = vpop.f32.mrf.mxu0  ;;  %v6620_v63 = vpop.f32.mrf.mxu1 }
 0x13d   : > { %v7033_v32 = vpop.eup %7032  ;;  %v1651_v18 = vadd.f32 %v1650_v31, %v1539_v19  ;;  %v1757_v7 = vadd.f32 %v6620_v63, %v1644_v11 }
 0x13e   : > { %v999_v0 = vmul.f32 %v7033_v32, %v997_v48  ;;  %v1748_v58 = vpop.f32.mrf.mxu1 }
 0x13f   : > { %v6609_v57 = vpop.f32.mrf.mxu0  ;;  %v1749_v47 = vadd.f32 %v1748_v58, %v1637_v3  ;;  %v9601_v58 = vmov 920167782  }
 0x140   : > { %v1672_v5 = vadd.f32 %v6609_v57, %v1557_v61  ;;  %v1001_v6 = vsel %vm1000_vm1, %v997_v48, %v999_v0  ;;  %v9607_v61 = vmov 683565275   ;;  %v9603_v0 = vmov 2102212464  }
 0x141   : > { %v1664_v14 = vpop.f32.mrf.mxu0  ;;  %v8113_v15 = vsel %vm1002_vm2, %v1003_v4, %v1001_v6  ;;  %v6623_v28 = vpop.f32.mrf.mxu1 }
 0x142   : > { %v1665_v27 = vadd.f32 %v1664_v14, %v1551_v42  ;;  %7034 = vrcp.f32 %v8113_v15  ;;  %v1010_v36 = vand.u32 2147483647, %v8113_v15  ;;  %v1013_v39 = vand.u32 2139095040, %v8113_v15 }
 0x143   : > { %v1773_v41 = vadd.f32 %v6623_v28, %v1658_v46  ;;  %v1764_v50 = vpop.f32.mrf.mxu1  ;;  %v9611_v46 = vmov 2131351028   ;;  %vm1012_vm9 = vcmp.lt.s32.totalorder %v8113_v15, 0 }
 0x144   : > { %v1014_v51 = vshrl.u32 %v1013_v39, 23  ;;  %v6637_v1 = vpop.f32.mrf.mxu0  ;;  %v1017_v10 = vand.u32 8388607, %v1010_v36  ;;  %v1765_v48 = vadd.f32 %v1764_v50, %v1651_v18  ;;  %vm8265_vm13 = vcmp.le.f32.partialorder %v1010_v36, 0.7853982 }
 0x145   : > { %v1878_v59 = vadd.f32 %v6637_v1, %v1757_v7  ;;  %v9599_v1 = vmov 1326507024  }
 0x146   : > { %v6048_v2 = vadd.s32 4294967169, %v1014_v51  ;;  %v6626_v44 = vpop.f32.mrf.mxu1  ;;  %v1871_v23 = vpop.f32.mrf.mxu0  ;;  %v1018_v25 = vor.u32 8388608, %v1017_v10 }
 0x147   : > { %v8120_v54 = vadd.f32 %v6626_v44, %v1672_v5  ;;  %v1872_v43 = vadd.f32 %v1871_v23, %v1749_v47 }
 0x148   : > { %v1020_v38 = vadd.s32 1, %v6048_v2  ;;  %v1780_v21 = vpop.f32.mrf.mxu1  ;;  %v6640_v8 = vpop.f32.mrf.mxu0  ;;  %v8130_v34 = vshll.u32 %v1018_v25, 8 }
 0x149   : > { %v8122_v26 = vadd.f32 %v1780_v21, %v1665_v27  ;;  %v8124_v29 = vadd.f32 %v6640_v8, %v1773_v41 }
 0x14a   : > { %vm1021_vm3 = vcmp.gt.s32.totalorder %v1020_v38, 0  ;;  %v1883_v22 = vpop.f32.mrf.mxu0  ;;  %v6654_v30 = vpop.f32.mrf.mxu1 }
 0x14b   : > { %v1022_v13 = vsel %vm1021_vm3, %v1020_v38, 0  ;;  %v8132_v60 = vadd.f32 %v1883_v22, %v1765_v48  ;;  %v8134_v40 = vadd.f32 %v6654_v30, %v1878_v59  ;;  %vm1102_vm3 = vweird.f32 %v8113_v15 }
 0x14c   : > { %v8126_v20 = vshrl.u32 %v1022_v13, 5  ;;  %v1024_v55 = vand.u32 31, %v1022_v13  ;;  %v1976_v56 = vpop.f32.mrf.mxu1 }
 0x14d   : > { %v8128_v12 = vpop.f32.mrf.mxu0  ;;  %v8136_v45 = vadd.f32 %v1976_v56, %v1872_v43 }
 0x14e   : > { %v1025_v24 = vsub.s32 32, %v1024_v55  ;;  %v1027_v37 = vshll.u32 %v9607_v61, %v1024_v55  ;;  %v1030_v42 = vshll.u32 %v9609_v62, %v1024_v55  ;;  %v1033_v31 = vshll.u32 %v9611_v46, %v1024_v55 }
 0x14f   : > { %v8141_v63 = vpop.f32.mrf.mxu0  ;;  %v7035_v32 = vpop.eup %7034  ;;  %v1036_v57 = vshll.u32 %v9603_v0, %v1024_v55  ;;  %v1039_v4 = vshll.u32 %v9601_v58, %v1024_v55  ;;  %vm1042_vm4 = vcmp.lt.s32.totalorder %v8126_v20, 1  ;;  %vm1043_vm5 = vcmp.lt.s32.totalorder %v8126_v20, 2 }
 0x150   : > { %v6657_v5 = vpop.f32.mrf.mxu1  ;;  %v8148_v6 = vmul.f32 %v7035_v32, %v8092_v49  ;;  %v8151_v14 = vmul.f32 %v7035_v32, %v8090_v35  ;;  %v8154_v27 = vmul.f32 %v7035_v32, %v8102_v16  ;;  %v1026_v28 = vshrl.u32 %v9607_v61, %v1025_v24 }
 0x151   : > { %v1028_v39 = vshrl.u32 %v9609_v62, %v1025_v24  ;;  %v1031_v41 = vshrl.u32 %v9611_v46, %v1025_v24  ;;  %v1034_v50 = vshrl.u32 %v9603_v0, %v1025_v24  ;;  %v1037_v51 = vshrl.u32 %v9601_v58, %v1025_v24 }
 0x152   : > { %v1988_v52 = vpop.f32.mrf.mxu1  ;;  %v1040_v49 = vshrl.u32 %v9599_v1, %v1025_v24  ;;  %vm1044_vm6 = vcmp.lt.s32.totalorder %v8126_v20, 3  ;;  %vm1045_vm7 = vcmp.lt.s32.totalorder %v8126_v20, 4  ;;  %v8166_v35 = vmul.f32 %v8151_v14, %v8148_v6  ;;  %v8168_v16 = vpop.f32.mrf.mxu0 }
 0x153   : > { %v1029_v10 = vor.u32 %v1028_v39, %v1027_v37  ;;  %v1032_v17 = vor.u32 %v1031_v41, %v1030_v42  ;;  %v1035_v2 = vor.u32 %v1034_v50, %v1033_v31  ;;  %v1038_v19 = vor.u32 %v1037_v51, %v1036_v57 }
 0x154   : > { %v1041_v11 = vor.u32 %v1040_v49, %v1039_v4  ;;  %v8172_v44 = vmul.f32 %v8154_v27, %v8148_v6  ;;  %v8176_v23 = vmul.f32 %v8154_v27, %v8151_v14  ;;  %v1224_v3 = vmul.f32 %v8154_v27, %v8154_v27  ;;  %v8180_v38 = vpop.f32.mrf.mxu1  ;;  %v8182_v18 = vpop.f32.mrf.mxu0 }
 0x155   : > { %v1046_v7 = vsel %vm1042_vm4, %v1026_v28, %v1029_v10  ;;  %v1047_v21 = vsel %vm1045_vm7, %v1035_v2, 2102212464  ;;  %v1050_v8 = vsel %vm1042_vm4, %v1029_v10, %v1032_v17  ;;  %v1051_v25 = vsel %vm1045_vm7, %v1038_v19, 920167782 }
 0x156   : > { %v1048_v47 = vsel %vm1044_vm6, %v1032_v17, %v1047_v21  ;;  %v1052_v22 = vsel %vm1044_vm6, %v1035_v2, %v1051_v25  ;;  %v1054_v30 = vsel %vm1042_vm4, %v1032_v17, %v1035_v2  ;;  %v1055_v13 = vsel %vm1045_vm7, %v1041_v11, 1326507024  ;;  %v8200_v48 = vpop.f32.mrf.mxu1  ;;  %v6674_v59 = vpop.f32.mrf.mxu0 }
 0x157   : > { %v1053_v43 = vsel %vm1043_vm5, %v1050_v8, %v1052_v22  ;;  %v1056_v55 = vsel %vm1044_vm6, %v1038_v19, %v1055_v13  ;;  %v1225_v56 = vsub.f32 0.0, %v1224_v3  ;;  %v2011_v24 = vadd.f32 1e-08, %v8134_v40 }
 0x158   : > { %v1049_v37 = vsel %vm1043_vm5, %v1046_v7, %v1048_v47  ;;  %v1057_v42 = vsel %vm1043_vm5, %v1054_v30, %v1056_v55  ;;  %v8212_v31 = vmul.u32.u64.low %v8130_v34, %v1053_v43  ;;  %v8213_v32 = vmul.u32.u64.high %v8130_v34, %v1053_v43, %v8212_v31  ;;  %v8215_v57 = vpop.f32.mrf.mxu0  ;;  %v6688_v4 = vpop.f32.mrf.mxu1 }
 0x159   : > { %v8218_v28 = vmul.u32.u64.low %v8130_v34, %v1057_v42  ;;  %v8219_v39 = vmul.u32.u64.high %v8130_v34, %v1057_v42, %v8218_v28  ;;  %v1226_v41 = vmul.f32 %v8151_v14, %v8151_v14  ;;  %v1237_v50 = vmul.f32 %v8148_v6, %v8148_v6 }
 0x15a   : > { %v2010_v20 = vadd.f32 1e-08, %v8136_v45  ;;  %v8227_v51 = vadd.f32 %v6657_v5, %v8124_v29  ;;  %v2596_v10 = vpop.f32.mrf.mxu1  ;;  %v8234_v11 = vadd.f32 %v1988_v52, %v8132_v60  ;;  %v1065_v3 = vmul.u32 %v8130_v34, %v1049_v37 }
 0x15b   : > { %v6677_v49 = vpop.f32.mrf.mxu0  ;;  %v8229_v17 = vsub.f32 %v1225_v56, %v1226_v41  ;;  %v8231_v2 = vsub.f32 %v1225_v56, %v1237_v50  ;;  %v1247_v19 = vsub.f32 0.0, %v1226_v41  ;;  %v1068_v7 = vadd.s32 1, %v8213_v32 }
 0x15c   : > { %v2013_v21 = vmul.f32 %v2010_v20, %v2010_v20  ;;  %vm1067_vm8 = vc.u32 %v8219_v39, %v8212_v31  ;;  %v2014_v29 = vmul.f32 %v2011_v24, %v2011_v24  ;;  %v2012_v5 = vadd.f32 1e-08, %v8234_v11 }
 0x15d   : > { %v2495_v8 = vpop.f32.mrf.mxu0  ;;  %v8240_v25 = vsub.f32 %v1247_v19, %v1237_v50  ;;  %v6691_v47 = vpop.f32.mrf.mxu1  ;;  %v1069_v22 = vsel %vm1067_vm8, %v1068_v7, %v8213_v32 }
 0x15e   : > { %v1070_v30 = vadd.s32 %v1069_v22, %v1065_v3  ;;  %v2015_v13 = vadd.f32 %v2014_v29, %v2013_v21  ;;  %v2016_v60 = vmul.f32 %v2012_v5, %v2012_v5  ;;  %v2615_v52 = vadd.f32 %v6691_v47, %v6674_v59 }
 0x15f   : > { %v2608_v43 = vpop.f32.mrf.mxu1 }
 0x160   : > { %v6705_v34 = vpop.f32.mrf.mxu0  ;;  %v1071_v55 = vadd.s32 536870912, %v1070_v30  ;;  %v2017_v56 = vadd.f32 %v2016_v60, %v2015_v13 }
 0x162   : > { %v6694_v37 = vpop.f32.mrf.mxu1  ;;  %v2706_v42 = vpop.f32.mrf.mxu0  ;;  %v1072_v28 = vshrl.u32 %v1071_v55, 30  ;;  %7036 = vrsqrt.f32 %v2017_v56  ;;  %vm2020_vm10 = vcmp.eq.f32.partialorder %v2017_v56, inf  ;;  %vm2022_vm11 = vcmp.eq.f32.partialorder %v2017_v56, 0.0 }
 0x163   : > { %v2627_v24 = vadd.f32 %v6694_v37, %v6677_v49  ;;  %v2603_v49 = vadd.f32 %v6688_v4, %v8168_v16 }
 0x164   : > { %v2620_v41 = vpop.f32.mrf.mxu1  ;;  %v6708_v20 = vpop.f32.mrf.mxu0  ;;  %v1073_v50 = vshll.u32 %v1072_v28, 30 }
 0x165   : > { %v2621_v19 = vadd.f32 %v2620_v41, %v2495_v8  ;;  %v2728_v1 = vadd.f32 %v6708_v20, %v2615_v52  ;;  %v1066_v8 = vadd.s32 %v8212_v31, %v8219_v39  ;;  %v2714_v20 = vadd.f32 %v6705_v34, %v2603_v49 }
 0x166   : > { %v2720_v58 = vpop.f32.mrf.mxu0  ;;  %v6722_v32 = vpop.f32.mrf.mxu1  ;;  %v1074_v3 = vsub.s32 %v1070_v30, %v1073_v50  ;;  %v2597_v30 = vadd.f32 %v2596_v10, %v8182_v18 }
 0x167   : > { %v2827_v31 = vadd.f32 %v6722_v32, %v2714_v20 }
 0x168   : > { %v2818_v21 = vpop.f32.mrf.mxu1  ;;  %v1076_v59 = vsub.s32 0, %v1074_v3 }
 0x169   : > { %v6711_v7 = vpop.f32.mrf.mxu0 }
 0x16a   : > { %v2742_v29 = vadd.f32 %v6711_v7, %v2627_v24  ;;  %v6049_v47 = vmin.u32 %v1076_v59, %v1074_v3  ;;  %v2609_v24 = vadd.f32 %v2608_v43, %v8215_v57  ;;  %v2707_v7 = vadd.f32 %v2706_v42, %v2597_v30 }
 0x16b   : > { %v2734_v5 = vpop.f32.mrf.mxu0  ;;  %v6725_v22 = vpop.f32.mrf.mxu1  ;;  %v1096_v59 = vsub.s32 4, %v1072_v28 }
 0x16c   : > { %v2735_v13 = vadd.f32 %v2734_v5, %v2621_v19  ;;  %v2843_v60 = vadd.f32 %v6725_v22, %v2728_v1  ;;  %v1078_v55 = vclz %v6049_v47  ;;  %v2023_v5 = vand.u32 2147483648, %v2017_v56 }
 0x16d   : > { %v2834_v0 = vpop.f32.mrf.mxu1 }
 0x16e   : > { %v6739_v37 = vpop.f32.mrf.mxu0  ;;  %v6050_v52 = vadd.s32 4294967294, %v1078_v55  ;;  %v2819_v55 = vadd.f32 %v2818_v21, %v2707_v7 }
 0x16f   : > { %v7037_v41 = vpop.eup %7036 }
 0x170   : > { %v6728_v50 = vpop.f32.mrf.mxu1  ;;  %v2941_v1 = vpop.f32.mrf.mxu0  ;;  %vm6051_vm12 = vcmp.lt.s32.totalorder %v6050_v52, 0  ;;  %v2019_v19 = vmul.f32 %v7037_v41, %v2017_v56  ;;  %v1097_v41 = vsel %vm1012_vm9, %v1096_v59, %v1072_v28 }
 0x171   : > { %v8248_v16 = vadd.f32 %v6728_v50, %v2742_v29  ;;  %v1081_v4 = vsel %vm6051_vm12, 0, %v6050_v52 }
 0x172   : > { %v2850_v39 = vpop.f32.mrf.mxu1  ;;  %v6742_v47 = vpop.f32.mrf.mxu0  ;;  %v1082_v18 = vsub.s32 32, %v1081_v4  ;;  %v1086_v10 = vsub.s32 4294967266, %v1081_v4  ;;  %v2021_v22 = vsel %vm2020_vm10, %v2017_v56, %v2019_v19  ;;  %v1083_v57 = vshll.u32 %v1074_v3, %v1081_v4 }
 0x173   : > { %9645 = vst [vmem:[#allocation8_spill] sm:$0xff] %v8248_v16  ;;  %v8252_v43 = vsel %vm2022_vm11, %v2023_v5, %v2021_v22  ;;  %v8254_v34 = vadd.f32 %v2850_v39, %v2735_v13  ;;  %v2960_v42 = vadd.f32 %v6742_v47, %v2843_v60  ;;  %v2948_v3 = vadd.f32 %v6739_v37, %v2827_v31 }
 0x174   : > { %v2953_v29 = vpop.f32.mrf.mxu0  ;;  %v6756_v49 = vpop.f32.mrf.mxu1  ;;  %v1084_v52 = vshrl.u32 %v1066_v8, %v1082_v18  ;;  %v1087_v30 = vadd.s32 127, %v1086_v10  ;;  %7038 = vrcp.f32 %v8252_v43  ;;  %v9605_v32 = vand.u32 2147483647, %v8252_v43 }
 0x175   : > { %9646 = vst [vmem:[#allocation9_spill] sm:$0xff] %v8254_v34  ;;  %v2033_v21 = vand.u32 2139095040, %v8252_v43  ;;  %v2721_v60 = vadd.f32 %v2720_v58, %v2609_v24  ;;  %v2942_v19 = vadd.f32 %v2941_v1, %v2819_v55  ;;  %v8271_v4 = vadd.f32 %v6756_v49, %v2948_v3 }
 0x176   : > { %v3046_v20 = vpop.f32.mrf.mxu1  ;;  %v1085_v13 = vor.u32 %v1084_v52, %v1083_v57  ;;  %v1088_v50 = vshll.u32 %v1087_v30, 23  ;;  %v2037_v28 = vand.u32 8388607, %v9605_v32  ;;  %v1099_v5 = vsel %vm8265_vm13, 0, %v1097_v41 }
 0x177   : > { %v8261_v56 = vpop.f32.mrf.mxu0  ;;  %v2034_v7 = vshrl.u32 %v2033_v21, 23  ;;  %9650 = vst [vmem:[#allocation11_spill] sm:$0xff] %v8271_v4  ;;  %v2835_v58 = vadd.f32 %v2834_v0, %v2721_v60  ;;  %v8277_v24 = vadd.f32 %v3046_v20, %v2942_v19  ;;  %v1103_v22 = vadd.s32 3, %v1099_v5 }
 0x178   : > { %9647 = vst [vmem:[#allocation10_spill] sm:$0xff] %v8261_v56  ;;  %v1089_v59 = vor.u32 4788187, %v1088_v50  ;;  %v1092_v47 = vcvt.s32.f32 %v1085_v13  ;;  %v2038_v55 = vor.u32 8388608, %v2037_v28  ;;  %v3081_v49 = vadd.f32 1e-08, %v8271_v4 }
 0x179   : > { %v8273_v37 = vpop.f32.mrf.mxu0  ;;  %9652 = vst [vmem:[#allocation13_spill] sm:$0xff] %v8277_v24  ;;  %v6759_v1 = vpop.f32.mrf.mxu1  ;;  %v6069_v36 = vadd.s32 4294967169, %v2034_v7  ;;  %v2954_v18 = vadd.f32 %v2953_v29, %v2835_v58  ;;  %v3080_v0 = vadd.f32 1e-08, %v8277_v24  ;;  %v8291_v29 = vand.u32 3, %v1099_v5 }
 0x17a   : > { %9651 = vst [vmem:[#allocation12_spill] sm:$0xff] %v8273_v37  ;;  %v8279_v31 = vadd.f32 %v6759_v1, %v2960_v42  ;;  %v1090_v39 = vand.u32 2147483647, %v1089_v59  ;;  %v8293_v13 = vand.u32 3, %v1103_v22  ;;  %v8295_v60 = vshll.u32 %v2038_v55, 8 }
 0x17b   : > { %v3058_v10 = vpop.f32.mrf.mxu1  ;;  %v2040_v57 = vadd.s32 1, %v6069_v36  ;;  %v8297_v19 = vmul.f32 %v3081_v49, %v3081_v49  ;;  %v8305_v1 = vmul.f32 %v3080_v0, %v3080_v0  ;;  %v9660_v32 = vmov 2102212464  }
 0x17c   : > { %9653 = vst [vmem:[#allocation14_spill] sm:$0xff] %v8279_v31  ;;  %v8282_v52 = vpop.f32.mrf.mxu0  ;;  %v1093_v30 = vmul.f32 %v1092_v47, %v1090_v39  ;;  %v8285_v41 = vadd.f32 %v3058_v10, %v2954_v18  ;;  %vm1209_vm4 = vcmp.eq.s32.totalorder %v8291_v29, 0  ;;  %vm1212_vm5 = vcmp.eq.s32.totalorder %v8291_v29, 2 }
 0x17d   : > { %vm2041_vm14 = vcmp.gt.s32.totalorder %v2040_v57, 0  ;;  %vm1109_vm6 = vcmp.eq.s32.totalorder %v8293_v13, 2  ;;  %vm1106_vm8 = vcmp.eq.s32.totalorder %v8293_v13, 0  ;;  %vm1208_vm10 = vcmp.lt.s32.totalorder %v8291_v29, 2 }
 0x17e   : > { %9654 = vst [vmem:[#allocation15_spill] sm:$0xff] %v8285_v41  ;;  %v8287_v21 = vpop.f32.mrf.mxu1  ;;  %v8289_v42 = vpop.f32.mrf.mxu0  ;;  %v1094_v3 = vxor.u32 2147483648, %v1093_v30  ;;  %v2042_v20 = vsel %vm2041_vm14, %v2040_v57, 0  ;;  %v3082_v5 = vadd.f32 1e-08, %v8285_v41  ;;  %vm2032_vm11 = vcmp.lt.s32.totalorder %v8252_v43, 0 }
 0x17f   : > { %9655 = vst [vmem:[#allocation16_spill] sm:$0xff] %v8287_v21  ;;  %v2044_v50 = vand.u32 31, %v2042_v20  ;;  %v2043_v58 = vshrl.u32 %v2042_v20, 5  ;;  %v9662_v21 = vmov 1326507024  }
 0x180   : > { %v8299_v7 = vpop.f32.mrf.mxu1  ;;  %v8301_v28 = vpop.f32.mrf.mxu0  ;;  %v1095_v59 = vsel %vm1012_vm9, %v1094_v3, %v1093_v30  ;;  %vm1105_vm9 = vcmp.lt.s32.totalorder %v8293_v13, 2 }
 0x181   : > { %9656 = vst [vmem:[#allocation17_spill] sm:$0xff] %v8299_v7  ;;  %v7039_v36 = vpop.eup %7038  ;;  %v1098_v39 = vsel %vm8265_vm13, %v8113_v15, %v1095_v59  ;;  %v2045_v47 = vsub.s32 32, %v2044_v50  ;;  %v2047_v18 = vshll.u32 %v9607_v61, %v2044_v50  ;;  %v2050_v10 = vshll.u32 %v9609_v62, %v2044_v50 }
 0x182   : > { %v8313_v22 = vpop.f32.mrf.mxu0  ;;  %v8315_v55 = vpop.f32.mrf.mxu1  ;;  %7040 = vcosq.f32 %v1098_v39  ;;  %v8318_v57 = vmul.f32 %v7039_v36, %v8136_v45  ;;  %v8321_v49 = vmul.f32 %v7039_v36, %v8134_v40  ;;  %v8324_v30 = vmul.f32 %v7039_v36, %v8234_v11 }
 0x183   : > { %7042 = vsinq.f32 %v1098_v39  ;;  %v2046_v8 = vshrl.u32 %v9607_v61, %v2045_v47  ;;  %v2048_v0 = vshrl.u32 %v9609_v62, %v2045_v47  ;;  %v2051_v3 = vshrl.u32 %v9611_v46, %v2045_v47 }
 0x184   : > { %9657 = vst [vmem:[#allocation18_spill] sm:$0xff] %v8318_v57  ;;  %9658 = vst [vmem:[#allocation19_spill] sm:$0xff] %v8321_v49  ;;  %v8331_v59 = vpop.f32.mrf.mxu1  ;;  %v2053_v45 = vshll.u32 %v9611_v46, %v2044_v50  ;;  %v2054_v31 = vshrl.u32 %v9660_v32, %v2045_v47  ;;  %v2056_v40 = vshll.u32 %v9660_v32, %v2044_v50  ;;  %v9661_v7 = vmov 920167782  }
 0x185   : > { %9659 = vst [vmem:[#allocation20_spill] sm:$0xff] %v8324_v30  ;;  %v8329_v20 = vpop.f32.mrf.mxu0  ;;  %v2057_v11 = vshrl.u32 %v9661_v7, %v2045_v47  ;;  %v2049_v36 = vor.u32 %v2048_v0, %v2047_v18  ;;  %v2052_v39 = vor.u32 %v2051_v3, %v2050_v10  ;;  %v2059_v61 = vshll.u32 %v9661_v7, %v2044_v50 }
 0x186   : > { %v2060_v62 = vshrl.u32 %v9662_v21, %v2045_v47  ;;  %v2055_v34 = vor.u32 %v2054_v31, %v2053_v45  ;;  %vm2062_vm15 = vcmp.lt.s32.totalorder %v2043_v58, 1  ;;  %vm2063_vm0 = vcmp.lt.s32.totalorder %v2043_v58, 2 }
 0x187   : > { %v8339_v37 = vpop.f32.mrf.mxu0  ;;  %v2058_v56 = vor.u32 %v2057_v11, %v2056_v40  ;;  %v6793_v16 = vpop.f32.mrf.mxu1  ;;  %vm2064_vm1 = vcmp.lt.s32.totalorder %v2043_v58, 3  ;;  %vm2065_vm2 = vcmp.lt.s32.totalorder %v2043_v58, 4  ;;  %v2066_v41 = vsel %vm2062_vm15, %v2046_v8, %v2049_v36 }
 0x188   : > { %v2061_v46 = vor.u32 %v2060_v62, %v2059_v61  ;;  %v2067_v32 = vsel %vm2065_vm2, %v2055_v34, 2102212464  ;;  %v2070_v4 = vsel %vm2062_vm15, %v2049_v36, %v2052_v39  ;;  %v2074_v18 = vsel %vm2062_vm15, %v2052_v39, %v2055_v34 }
 0x189   : > { %v2071_v24 = vsel %vm2065_vm2, %v2058_v56, 920167782  ;;  %v8341_v10 = vpop.f32.mrf.mxu1  ;;  %v2068_v50 = vsel %vm2064_vm1, %v2052_v39, %v2067_v32  ;;  %v8345_v31 = vmul.f32 %v8321_v49, %v8318_v57  ;;  %v8352_v8 = vmul.f32 %v8324_v30, %v8318_v57 }
 0x18a   : > { %v2072_v0 = vsel %vm2064_vm1, %v2055_v34, %v2071_v24  ;;  %v2075_v47 = vsel %vm2065_vm2, %v2061_v46, 1326507024  ;;  %v8347_v3 = vpop.f32.mrf.mxu0  ;;  %v3086_v45 = vmul.f32 %v3082_v5, %v3082_v5  ;;  %v2069_v40 = vsel %vm2063_vm0, %v2066_v41, %v2068_v50 }
 0x18b   : > { %9663 = vst [vmem:[#allocation21_spill] sm:$0xff] %v8345_v31  ;;  %v2073_v61 = vsel %vm2063_vm0, %v2070_v4, %v2072_v0  ;;  %v2076_v62 = vsel %vm2064_vm1, %v2058_v56, %v2075_v47  ;;  %9664 = vst [vmem:[#allocation22_spill] sm:$0xff] %v8352_v8  ;;  %v8369_v36 = vmul.f32 %v8324_v30, %v8321_v49 }
 0x18c   : > { %v2077_v32 = vsel %vm2063_vm0, %v2074_v18, %v2076_v62  ;;  %v8357_v46 = vmul.u32.u64.low %v8295_v60, %v2073_v61  ;;  %v8358_v34 = vmul.u32.u64.high %v8295_v60, %v2073_v61, %v8357_v46  ;;  %v6796_v24 = vpop.f32.mrf.mxu1  ;;  %v8361_v11 = vpop.f32.mrf.mxu0  ;;  %v2244_v41 = vmul.f32 %v8324_v30, %v8324_v30 }
 0x18d   : > { %v8364_v4 = vmul.u32.u64.low %v8295_v60, %v2077_v32  ;;  %v8365_v56 = vmul.u32.u64.high %v8295_v60, %v2077_v32, %v8364_v4  ;;  %9665 = vst [vmem:[#allocation23_spill] sm:$0xff] %v8369_v36  ;;  %v2246_v58 = vmul.f32 %v8321_v49, %v8321_v49  ;;  %v3085_v50 = vadd.f32 %v8297_v19, %v8305_v1 }
 0x18e   : > { %v3690_v5 = vpop.f32.mrf.mxu1  ;;  %v6810_v39 = vpop.f32.mrf.mxu0  ;;  %v2245_v18 = vsub.f32 0.0, %v2244_v41  ;;  %v3685_v0 = vadd.f32 %v6793_v16, %v8301_v28  ;;  %v2085_v61 = vmul.u32 %v8295_v60, %v2069_v40  ;;  %v2088_v62 = vadd.s32 1, %v8358_v34 }
 0x18f   : > { %v7041_v47 = vpop.eup %7040  ;;  %v2257_v32 = vmul.f32 %v8318_v57, %v8318_v57  ;;  %v2267_v4 = vsub.f32 0.0, %v2246_v58  ;;  %vm2087_vm7 = vc.u32 %v8365_v56, %v8357_v46  ;;  %v8394_v16 = vadd.f32 %v3086_v45, %v3085_v50 }
 0x190   : > { %v8386_v36 = vpop.f32.mrf.mxu0  ;;  %v8388_v8 = vpop.f32.mrf.mxu1  ;;  %v1110_v41 = vxor.u32 2147483648, %v7041_v47  ;;  %v8392_v19 = vsub.f32 %v2245_v18, %v2246_v58  ;;  %v2089_v28 = vsel %vm2087_vm7, %v2088_v62, %v8358_v34  ;;  %v8427_v29 = vadd.f32 %v3690_v5, %v8339_v37 }
 0x191   : > { %v7043_v31 = vpop.eup %7042  ;;  %v8397_v1 = vsub.f32 %v2245_v18, %v2257_v32  ;;  %v8399_v40 = vsub.f32 %v2267_v4, %v2257_v32  ;;  %v2090_v58 = vadd.s32 %v2089_v28, %v2085_v61  ;;  %7044 = vrsqrt.f32 %v8394_v16 }
 0x192   : > { %9666 = vst [vmem:[#allocation24_spill] sm:$0xff] %v8392_v19  ;;  %v1107_v60 = vxor.u32 2147483648, %v7043_v31  ;;  %v8403_v30 = vpop.f32.mrf.mxu1  ;;  %v1111_v49 = vsel %vm1109_vm6, %v1110_v41, %v7043_v31  ;;  %v1214_v45 = vsel %vm1212_vm5, %v1110_v41, %v7043_v31  ;;  %v1902_v41 = vadd.f32 %v8128_v12, %v8120_v54  ;;  %v1274_v54 = vld [vmem:[#allocation3] sm:$0xff] }
 0x193   : > { %9667 = vst [vmem:[#allocation25_spill] sm:$0xff] %v8397_v1  ;;  %9668 = vst [vmem:[#allocation26_spill] sm:$0xff] %v8399_v40  ;;  %v8401_v57 = vpop.f32.mrf.mxu0  ;;  %v2091_v4 = vadd.s32 536870912, %v2090_v58  ;;  %v8417_v40 = vadd.f32 %v6796_v24, %v8329_v20  ;;  %v8438_v28 = vadd.f32 %v6810_v39, %v3685_v0  ;;  %vm3090_vm12 = vcmp.eq.f32.partialorder %v8394_v16, inf }
 0x194   : > { %v1108_v34 = vsel %vm1106_vm8, %v7041_v47, %v1107_v60  ;;  %v1211_v18 = vsel %vm1209_vm4, %v7041_v47, %v1107_v60  ;;  %vm3092_vm13 = vcmp.eq.f32.partialorder %v8394_v16, 0.0 }
 0x195   : > { %v8414_v50 = vpop.f32.mrf.mxu0  ;;  %v1112_v62 = vsel %vm1105_vm9, %v1108_v34, %v1111_v49  ;;  %v1215_v32 = vsel %vm1208_vm10, %v1211_v18, %v1214_v45  ;;  %v8419_v1 = vpop.f32.mrf.mxu1  ;;  %v8435_v60 = vshrl.u32 %v2091_v4, 30 }
 0x196   : > { %v1113_v31 = vsel %vm1102_vm3, nan, %v1112_v62  ;;  %v1216_v13 = vsel %vm1102_vm3, nan, %v1215_v32 }
 0x197   : > { %v1217_v49 = vsub.f32 1.0, %v1216_v13  ;;  %v1230_v47 = vsub.f32 0.0, %v1113_v31  ;;  %v1235_v61 = vmul.f32 %v1113_v31, %v8154_v27  ;;  %v1245_v20 = vmul.f32 %v1113_v31, %v8148_v6  ;;  %v8431_v24 = vpop.f32.mrf.mxu1 }
 0x198   : > { %v1233_v15 = vmul.f32 %v1113_v31, %v8151_v14  ;;  %v8440_v37 = vpop.f32.mrf.mxu0  ;;  %v2093_v0 = vshll.u32 %v8435_v60, 30 }
 0x199   : > { %v1219_v5 = vmul.f32 %v8166_v35, %v1217_v49  ;;  %v1221_v45 = vmul.f32 %v8172_v44, %v1217_v49  ;;  %v1223_v34 = vmul.f32 %v8176_v23, %v1217_v49  ;;  %v1231_v18 = vmul.f32 %v1230_v47, %v8154_v27 }
 0x19a   : > { %v1239_v62 = vmul.f32 %v8231_v2, %v1217_v49  ;;  %v1228_v12 = vmul.f32 %v8229_v17, %v1217_v49  ;;  %v1243_v39 = vmul.f32 %v1230_v47, %v8151_v14  ;;  %v8451_v35 = vpop.f32.mrf.mxu1  ;;  %v8453_v44 = vpop.f32.mrf.mxu0  ;;  %v1896_v17 = vadd.f32 %v8141_v63, %v8122_v26 }
 0x19b   : > { %v8455_v23 = vadd.f32 %v1231_v18, %v1219_v5  ;;  %v8457_v27 = vadd.f32 %v1235_v61, %v1219_v5  ;;  %v8459_v2 = vadd.f32 %v1245_v20, %v1223_v34  ;;  %v8469_v31 = vsub.s32 %v2090_v58, %v2093_v0 }
 0x19c   : > { %v8463_v14 = vadd.f32 1.0, %v1239_v62  ;;  %v8465_v32 = vadd.f32 1.0, %v1228_v12  ;;  %v8467_v4 = vadd.f32 %v1243_v39, %v1221_v45  ;;  %v8471_v13 = vpop.f32.mrf.mxu1  ;;  %v8473_v18 = vpop.f32.mrf.mxu0  ;;  %v2007_v61 = vadd.f32 %v8180_v38, %v1902_v41 }
 0x19d   : > { %9670 = vst [vmem:[#allocation28_spill] sm:$0xff] %v8473_v18  ;;  %6056 = vst [vmem:[%s8098_s21 + $0x28] sm:$0xff] %v8455_v23  ;;  %v1275_v26 = vmul.f32 %v1274_v54, %v8455_v23  ;;  %v1282_v63 = vmul.f32 %v1274_v54, %v8459_v2  ;;  %v2096_v5 = vsub.s32 0, %v8469_v31  ;;  %v2001_v62 = vadd.f32 %v8200_v48, %v1896_v17 }
 0x19e   : > { %9669 = vst [vmem:[#allocation27_spill] sm:$0xff] %v8465_v32  ;;  %6059 = vst [vmem:[%s8098_s21 + $0xa0] sm:$0xff] %v8457_v27  ;;  %v1278_v58 = vmul.f32 %v1274_v54, %v8463_v14  ;;  %v2286_v20 = vmul.f32 %v8227_v51, %v8465_v32  ;;  %v8495_v12 = vpop.f32.mrf.mxu0  ;;  %v8497_v38 = vpop.f32.mrf.mxu1  ;;  %v8501_v39 = vadd.f32 %v1233_v15, %v1221_v45 }
 0x19f   : > { %6064 = vst [vmem:[%s8098_s21 + $0x168] sm:$0xff] %v8459_v2  ;;  %6060 = vst [vmem:[%s8098_s21 + $0xc8] sm:$0xff] %v8463_v14  ;;  %v1276_v41 = vadd.f32 %v1275_v26, %v8096_v53  ;;  %v1283_v54 = vadd.f32 %v1282_v63, %v8105_v9  ;;  %v3673_v0 = vadd.f32 %v8315_v55, %v8282_v52  ;;  %v9673_v63 = vand.u32 2147483647, %v8252_v43 }
 0x1a0   : > { %1251 = vst [vmem:[%s8098_s21] sm:$0xff] %v8465_v32  ;;  %6063 = vst [vmem:[%s8098_s21 + $0x140] sm:$0xff] %v8467_v4  ;;  %v1279_v18 = vadd.f32 %v1278_v58, %v8109_v33  ;;  %v6070_v32 = vmin.u32 %v2096_v5, %v8469_v31  ;;  %v3667_v48 = vadd.f32 %v8331_v59, %v8289_v42  ;;  %v8513_v19 = vpop.f32.mrf.mxu1  ;;  %v9691_v58 = vld [vmem:[#allocation15_spill] sm:$0xff] }
 0x1a1   : > { %v8511_v17 = vadd.f32 %v8341_v10, %v8313_v22  ;;  %1277 = vst [vmem:[%s8517_s25] sm:$0xff] %v1276_v41  ;;  %6068 = vst [vmem:[%s8517_s25 + $0x50] sm:$0xff] %v1283_v54  ;;  %v1241_v52 = vmul.f32 %v1230_v47, %v8148_v6  ;;  %v1249_v55 = vmul.f32 %v8240_v25, %v1217_v49  ;;  %v8533_v6 = vpop.f32.mrf.mxu0  ;;  %v7045_v25 = vpop.eup %7044  ;;  %vm8549_vm14 = vcmp.le.f32.partialorder %v9673_v63, 0.7853982 }
 0x1a2   : > { %6057 = vst [vmem:[%s8098_s21 + $0x50] sm:$0xff] %v8501_v39  ;;  %v2289_v42 = vmul.f32 %v2007_v61, %v8501_v39  ;;  %v2287_v22 = vmul.f32 %v2001_v62, %v8455_v23  ;;  %6067 = vst [vmem:[%s8517_s25 + $0x28] sm:$0xff] %v1279_v18  ;;  %v2086_v59 = vadd.s32 %v8357_v46, %v8365_v56  ;;  %v2098_v10 = vclz %v6070_v32 }
 0x1a3   : > { %9671 = vst [vmem:[#allocation29_spill] sm:$0xff] %v8533_v6  ;;  %v2307_v49 = vmul.f32 %v8227_v51, %v8457_v27  ;;  %v8537_v47 = vadd.f32 %v1241_v52, %v1223_v34  ;;  %v8539_v15 = vadd.f32 1.0, %v1249_v55  ;;  %v8541_v18 = vpop.f32.mrf.mxu1  ;;  %v2328_v46 = vmul.f32 %v8227_v51, %v8467_v4  ;;  %v8565_v52 = vpop.f32.mrf.mxu0 }
 0x1a4   : > { %v2288_v45 = vadd.f32 %v2287_v22, %v2286_v20  ;;  %9672 = vst [vmem:[#allocation30_spill] sm:$0xff] %v8541_v18  ;;  %v6071_v56 = vadd.s32 4294967294, %v2098_v10  ;;  %v3093_v32 = vand.u32 2147483648, %v8394_v16  ;;  %v3784_v26 = vadd.f32 %v8347_v3, %v3673_v0  ;;  %9676 = vst [vmem:[#allocation31_spill] sm:$0xff] %v8565_v52 }
 0x1a5   : > { %6061 = vst [vmem:[%s8098_s21 + $0xf0] sm:$0xff] %v8537_v47  ;;  %6065 = vst [vmem:[%s8098_s21 + $0x190] sm:$0xff] %v8539_v15  ;;  %v2310_v34 = vmul.f32 %v2007_v61, %v8537_v47  ;;  %v2331_v20 = vmul.f32 %v2007_v61, %v8539_v15  ;;  %v2308_v5 = vmul.f32 %v2001_v62, %v8463_v14  ;;  %v8560_v41 = vpop.f32.mrf.mxu1  ;;  %v2116_v3 = vsub.s32 4, %v8435_v60 }
 0x1a6   : > { %v2290_v51 = vadd.f32 %v2289_v42, %v2288_v45  ;;  %vm6072_vm15 = vcmp.lt.s32.totalorder %v6071_v56, 0  ;;  %v2329_v54 = vmul.f32 %v2001_v62, %v8459_v2  ;;  %v3089_v0 = vmul.f32 %v7045_v25, %v8394_v16 }
 0x1a7   : > { %v2101_v55 = vsel %vm6072_vm15, 0, %v6071_v56  ;;  %v2309_v61 = vadd.f32 %v2308_v5, %v2307_v49  ;;  %v3812_v42 = vadd.f32 %v8401_v57, %v8417_v40  ;;  %v3777_v18 = vadd.f32 %v8361_v11, %v3667_v48  ;;  %v8587_v48 = vpop.f32.mrf.mxu0 }
 0x1a8   : > { %v8568_v22 = vadd.f32 %v2290_v51, %v8096_v53  ;;  %v2102_v10 = vsub.s32 32, %v2101_v55  ;;  %v2106_v45 = vsub.s32 4294967266, %v2101_v55  ;;  %v2330_v63 = vadd.f32 %v2329_v54, %v2328_v46  ;;  %v8573_v6 = vpop.f32.mrf.mxu1 }
 0x1a9   : > { %9677 = vst [vmem:[#allocation32_spill] sm:$0xff] %v8573_v6  ;;  %v2103_v62 = vshll.u32 %v8469_v31, %v2101_v55  ;;  %v2311_v25 = vadd.f32 %v2310_v34, %v2309_v61  ;;  %v3091_v53 = vsel %vm3090_vm12, %v8394_v16, %v3089_v0  ;;  %v3805_v49 = vadd.f32 %v8414_v50, %v8427_v29  ;;  %v8621_v55 = vpop.f32.mrf.mxu0 }
 0x1aa   : > { %6079 = vst [vmem:[%s8098_s21 + $0x80] sm:$0xff] %v8568_v22  ;;  %v2104_v57 = vshrl.u32 %v2086_v59, %v2102_v10  ;;  %v2107_v40 = vadd.s32 127, %v2106_v45  ;;  %v2332_v46 = vadd.f32 %v2331_v20, %v2330_v63  ;;  %v8585_v11 = vsel %vm3092_vm13, %v3093_v32, %v3091_v53  ;;  %v8589_v31 = vpop.f32.mrf.mxu1 }
 0x1ab   : > { %9678 = vst [vmem:[#allocation33_spill] sm:$0xff] %v8589_v31  ;;  %v2117_v56 = vsel %vm2032_vm11, %v2116_v3, %v8435_v60  ;;  %v8595_v34 = vadd.f32 %v2311_v25, %v8109_v33  ;;  %7046 = vrcp.f32 %v8585_v11  ;;  %v9625_v50 = vand.u32 2147483647, %v8585_v11 }
 0x1ac   : > { %v2105_v29 = vor.u32 %v2104_v57, %v2103_v62  ;;  %v2108_v16 = vshll.u32 %v2107_v40, 23  ;;  %v8600_v59 = vadd.f32 %v2332_v46, %v8105_v9  ;;  %v3103_v32 = vand.u32 2139095040, %v8585_v11  ;;  %v8603_v20 = vpop.f32.mrf.mxu1 }
 0x1ad   : > { %6083 = vst [vmem:[%s8098_s21 + $0x120] sm:$0xff] %v8595_v34  ;;  %v3107_v60 = vand.u32 8388607, %v9625_v50  ;;  %v3791_v33 = vadd.f32 %v8386_v36, %v8511_v17  ;;  %v3897_v51 = vadd.f32 %v8388_v8, %v3784_v26  ;;  %v8614_v5 = vadd.f32 %v8419_v1, %v8438_v28 }
 0x1ae   : > { %v2109_v9 = vor.u32 4788187, %v2108_v16  ;;  %v2119_v3 = vsel %vm8549_vm14, 0, %v2117_v56  ;;  %6087 = vst [vmem:[%s8098_s21 + $0x1c0] sm:$0xff] %v8600_v59  ;;  %v3104_v54 = vshrl.u32 %v3103_v32, 23  ;;  %v3889_v0 = vadd.f32 %v8403_v30, %v3777_v18  ;;  %v8632_v45 = vpop.f32.mrf.mxu1 }
 0x1af   : > { %9679 = vst [vmem:[#allocation34_spill] sm:$0xff] %v8614_v5  ;;  %v2112_v61 = vcvt.s32.f32 %v2105_v29  ;;  %v3905_v36 = vadd.f32 %v8431_v24, %v3791_v33  ;;  %v4018_v8 = vadd.f32 %v8440_v37, %v3897_v51  ;;  %v8626_v17 = vadd.f32 %v8451_v35, %v3812_v42  ;;  %v6878_v42 = vpop.f32.mrf.mxu0 }
 0x1b0   : > { %v2110_v1 = vand.u32 2147483647, %v2109_v9  ;;  %v6090_v28 = vadd.s32 4294967169, %v3104_v54  ;;  %v4012_v26 = vadd.f32 %v8453_v44, %v3889_v0  ;;  %v8630_v10 = vadd.f32 %v8471_v13, %v3805_v49 }
 0x1b1   : > { %9680 = vst [vmem:[#allocation35_spill] sm:$0xff] %v8626_v17  ;;  %v2123_v30 = vadd.s32 3, %v2119_v3  ;;  %v3108_v18 = vor.u32 8388608, %v3107_v60  ;;  %v4024_v63 = vadd.f32 %v8495_v12, %v3905_v36  ;;  %v8636_v24 = vadd.f32 %v8497_v38, %v4018_v8  ;;  %v6895_v49 = vpop.f32.mrf.mxu1  ;;  %v8657_v29 = vpop.f32.mrf.mxu0  ;;  %v9687_v36 = vld [vmem:[#allocation13_spill] sm:$0xff] }
 0x1b2   : > { %9681 = vst [vmem:[#allocation36_spill] sm:$0xff] %v8630_v10  ;;  %v2113_v37 = vmul.f32 %v2112_v61, %v2110_v1  ;;  %v3110_v62 = vadd.s32 1, %v6090_v28  ;;  %v8639_v35 = vadd.f32 %v8513_v19, %v4012_v26  ;;  %v8648_v38 = vand.u32 3, %v2119_v3  ;;  %v9689_v1 = vld [vmem:[#allocation11_spill] sm:$0xff] }
 0x1b3   : > { %9682 = vst [vmem:[#allocation37_spill] sm:$0xff] %v8636_v24  ;;  %v4151_v44 = vadd.f32 1e-08, %v8636_v24  ;;  %v8643_v13 = vadd.f32 %v8560_v41, %v4024_v63  ;;  %v8646_v12 = vand.u32 3, %v2123_v30  ;;  %v8650_v40 = vshll.u32 %v3108_v18, 8 }
 0x1b4   : > { %9683 = vst [vmem:[#allocation38_spill] sm:$0xff] %v8639_v35  ;;  %v2114_v25 = vxor.u32 2147483648, %v2113_v37  ;;  %vm3111_vm0 = vcmp.gt.s32.totalorder %v3110_v62, 0  ;;  %v4150_v53 = vadd.f32 1e-08, %v8639_v35  ;;  %v8664_v33 = vadd.f32 %v6895_v49, %v6878_v42  ;;  %v6881_v42 = vpop.f32.mrf.mxu0 }
 0x1b5   : > { %9684 = vst [vmem:[#allocation39_spill] sm:$0xff] %v8643_v13  ;;  %v3112_v57 = vsel %vm3111_vm0, %v3110_v62, 0  ;;  %v8654_v56 = vmul.f32 %v4151_v44, %v4151_v44  ;;  %v4152_v41 = vadd.f32 1e-08, %v8643_v13  ;;  %v9685_v3 = vmov 683565275  }
 0x1b6   : > { %v2115_v19 = vsel %vm2032_vm11, %v2114_v25, %v2113_v37  ;;  %v3114_v46 = vand.u32 31, %v3112_v57  ;;  %v3113_v32 = vshrl.u32 %v3112_v57, 5  ;;  %v8662_v60 = vmul.f32 %v4150_v53, %v4150_v53  ;;  %v4635_v24 = vpop.f32.mrf.mxu0 }
 0x1b7   : > { %v2118_v16 = vsel %vm8549_vm14, %v8252_v43, %v2115_v19  ;;  %v9686_v0 = vmov 2475754826   ;;  %v9693_v63 = vmov 2131351028   ;;  %v9694_v44 = vmov 2102212464   ;;  %v8685_v19 = vpop.f32.mrf.mxu1 }
 0x1b8   : > { %v7047_v51 = vpop.eup %7046  ;;  %7048 = vcosq.f32 %v2118_v16  ;;  %v3115_v9 = vsub.s32 32, %v3114_v46  ;;  %v3117_v54 = vshll.u32 %v9685_v3, %v3114_v46  ;;  %v3120_v61 = vshll.u32 %v9686_v0, %v3114_v46 }
 0x1b9   : > { %7050 = vsinq.f32 %v2118_v16  ;;  %v8669_v8 = vmul.f32 %v7047_v51, %v9687_v36  ;;  %v8672_v28 = vmul.f32 %v7047_v51, %v9689_v1  ;;  %v8675_v26 = vmul.f32 %v7047_v51, %v9691_v58 }
 0x1ba   : > { %v3116_v30 = vshrl.u32 %v9685_v3, %v3115_v9  ;;  %v3118_v18 = vshrl.u32 %v9686_v0, %v3115_v9  ;;  %v3121_v37 = vshrl.u32 %v9693_v63, %v3115_v9  ;;  %v3123_v62 = vshll.u32 %v9693_v63, %v3114_v46 }
 0x1bb   : > { %9688 = vst [vmem:[#allocation13_spill] sm:$0xff] %v8669_v8  ;;  %9690 = vst [vmem:[#allocation11_spill] sm:$0xff] %v8672_v28  ;;  %v3124_v25 = vshrl.u32 %v9694_v44, %v3115_v9  ;;  %v3126_v53 = vshll.u32 %v9694_v44, %v3114_v46  ;;  %v3127_v49 = vshrl.u32 %v9661_v7, %v3115_v9  ;;  %vm3132_vm1 = vcmp.lt.s32.totalorder %v3113_v32, 1 }
 0x1bc   : > { %9692 = vst [vmem:[#allocation15_spill] sm:$0xff] %v8675_v26  ;;  %v3129_v57 = vshll.u32 %v9661_v7, %v3114_v46  ;;  %v3119_v16 = vor.u32 %v3118_v18, %v3117_v54  ;;  %v3122_v51 = vor.u32 %v3121_v37, %v3120_v61  ;;  %v3130_v36 = vshrl.u32 %v9662_v21, %v3115_v9  ;;  %v6898_v9 = vpop.f32.mrf.mxu1 }
 0x1bd   : > { %v3125_v1 = vor.u32 %v3124_v25, %v3123_v62  ;;  %v3128_v58 = vor.u32 %v3127_v49, %v3126_v53  ;;  %vm3133_vm2 = vcmp.lt.s32.totalorder %v3113_v32, 2  ;;  %vm3134_vm3 = vcmp.lt.s32.totalorder %v3113_v32, 3 }
 0x1be   : > { %v3131_v50 = vor.u32 %v3130_v36, %v3129_v57  ;;  %vm3135_vm4 = vcmp.lt.s32.totalorder %v3113_v32, 4  ;;  %v3136_v35 = vsel %vm3132_vm1, %v3116_v30, %v3119_v16  ;;  %v3140_v13 = vsel %vm3132_vm1, %v3119_v16, %v3122_v51  ;;  %v4760_v32 = vpop.f32.mrf.mxu1 }
 0x1bf   : > { %vm2232_vm5 = vcmp.eq.s32.totalorder %v8648_v38, 2  ;;  %v3137_v31 = vsel %vm3135_vm4, %v3125_v1, 2102212464  ;;  %v3141_v46 = vsel %vm3135_vm4, %v3128_v58, 920167782  ;;  %v3144_v6 = vsel %vm3132_vm1, %v3122_v51, %v3125_v1 }
 0x1c0   : > { %v8691_v54 = vmul.f32 %v8672_v28, %v8669_v8  ;;  %vm2229_vm6 = vcmp.eq.s32.totalorder %v8648_v38, 0  ;;  %v3138_v61 = vsel %vm3134_vm3, %v3122_v51, %v3137_v31  ;;  %v3142_v18 = vsel %vm3134_vm3, %v3125_v1, %v3141_v46  ;;  %v8714_v51 = vpop.f32.mrf.mxu0 }
 0x1c1   : > { %v3145_v37 = vsel %vm3135_vm4, %v3131_v50, 1326507024  ;;  %v8698_v30 = vmul.f32 %v8675_v26, %v8669_v8  ;;  %vm2228_vm7 = vcmp.lt.s32.totalorder %v8648_v38, 2  ;;  %v3139_v62 = vsel %vm3133_vm2, %v3136_v35, %v3138_v61 }
 0x1c2   : > { %9695 = vst [vmem:[#allocation40_spill] sm:$0xff] %v8691_v54  ;;  %v3143_v25 = vsel %vm3133_vm2, %v3140_v13, %v3142_v18  ;;  %v3146_v53 = vsel %vm3134_vm3, %v3128_v58, %v3145_v37  ;;  %v8706_v49 = vmul.f32 %v8675_v26, %v8672_v28  ;;  %v4156_v16 = vmul.f32 %v4152_v41, %v4152_v41 }
 0x1c3   : > { %9696 = vst [vmem:[#allocation41_spill] sm:$0xff] %v8698_v30  ;;  %v3147_v31 = vsel %vm3133_vm2, %v3144_v6, %v3146_v53  ;;  %v8710_v50 = vmul.u32.u64.low %v8650_v40, %v3143_v25  ;;  %v8711_v57 = vmul.u32.u64.high %v8650_v40, %v3143_v25, %v8710_v50  ;;  %v3314_v13 = vmul.f32 %v8675_v26, %v8675_v26  ;;  %v2346_v26 = vld [vmem:[#allocation3 + $0x8] sm:$0xff] }
 0x1c4   : > { %9697 = vst [vmem:[#allocation42_spill] sm:$0xff] %v8706_v49  ;;  %v8717_v35 = vmul.u32.u64.low %v8650_v40, %v3147_v31  ;;  %v8718_v36 = vmul.u32.u64.high %v8650_v40, %v3147_v31, %v8717_v35  ;;  %v3316_v1 = vmul.f32 %v8672_v28, %v8672_v28  ;;  %vm2125_vm8 = vcmp.lt.s32.totalorder %v8646_v12, 2 }
 0x1c5   : > { %vm2126_vm9 = vcmp.eq.s32.totalorder %v8646_v12, 0  ;;  %vm2129_vm10 = vcmp.eq.s32.totalorder %v8646_v12, 2  ;;  %v3155_v6 = vmul.u32 %v8650_v40, %v3139_v62  ;;  %v7049_v41 = vpop.eup %7048  ;;  %v3315_v58 = vsub.f32 0.0, %v3314_v13  ;;  %v8735_v35 = vpop.f32.mrf.mxu0 }
 0x1c6   : > { %v3337_v46 = vsub.f32 0.0, %v3316_v1  ;;  %v4155_v61 = vadd.f32 %v8654_v56, %v8662_v60  ;;  %v8730_v18 = vadd.f32 %v6898_v9, %v6881_v42  ;;  %v7051_v37 = vpop.eup %7050  ;;  %v2130_v25 = vxor.u32 2147483648, %v7049_v41 }
 0x1c7   : > { %v3158_v53 = vadd.s32 1, %v8711_v57  ;;  %v3327_v31 = vmul.f32 %v8669_v8, %v8669_v8  ;;  %v8737_v52 = vadd.f32 %v4760_v32, %v4635_v24  ;;  %v2127_v40 = vxor.u32 2147483648, %v7051_v37  ;;  %v9709_v8 = vld [vmem:[#allocation26_spill] sm:$0xff] }
 0x1c8   : > { %vm3157_vm11 = vc.u32 %v8718_v36, %v8710_v50  ;;  %v8741_v62 = vsub.f32 %v3315_v58, %v3316_v1  ;;  %v8743_v56 = vadd.f32 %v4156_v16, %v4155_v61  ;;  %v2131_v60 = vsel %vm2129_vm10, %v2130_v25, %v7051_v37 }
 0x1c9   : > { %v2234_v42 = vsel %vm2232_vm5, %v2130_v25, %v7051_v37  ;;  %v3159_v9 = vsel %vm3157_vm11, %v3158_v53, %v8711_v57  ;;  %v8750_v13 = vsub.f32 %v3315_v58, %v3327_v31  ;;  %v2128_v24 = vsel %vm2126_vm9, %v7049_v41, %v2127_v40  ;;  %v6912_v58 = vpop.f32.mrf.mxu0 }
 0x1ca   : > { %9698 = vst [vmem:[#allocation43_spill] sm:$0xff] %v8741_v62  ;;  %v2231_v32 = vsel %vm2229_vm6, %v7049_v41, %v2127_v40  ;;  %v8756_v1 = vadd.s32 %v3159_v9, %v3155_v6  ;;  %v8758_v16 = vsub.f32 %v3337_v46, %v3327_v31  ;;  %vm2122_vm12 = vweird.f32 %v8252_v43  ;;  %v9701_v41 = vld [vmem:[#allocation19_spill] sm:$0xff]  ;;  %v9702_v46 = vld [vmem:[#allocation20_spill] sm:$0xff]  ;;  %v9703_v43 = vld [vmem:[#allocation18_spill] sm:$0xff] }
 0x1cb   : > { %9699 = vst [vmem:[#allocation44_spill] sm:$0xff] %v8750_v13  ;;  %v2132_v61 = vsel %vm2125_vm8, %v2128_v24, %v2131_v60  ;;  %v2235_v57 = vsel %vm2228_vm7, %v2231_v32, %v2234_v42  ;;  %7052 = vrsqrt.f32 %v8743_v56  ;;  %v8773_v38 = vadd.f32 %v6912_v58, %v8664_v33  ;;  %v9704_v60 = vld [vmem:[#allocation21_spill] sm:$0xff]  ;;  %v9705_v9 = vld [vmem:[#allocation22_spill] sm:$0xff]  ;;  %v9706_v32 = vld [vmem:[#allocation23_spill] sm:$0xff] }
 0x1cc   : > { %9700 = vst [vmem:[#allocation45_spill] sm:$0xff] %v8758_v16  ;;  %v2133_v37 = vsel %vm2122_vm12, nan, %v2132_v61  ;;  %v2236_v25 = vsel %vm2122_vm12, nan, %v2235_v57  ;;  %v3161_v53 = vadd.s32 536870912, %v8756_v1  ;;  %v9707_v57 = vld [vmem:[#allocation24_spill] sm:$0xff]  ;;  %v9708_v13 = vld [vmem:[#allocation25_spill] sm:$0xff] }
 0x1cd   : > { %v2237_v10 = vsub.f32 1.0, %v2236_v25  ;;  %v2250_v17 = vsub.f32 0.0, %v2133_v37  ;;  %v2253_v6 = vmul.f32 %v2133_v37, %v9701_v41  ;;  %v2255_v31 = vmul.f32 %v2133_v37, %v9702_v46 }
 0x1ce   : > { %v2265_v40 = vmul.f32 %v2133_v37, %v9703_v43  ;;  %v8770_v12 = vshrl.u32 %v3161_v53, 30  ;;  %vm4160_vm13 = vcmp.eq.f32.partialorder %v8743_v56, inf  ;;  %vm4162_vm14 = vcmp.eq.f32.partialorder %v8743_v56, 0.0 }
 0x1cf   : > { %v2239_v42 = vmul.f32 %v9704_v60, %v2237_v10  ;;  %v2241_v24 = vmul.f32 %v9705_v9, %v2237_v10  ;;  %v2243_v61 = vmul.f32 %v9706_v32, %v2237_v10  ;;  %v2248_v25 = vmul.f32 %v9707_v57, %v2237_v10  ;;  %v8785_v60 = vpop.f32.mrf.mxu1 }
 0x1d0   : > { %v2251_v16 = vmul.f32 %v2250_v17, %v9702_v46  ;;  %v2259_v62 = vmul.f32 %v9708_v13, %v2237_v10  ;;  %v2261_v49 = vmul.f32 %v2250_v17, %v9703_v43  ;;  %v2263_v37 = vmul.f32 %v2250_v17, %v9701_v41  ;;  %v9710_v41 = vld [vmem:[#allocation27_spill] sm:$0xff] }
 0x1d1   : > { %v2249_v53 = vadd.f32 1.0, %v2248_v25  ;;  %v8783_v30 = vadd.f32 %v2253_v6, %v2241_v24  ;;  %v2256_v33 = vadd.f32 %v2255_v31, %v2239_v42  ;;  %v2266_v58 = vadd.f32 %v2265_v40, %v2243_v61 }
 0x1d2   : > { %v2252_v9 = vadd.f32 %v2251_v16, %v2239_v42  ;;  %v2260_v54 = vadd.f32 1.0, %v2259_v62  ;;  %v8787_v32 = vadd.f32 %v2261_v49, %v2243_v61  ;;  %v2264_v57 = vadd.f32 %v2263_v37, %v2241_v24  ;;  %v8801_v42 = vpop.f32.mrf.mxu1 }
 0x1d3   : > { %v2269_v46 = vmul.f32 %v9709_v8, %v2237_v10  ;;  %v2279_v13 = vmul.f32 %v2266_v58, %v8501_v39  ;;  %v2300_v43 = vmul.f32 %v2266_v58, %v8537_v47  ;;  %v2321_v17 = vmul.f32 %v2266_v58, %v8539_v15 }
 0x1d4   : > { %v2276_v6 = vmul.f32 %v2252_v9, %v9710_v41  ;;  %v2277_v31 = vmul.f32 %v2260_v54, %v8455_v23  ;;  %v2297_v40 = vmul.f32 %v2252_v9, %v8457_v27  ;;  %v2298_v16 = vmul.f32 %v2260_v54, %v8463_v14 }
 0x1d5   : > { %v2318_v49 = vmul.f32 %v2252_v9, %v8467_v4  ;;  %v2319_v62 = vmul.f32 %v2260_v54, %v8459_v2  ;;  %v2271_v10 = vmul.f32 %v2249_v53, %v9710_v41  ;;  %v2272_v8 = vmul.f32 %v2256_v33, %v8455_v23 }
 0x1d6   : > { %v2278_v24 = vadd.f32 %v2277_v31, %v2276_v6  ;;  %v2299_v61 = vadd.f32 %v2298_v16, %v2297_v40  ;;  %v2274_v25 = vmul.f32 %v2264_v57, %v8501_v39  ;;  %v2292_v37 = vmul.f32 %v2249_v53, %v8457_v27 }
 0x1d7   : > { %v2320_v58 = vadd.f32 %v2319_v62, %v2318_v49  ;;  %v2273_v28 = vadd.f32 %v2272_v8, %v2271_v10  ;;  %v2293_v9 = vmul.f32 %v2256_v33, %v8463_v14  ;;  %v2295_v54 = vmul.f32 %v2264_v57, %v8537_v47  ;;  %v8818_v10 = vpop.f32.mrf.mxu1 }
 0x1d8   : > { %v8807_v5 = vadd.f32 %v2279_v13, %v2278_v24  ;;  %v8809_v21 = vadd.f32 %v2300_v43, %v2299_v61  ;;  %v2313_v6 = vmul.f32 %v2249_v53, %v8467_v4  ;;  %v2314_v31 = vmul.f32 %v2256_v33, %v8459_v2  ;;  %v8820_v8 = vpop.eup %7052 }
 0x1d9   : > { %v8813_v40 = vadd.f32 %v2321_v17, %v2320_v58  ;;  %v8815_v16 = vadd.f32 %v2274_v25, %v2273_v28  ;;  %v2294_v49 = vadd.f32 %v2293_v9, %v2292_v37  ;;  %v2316_v62 = vmul.f32 %v2264_v57, %v8539_v15  ;;  %v8836_v17 = vpop.f32.mrf.mxu0  ;;  %v9714_v9 = vld [vmem:[#allocation10_spill] sm:$0xff]  ;;  %v8852_v44 = vpop.f32.mrf.mxu1 }
 0x1da   : > { %6077 = vst [vmem:[%s8098_s21 + $0x30] sm:$0xff] %v8807_v5  ;;  %6081 = vst [vmem:[%s8098_s21 + $0xd0] sm:$0xff] %v8809_v21  ;;  %v2347_v53 = vmul.f32 %v2346_v26, %v8807_v5  ;;  %v2350_v33 = vmul.f32 %v2346_v26, %v8809_v21  ;;  %v2315_v13 = vadd.f32 %v2314_v31, %v2313_v6  ;;  %v3163_v28 = vshll.u32 %v8770_v12, 30  ;;  %v9715_v6 = vld [vmem:[#allocation9_spill] sm:$0xff]  ;;  %v9716_v31 = vld [vmem:[#allocation12_spill] sm:$0xff] }
 0x1db   : > { %9711 = vst [vmem:[#allocation19_spill] sm:$0xff] %v8813_v40  ;;  %6085 = vst [vmem:[%s8098_s21 + $0x170] sm:$0xff] %v8813_v40  ;;  %v2353_v57 = vmul.f32 %v2346_v26, %v8813_v40  ;;  %v8832_v43 = vadd.f32 %v2295_v54, %v2294_v49  ;;  %v9713_v26 = vld [vmem:[#allocation8_spill] sm:$0xff]  ;;  %v2966_v49 = vadd.f32 %v9716_v31, %v9715_v6  ;;  %v2270_v7 = vadd.f32 1.0, %v2269_v46  ;;  %v9718_v46 = vld [vmem:[#allocation17_spill] sm:$0xff] }
 0x1dc   : > { %2334 = vst [vmem:[%s8098_s21 + $0x8] sm:$0xff] %v8815_v16  ;;  %v2348_v24 = vadd.f32 %v2347_v53, %v8568_v22  ;;  %v2351_v61 = vadd.f32 %v2350_v33, %v8595_v34  ;;  %v8840_v25 = vadd.f32 %v2316_v62, %v2315_v13  ;;  %v8843_v37 = vsub.s32 %v8756_v1, %v3163_v28  ;;  %v9717_v13 = vld [vmem:[#allocation16_spill] sm:$0xff] }
 0x1dd   : > { %v2354_v58 = vadd.f32 %v2353_v57, %v8600_v59  ;;  %v2972_v54 = vadd.f32 %v9714_v9, %v9713_v26  ;;  %6080 = vst [vmem:[%s8098_s21 + $0xa8] sm:$0xff] %v8832_v43  ;;  %v2281_v62 = vmul.f32 %v8783_v30, %v9710_v41  ;;  %v2282_v53 = vmul.f32 %v8787_v32, %v8455_v23  ;;  %v8867_v26 = vpop.f32.mrf.mxu0  ;;  %v8880_v9 = vpop.f32.mrf.mxu1 }
 0x1de   : > { %9712 = vst [vmem:[#allocation20_spill] sm:$0xff] %v8840_v25  ;;  %2349 = vst [vmem:[%s8517_s25 + $0x8] sm:$0xff] %v2348_v24  ;;  %v3166_v1 = vsub.s32 0, %v8843_v37  ;;  %v2284_v33 = vmul.f32 %v2270_v7, %v8501_v39  ;;  %v3071_v57 = vadd.f32 %v9718_v46, %v2966_v49  ;;  %v2303_v41 = vmul.f32 %v8787_v32, %v8463_v14  ;;  %v9719_v14 = vld [vmem:[#allocation14_spill] sm:$0xff] }
 0x1df   : > { %6088 = vst [vmem:[%s8517_s25 + $0x30] sm:$0xff] %v2351_v61  ;;  %6084 = vst [vmem:[%s8098_s21 + $0x148] sm:$0xff] %v8840_v25  ;;  %v3077_v28 = vadd.f32 %v9717_v13, %v2972_v54  ;;  %v2302_v61 = vmul.f32 %v8783_v30, %v8457_v27  ;;  %v3156_v23 = vadd.s32 %v8710_v50, %v8718_v36  ;;  %v4163_v39 = vand.u32 2147483648, %v8743_v56 }
 0x1e0   : > { %6089 = vst [vmem:[%s8517_s25 + $0x58] sm:$0xff] %v2354_v58  ;;  %v6091_v24 = vmin.u32 %v3166_v1, %v8843_v37  ;;  %v2305_v58 = vmul.f32 %v2270_v7, %v8537_v47  ;;  %v2283_v6 = vadd.f32 %v2282_v53, %v2281_v62  ;;  %v2323_v27 = vmul.f32 %v8783_v30, %v8467_v4  ;;  %v4874_v1 = vpop.f32.mrf.mxu0 }
 0x1e1   : > { %v2304_v31 = vadd.f32 %v2303_v41, %v2302_v61  ;;  %v3356_v47 = vmul.f32 %v9719_v14, %v8815_v16  ;;  %v3377_v50 = vmul.f32 %v9719_v14, %v8832_v43  ;;  %v3398_v36 = vmul.f32 %v9719_v14, %v8840_v25  ;;  %v4990_v41 = vpop.f32.mrf.mxu1 }
 0x1e2   : > { %v3168_v54 = vclz %v6091_v24  ;;  %v2324_v49 = vmul.f32 %v8787_v32, %v8459_v2  ;;  %v8892_v53 = vadd.f32 %v2284_v33, %v2283_v6  ;;  %v2326_v4 = vmul.f32 %v2270_v7, %v8539_v15 }
 0x1e3   : > { %v8894_v13 = vadd.f32 %v2305_v58, %v2304_v31  ;;  %v3357_v46 = vmul.f32 %v3071_v57, %v8807_v5  ;;  %v3378_v24 = vmul.f32 %v3071_v57, %v8809_v21  ;;  %v3399_v61 = vmul.f32 %v3071_v57, %v8813_v40  ;;  %v8910_v57 = vpop.f32.mrf.mxu0 }
 0x1e4   : > { %v6092_v62 = vadd.s32 4294967294, %v3168_v54  ;;  %v2325_v30 = vadd.f32 %v2324_v49, %v2323_v27  ;;  %6078 = vst [vmem:[%s8098_s21 + $0x58] sm:$0xff] %v8892_v53  ;;  %v3359_v2 = vmul.f32 %v3077_v28, %v8892_v53  ;;  %v4159_v7 = vmul.f32 %v8820_v8, %v8743_v56 }
 0x1e5   : > { %6082 = vst [vmem:[%s8098_s21 + $0xf8] sm:$0xff] %v8894_v13  ;;  %v3380_v32 = vmul.f32 %v3077_v28, %v8894_v13  ;;  %v3358_v58 = vadd.f32 %v3357_v46, %v3356_v47  ;;  %v3379_v54 = vadd.f32 %v3378_v24, %v3377_v50  ;;  %v3186_v27 = vsub.s32 4, %v8770_v12  ;;  %v8919_v47 = vpop.f32.mrf.mxu1  ;;  %v5081_v24 = vpop.f32.mrf.mxu0 }
 0x1e6   : > { %vm6093_vm15 = vcmp.lt.s32.totalorder %v6092_v62, 0  ;;  %v8908_v33 = vadd.f32 %v2326_v4, %v2325_v30  ;;  %v3400_v14 = vadd.f32 %v3399_v61, %v3398_v36  ;;  %v4161_v8 = vsel %vm4160_vm13, %v8743_v56, %v4159_v7 }
 0x1e7   : > { %v3171_v15 = vsel %vm6093_vm15, 0, %v6092_v62  ;;  %v3360_v40 = vadd.f32 %v3359_v2, %v3358_v58  ;;  %v3381_v25 = vadd.f32 %v3380_v32, %v3379_v54  ;;  %v8924_v36 = vsel %vm4162_vm14, %v4163_v39, %v4161_v8  ;;  %v6946_v7 = vpop.f32.mrf.mxu0 }
 0x1e8   : > { %v3172_v6 = vsub.s32 32, %v3171_v15  ;;  %v3176_v31 = vsub.s32 4294967266, %v3171_v15  ;;  %6086 = vst [vmem:[%s8098_s21 + $0x198] sm:$0xff] %v8908_v33  ;;  %v3401_v49 = vmul.f32 %v3077_v28, %v8908_v33  ;;  %v3173_v50 = vshll.u32 %v8843_v37, %v3171_v15 }
 0x1e9   : > { %v8927_v28 = vadd.f32 %v3360_v40, %v8568_v22  ;;  %v8930_v30 = vadd.f32 %v3381_v25, %v8595_v34  ;;  %vm3102_vm0 = vcmp.lt.s32.totalorder %v8585_v11, 0  ;;  %v4173_v56 = vand.u32 2139095040, %v8924_v36  ;;  %v5186_v22 = vpop.f32.mrf.mxu1 }
 0x1ea   : > { %v3174_v62 = vshrl.u32 %v3156_v23, %v3172_v6  ;;  %v3177_v4 = vadd.s32 127, %v3176_v31  ;;  %v3402_v46 = vadd.f32 %v3401_v49, %v3400_v14  ;;  %v3187_v34 = vsel %vm3102_vm0, %v3186_v27, %v8770_v12 }
 0x1eb   : > { %6100 = vst [vmem:[%s8098_s21 + $0x88] sm:$0xff] %v8927_v28  ;;  %6104 = vst [vmem:[%s8098_s21 + $0x128] sm:$0xff] %v8930_v30  ;;  %v9720_v25 = vand.u32 2147483647, %v8585_v11  ;;  %v4882_v39 = vadd.f32 %v8867_v26, %v8730_v18  ;;  %v4875_v32 = vadd.f32 %v4874_v1, %v8737_v52  ;;  %v4743_v12 = vadd.f32 %v8603_v20, %v8587_v48  ;;  %v6963_v52 = vpop.f32.mrf.mxu1 }
 0x1ec   : > { %v3175_v61 = vor.u32 %v3174_v62, %v3173_v50  ;;  %v3178_v2 = vshll.u32 %v3177_v4, 23  ;;  %v8934_v37 = vadd.f32 %v3402_v46, %v8600_v59  ;;  %v4174_v59 = vshrl.u32 %v4173_v56, 23 }
 0x1ed   : > { %vm8946_vm1 = vcmp.le.f32.partialorder %v9720_v25, 0.7853982  ;;  %v4983_v54 = vadd.f32 %v8818_v10, %v8773_v38  ;;  %v4737_v27 = vadd.f32 %v8632_v45, %v8621_v55  ;;  %v8964_v18 = vadd.f32 %v8880_v9, %v4882_v39 }
 0x1ee   : > { %v3179_v40 = vor.u32 4788187, %v3178_v2  ;;  %6108 = vst [vmem:[%s8098_s21 + $0x1c8] sm:$0xff] %v8934_v37  ;;  %v3182_v58 = vcvt.s32.f32 %v3175_v61  ;;  %v3189_v6 = vsel %vm8946_vm1, 0, %v3187_v34  ;;  %v6111_v31 = vadd.s32 4294967169, %v4174_v59  ;;  %v5198_v61 = vpop.f32.mrf.mxu1 }
 0x1ef   : > { %v4170_v1 = vand.u32 2147483647, %v8924_v36  ;;  %v8967_v14 = vadd.f32 %v4990_v41, %v4875_v32  ;;  %v5100_v48 = vadd.f32 %v6946_v7, %v4983_v54  ;;  %v4749_v38 = vadd.f32 %v8685_v19, %v8657_v29 }
 0x1f0   : > { %v3180_v15 = vand.u32 2147483647, %v3179_v40  ;;  %v4180_v20 = vadd.s32 1, %v6111_v31  ;;  %v4854_v10 = vadd.f32 %v8714_v51, %v4743_v12  ;;  %v4847_v8 = vadd.f32 %v8735_v35, %v4737_v27  ;;  %v5093_v51 = vpop.f32.mrf.mxu0 }
 0x1f1   : > { %v8973_v55 = vadd.f32 %v6963_v52, %v5100_v48  ;;  %v3193_v45 = vadd.s32 3, %v3189_v6  ;;  %v4861_v9 = vadd.f32 %v8836_v17, %v4749_v38  ;;  %v4177_v62 = vand.u32 8388607, %v4170_v1 }
 0x1f2   : > { %v3183_v26 = vmul.f32 %v3182_v58, %v3180_v15  ;;  %vm4181_vm2 = vcmp.gt.s32.totalorder %v4180_v20, 0  ;;  %v4967_v50 = vadd.f32 %v8785_v60, %v4854_v10  ;;  %v4959_v19 = vadd.f32 %v8801_v42, %v4847_v8 }
 0x1f3   : > { %v4182_v29 = vsel %vm4181_vm2, %v4180_v20, 0  ;;  %v4975_v46 = vadd.f32 %v8852_v44, %v4861_v9  ;;  %v8987_v2 = vand.u32 3, %v3193_v45  ;;  %v8989_v56 = vand.u32 3, %v3189_v6 }
 0x1f4   : > { %v3184_v49 = vxor.u32 2147483648, %v3183_v26  ;;  %v4184_v4 = vand.u32 31, %v4182_v29  ;;  %v5088_v60 = vadd.f32 %v8910_v57, %v4967_v50  ;;  %v5082_v17 = vadd.f32 %v5081_v24, %v4959_v19 }
 0x1f5   : > { %v5094_v40 = vadd.f32 %v5093_v51, %v4975_v46  ;;  %v4178_v42 = vor.u32 8388608, %v4177_v62  ;;  %v4183_v59 = vshrl.u32 %v4182_v29, 5  ;;  %v9723_v15 = vmov 2102212464  }
 0x1f6   : > { %v3185_v41 = vsel %vm3102_vm0, %v3184_v49, %v3183_v26  ;;  %v4185_v34 = vsub.s32 32, %v4184_v4  ;;  %v8992_v25 = vadd.f32 %v8919_v47, %v5088_v60  ;;  %v8994_v23 = vadd.f32 %v5186_v22, %v5082_v17 }
 0x1f7   : > { %v3188_v35 = vsel %vm8946_vm1, %v8585_v11, %v3185_v41  ;;  %v4187_v44 = vshll.u32 %v9685_v3, %v4184_v4  ;;  %v4190_v57 = vshll.u32 %v9686_v0, %v4184_v4  ;;  %v8998_v24 = vadd.f32 %v5198_v61, %v5094_v40 }
 0x1f8   : > { %7054 = vcosq.f32 %v3188_v35  ;;  %v4188_v39 = vshrl.u32 %v9686_v0, %v4185_v34  ;;  %v4191_v32 = vshrl.u32 %v9693_v63, %v4185_v34  ;;  %v4193_v7 = vshll.u32 %v9693_v63, %v4184_v4 }
 0x1f9   : > { %7056 = vsinq.f32 %v3188_v35  ;;  %v4194_v58 = vshrl.u32 %v9723_v15, %v4185_v34  ;;  %v4196_v47 = vshll.u32 %v9723_v15, %v4184_v4  ;;  %v9724_v12 = vmov 920167782  }
 0x1fa   : > { %v4197_v22 = vshrl.u32 %v9724_v12, %v4185_v34  ;;  %v4199_v54 = vshll.u32 %v9724_v12, %v4184_v4  ;;  %v9725_v6 = vmov 1326507024   ;;  %v4189_v27 = vor.u32 %v4188_v39, %v4187_v44 }
 0x1fb   : > { %v4200_v31 = vshrl.u32 %v9725_v6, %v4185_v34  ;;  %v4192_v52 = vor.u32 %v4191_v32, %v4190_v57  ;;  %v4195_v26 = vor.u32 %v4194_v58, %v4193_v7  ;;  %v5221_v48 = vadd.f32 1e-08, %v8992_v25 }
 0x1fc   : > { %v4198_v20 = vor.u32 %v4197_v22, %v4196_v47  ;;  %vm4202_vm3 = vcmp.lt.s32.totalorder %v4183_v59, 1  ;;  %v5220_v10 = vadd.f32 1e-08, %v8994_v23  ;;  %vm4205_vm4 = vcmp.lt.s32.totalorder %v4183_v59, 4 }
 0x1fd   : > { %v4201_v38 = vor.u32 %v4200_v31, %v4199_v54  ;;  %v4210_v49 = vsel %vm4202_vm3, %v4189_v27, %v4192_v52  ;;  %v4214_v8 = vsel %vm4202_vm3, %v4192_v52, %v4195_v26  ;;  %v5222_v45 = vadd.f32 1e-08, %v8998_v24 }
 0x1fe   : > { %vm3298_vm5 = vcmp.lt.s32.totalorder %v8989_v56, 2  ;;  %vm4204_vm6 = vcmp.lt.s32.totalorder %v4183_v59, 3  ;;  %v4211_v9 = vsel %vm4205_vm4, %v4198_v20, 920167782  ;;  %v4218_v41 = vshll.u32 %v4178_v42, 8 }
 0x1ff   : > { %v4215_v50 = vsel %vm4205_vm4, %v4201_v38, 1326507024  ;;  %vm4203_vm7 = vcmp.lt.s32.totalorder %v4183_v59, 2  ;;  %v4207_v62 = vsel %vm4205_vm4, %v4195_v26, 2102212464  ;;  %v4212_v29 = vsel %vm4204_vm6, %v4195_v26, %v4211_v9 }
 0x200   : > { %v4216_v19 = vsel %vm4204_vm6, %v4198_v20, %v4215_v50  ;;  %v4186_v51 = vshrl.u32 %v9685_v3, %v4185_v34  ;;  %v4213_v35 = vsel %vm4203_vm7, %v4210_v49, %v4212_v29  ;;  %v5223_v46 = vmul.f32 %v5220_v10, %v5220_v10  ;;  %v9726_v50 = vld [vmem:[#allocation34_spill] sm:$0xff] }
 0x201   : > { %v4217_v4 = vsel %vm4203_vm7, %v4214_v8, %v4216_v19  ;;  %v9022_v61 = vmul.u32.u64.low %v4218_v41, %v4213_v35  ;;  %v9023_v40 = vmul.u32.u64.high %v4218_v41, %v4213_v35, %v9022_v61  ;;  %vm3299_vm8 = vcmp.eq.s32.totalorder %v8989_v56, 0  ;;  %v9730_v35 = vld [vmem:[#allocation13_spill] sm:$0xff] }
 0x202   : > { %v9019_v60 = vmul.u32.u64.low %v4218_v41, %v4217_v4  ;;  %v9020_v17 = vmul.u32.u64.high %v4218_v41, %v4217_v4, %v9019_v60  ;;  %v4206_v44 = vsel %vm4202_vm3, %v4186_v51, %v4189_v27  ;;  %v4208_v57 = vsel %vm4204_vm6, %v4192_v52, %v4207_v62  ;;  %v9727_v62 = vld [vmem:[#allocation28_spill] sm:$0xff] }
 0x203   : > { %v5224_v34 = vmul.f32 %v5221_v48, %v5221_v48  ;;  %vm3195_vm9 = vcmp.lt.s32.totalorder %v8987_v2, 2  ;;  %vm3302_vm10 = vcmp.eq.s32.totalorder %v8989_v56, 2  ;;  %v5226_v7 = vmul.f32 %v5222_v45, %v5222_v45  ;;  %v9732_v60 = vld [vmem:[#allocation41_spill] sm:$0xff] }
 0x204   : > { %vm3196_vm11 = vcmp.eq.s32.totalorder %v8987_v2, 0  ;;  %vm3199_vm12 = vcmp.eq.s32.totalorder %v8987_v2, 2  ;;  %v4209_v31 = vsel %vm4203_vm7, %v4206_v44, %v4208_v57  ;;  %vm4227_vm13 = vc.u32 %v9020_v17, %v9022_v61  ;;  %v9729_v2 = vld [vmem:[#allocation15_spill] sm:$0xff] }
 0x205   : > { %v7055_v42 = vpop.eup %7054  ;;  %v5225_v47 = vadd.f32 %v5224_v34, %v5223_v46  ;;  %v4228_v26 = vadd.s32 1, %v9023_v40  ;;  %vm3192_vm14 = vweird.f32 %v8585_v11  ;;  %v4225_v49 = vmul.u32 %v4218_v41, %v4209_v31  ;;  %v9728_v11 = vld [vmem:[#allocation11_spill] sm:$0xff]  ;;  %v9731_v46 = vld [vmem:[#allocation40_spill] sm:$0xff] }
 0x206   : > { %v7057_v39 = vpop.eup %7056  ;;  %v3200_v32 = vxor.u32 2147483648, %v7055_v42  ;;  %v9049_v29 = vadd.f32 %v9727_v62, %v9726_v50  ;;  %v9734_v57 = vld [vmem:[#allocation43_spill] sm:$0xff]  ;;  %vm4172_vm2 = vcmp.lt.s32.totalorder %v8924_v36, 0  ;;  %vm4171_vm4 = vcmp.le.f32.partialorder %v4170_v1, 0.7853982 }
 0x207   : > { %v3197_v58 = vxor.u32 2147483648, %v7057_v39  ;;  %v9039_v48 = vadd.f32 %v5226_v7, %v5225_v47  ;;  %v4229_v8 = vsel %vm4227_vm13, %v4228_v26, %v9023_v40 }
 0x208   : > { %v3201_v22 = vsel %vm3199_vm12, %v3200_v32, %v7057_v39  ;;  %v3304_v54 = vsel %vm3302_vm10, %v3200_v32, %v7057_v39  ;;  %v9055_v4 = vadd.s32 %v4229_v8, %v4225_v49  ;;  %v9735_v32 = vld [vmem:[#allocation44_spill] sm:$0xff] }
 0x209   : > { %v3198_v27 = vsel %vm3196_vm11, %v7055_v42, %v3197_v58  ;;  %v3301_v52 = vsel %vm3299_vm8, %v7055_v42, %v3197_v58  ;;  %7058 = vrsqrt.f32 %v9039_v48  ;;  %v9733_v42 = vld [vmem:[#allocation42_spill] sm:$0xff]  ;;  %vm5230_vm15 = vcmp.eq.f32.partialorder %v9039_v48, inf }
 0x20a   : > { %v3202_v20 = vsel %vm3195_vm9, %v3198_v27, %v3201_v22  ;;  %v3305_v59 = vsel %vm3298_vm5, %v3301_v52, %v3304_v54  ;;  %7060 = vrcp.f32 %v8924_v36  ;;  %vm5232_vm1 = vcmp.eq.f32.partialorder %v9039_v48, 0.0 }
 0x20b   : > { %v3203_v38 = vsel %vm3192_vm14, nan, %v3202_v20  ;;  %v3306_v10 = vsel %vm3192_vm14, nan, %v3305_v59  ;;  %vm4262_vm9 = vweird.f32 %v8924_v36 }
 0x20c   : > { %v3307_v45 = vsub.f32 1.0, %v3306_v10  ;;  %v3320_v9 = vsub.f32 0.0, %v3203_v38  ;;  %v3323_v19 = vmul.f32 %v3203_v38, %v9728_v11  ;;  %v3325_v51 = vmul.f32 %v3203_v38, %v9729_v2 }
 0x20d   : > { %v3335_v56 = vmul.f32 %v3203_v38, %v9730_v35  ;;  %v9736_v38 = vld [vmem:[#allocation45_spill] sm:$0xff] }
 0x20e   : > { %v3309_v41 = vmul.f32 %v9731_v46, %v3307_v45  ;;  %v3311_v40 = vmul.f32 %v9732_v60, %v3307_v45  ;;  %v3313_v44 = vmul.f32 %v9733_v42, %v3307_v45  ;;  %v3318_v34 = vmul.f32 %v9734_v57, %v3307_v45  ;;  %v3416_v57 = vld [vmem:[#allocation3 + $0x10] sm:$0xff] }
 0x20f   : > { %v3321_v39 = vmul.f32 %v3320_v9, %v9729_v2  ;;  %v3329_v7 = vmul.f32 %v9735_v32, %v3307_v45  ;;  %v3331_v58 = vmul.f32 %v3320_v9, %v9730_v35  ;;  %v3333_v47 = vmul.f32 %v3320_v9, %v9728_v11  ;;  %v9737_v2 = vld [vmem:[#allocation20_spill] sm:$0xff]  ;;  %v9738_v35 = vld [vmem:[#allocation19_spill] sm:$0xff] }
 0x210   : > { %v3319_v22 = vadd.f32 1.0, %v3318_v34  ;;  %v9065_v54 = vadd.f32 %v3323_v19, %v3311_v40  ;;  %v3326_v31 = vadd.f32 %v3325_v51, %v3309_v41  ;;  %v3336_v27 = vadd.f32 %v3335_v56, %v3313_v44 }
 0x211   : > { %v3322_v52 = vadd.f32 %v3321_v39, %v3309_v41  ;;  %v3330_v26 = vadd.f32 1.0, %v3329_v7  ;;  %v9067_v20 = vadd.f32 %v3331_v58, %v3313_v44  ;;  %v3334_v59 = vadd.f32 %v3333_v47, %v3311_v40 }
 0x212   : > { %v3339_v10 = vmul.f32 %v9736_v38, %v3307_v45  ;;  %v3349_v49 = vmul.f32 %v3336_v27, %v8892_v53  ;;  %v3370_v8 = vmul.f32 %v3336_v27, %v8894_v13  ;;  %v3391_v50 = vmul.f32 %v3336_v27, %v8908_v33 }
 0x213   : > { %v3346_v9 = vmul.f32 %v3322_v52, %v8815_v16  ;;  %v3347_v62 = vmul.f32 %v3330_v26, %v8807_v5  ;;  %v3367_v11 = vmul.f32 %v3322_v52, %v8832_v43  ;;  %v3368_v19 = vmul.f32 %v3330_v26, %v8809_v21 }
 0x214   : > { %v3388_v51 = vmul.f32 %v3322_v52, %v9737_v2  ;;  %v3389_v56 = vmul.f32 %v3330_v26, %v9738_v35  ;;  %v3341_v45 = vmul.f32 %v3319_v22, %v8815_v16  ;;  %v3342_v46 = vmul.f32 %v3326_v31, %v8807_v5 }
 0x215   : > { %v3348_v41 = vadd.f32 %v3347_v62, %v3346_v9  ;;  %v3369_v60 = vadd.f32 %v3368_v19, %v3367_v11  ;;  %v3344_v40 = vmul.f32 %v3334_v59, %v8892_v53  ;;  %v3362_v42 = vmul.f32 %v3319_v22, %v8832_v43  ;;  %v9740_v11 = vld [vmem:[#allocation29_spill] sm:$0xff] }
 0x216   : > { %v3390_v44 = vadd.f32 %v3389_v56, %v3388_v51  ;;  %v3343_v34 = vadd.f32 %v3342_v46, %v3341_v45  ;;  %v3363_v39 = vmul.f32 %v3326_v31, %v8809_v21  ;;  %v3365_v32 = vmul.f32 %v3334_v59, %v8894_v13  ;;  %v9096_v62 = vpop.eup %7058 }
 0x217   : > { %v9085_v7 = vadd.f32 %v3349_v49, %v3348_v41  ;;  %v9087_v58 = vadd.f32 %v3370_v8, %v3369_v60  ;;  %v3383_v47 = vmul.f32 %v3319_v22, %v9737_v2  ;;  %v3384_v27 = vmul.f32 %v3326_v31, %v9738_v35 }
 0x218   : > { %v9091_v52 = vadd.f32 %v3391_v50, %v3390_v44  ;;  %v9093_v26 = vadd.f32 %v3344_v40, %v3343_v34  ;;  %v3364_v38 = vadd.f32 %v3363_v39, %v3362_v42  ;;  %v3386_v9 = vmul.f32 %v3334_v59, %v8908_v33  ;;  %v9739_v50 = vld [vmem:[#allocation35_spill] sm:$0xff]  ;;  %v9741_v42 = vld [vmem:[#allocation36_spill] sm:$0xff]  ;;  %v9743_v39 = vld [vmem:[#allocation30_spill] sm:$0xff] }
 0x219   : > { %6098 = vst [vmem:[%s8098_s21 + $0x38] sm:$0xff] %v9085_v7  ;;  %6102 = vst [vmem:[%s8098_s21 + $0xd8] sm:$0xff] %v9087_v58  ;;  %v3417_v49 = vmul.f32 %v3416_v57, %v9085_v7  ;;  %v3420_v22 = vmul.f32 %v3416_v57, %v9087_v58  ;;  %v3385_v31 = vadd.f32 %v3384_v27, %v3383_v47  ;;  %v4231_v8 = vadd.s32 536870912, %v9055_v4  ;;  %v9742_v44 = vld [vmem:[#allocation31_spill] sm:$0xff] }
 0x21a   : > { %6106 = vst [vmem:[%s8098_s21 + $0x178] sm:$0xff] %v9091_v52  ;;  %v3423_v59 = vmul.f32 %v3416_v57, %v9091_v52  ;;  %v4042_v19 = vadd.f32 %v9740_v11, %v9739_v50  ;;  %v9110_v51 = vadd.f32 %v3365_v32, %v3364_v38  ;;  %3404 = vst [vmem:[%s8098_s21 + $0x10] sm:$0xff] %v9093_v26  ;;  %v3340_v56 = vadd.f32 1.0, %v3339_v10  ;;  %v9744_v38 = vld [vmem:[#allocation32_spill] sm:$0xff] }
 0x21b   : > { %v3418_v45 = vadd.f32 %v3417_v49, %v8927_v28  ;;  %v3421_v46 = vadd.f32 %v3420_v22, %v8930_v30  ;;  %v9116_v41 = vadd.f32 %v3386_v9, %v3385_v31  ;;  %v9118_v60 = vshrl.u32 %v4231_v8, 30  ;;  %v9745_v8 = vld [vmem:[#allocation33_spill] sm:$0xff] }
 0x21c   : > { %v3424_v40 = vadd.f32 %v3423_v59, %v8934_v37  ;;  %v4036_v57 = vadd.f32 %v9742_v44, %v9741_v42  ;;  %6101 = vst [vmem:[%s8098_s21 + $0xb0] sm:$0xff] %v9110_v51  ;;  %v3351_v34 = vmul.f32 %v9065_v54, %v8815_v16  ;;  %v3352_v10 = vmul.f32 %v9067_v20, %v8807_v5 }
 0x21d   : > { %3419 = vst [vmem:[%s8517_s25 + $0x10] sm:$0xff] %v3418_v45  ;;  %6109 = vst [vmem:[%s8517_s25 + $0x38] sm:$0xff] %v3421_v46  ;;  %v4135_v32 = vadd.f32 %v9743_v39, %v9049_v29  ;;  %v4233_v47 = vshll.u32 %v9118_v60, 30  ;;  %v3354_v27 = vmul.f32 %v3340_v56, %v8892_v53  ;;  %v4147_v9 = vadd.f32 %v9744_v38, %v4042_v19 }
 0x21e   : > { %6105 = vst [vmem:[%s8098_s21 + $0x150] sm:$0xff] %v9116_v41  ;;  %6110 = vst [vmem:[%s8517_s25 + $0x60] sm:$0xff] %v3424_v40  ;;  %v3353_v49 = vadd.f32 %v3352_v10, %v3351_v34  ;;  %v3372_v16 = vmul.f32 %v9065_v54, %v8832_v43  ;;  %v3373_v5 = vmul.f32 %v9067_v20, %v8809_v21 }
 0x21f   : > { %v3375_v22 = vmul.f32 %v3340_v56, %v8894_v13  ;;  %v4234_v31 = vsub.s32 %v9055_v4, %v4233_v47  ;;  %v3393_v29 = vmul.f32 %v9065_v54, %v9737_v2  ;;  %v3394_v53 = vmul.f32 %v9067_v20, %v9738_v35 }
 0x220   : > { %v4141_v59 = vadd.f32 %v9745_v8, %v4036_v57  ;;  %v4426_v50 = vmul.f32 %v4135_v32, %v9093_v26  ;;  %v9151_v11 = vadd.f32 %v3354_v27, %v3353_v49  ;;  %v3374_v43 = vadd.f32 %v3373_v5, %v3372_v16 }
 0x221   : > { %v3396_v21 = vmul.f32 %v3340_v56, %v8908_v33  ;;  %v4447_v13 = vmul.f32 %v4135_v32, %v9110_v51  ;;  %v4236_v4 = vsub.s32 0, %v4234_v31  ;;  %v3395_v19 = vadd.f32 %v3394_v53, %v3393_v29 }
 0x222   : > { %v9155_v45 = vadd.f32 %v3375_v22, %v3374_v43  ;;  %6099 = vst [vmem:[%s8098_s21 + $0x60] sm:$0xff] %v9151_v11  ;;  %v4429_v54 = vmul.f32 %v4147_v9, %v9151_v11  ;;  %v4427_v20 = vmul.f32 %v4141_v59, %v9085_v7  ;;  %v4448_v2 = vmul.f32 %v4141_v59, %v9087_v58 }
 0x223   : > { %v6112_v35 = vmin.u32 %v4236_v4, %v4234_v31  ;;  %v4468_v46 = vmul.f32 %v4135_v32, %v9116_v41  ;;  %v9163_v40 = vadd.f32 %v3396_v21, %v3395_v19  ;;  %v4469_v10 = vmul.f32 %v4141_v59, %v9091_v52 }
 0x224   : > { %6103 = vst [vmem:[%s8098_s21 + $0x100] sm:$0xff] %v9155_v45  ;;  %v4450_v33 = vmul.f32 %v4147_v9, %v9155_v45  ;;  %v4428_v56 = vadd.f32 %v4427_v20, %v4426_v50  ;;  %v4449_v34 = vadd.f32 %v4448_v2, %v4447_v13  ;;  %v5229_v32 = vmul.f32 %v9096_v62, %v9039_v48  ;;  %v7061_v20 = vpop.eup %7060 }
 0x225   : > { %v4238_v42 = vclz %v6112_v35  ;;  %6107 = vst [vmem:[%s8098_s21 + $0x1a0] sm:$0xff] %v9163_v40  ;;  %v4471_v44 = vmul.f32 %v4147_v9, %v9163_v40  ;;  %v4470_v38 = vadd.f32 %v4469_v10, %v4468_v46  ;;  %v5233_v9 = vand.u32 2147483648, %v9039_v48 }
 0x226   : > { %v4430_v57 = vadd.f32 %v4429_v54, %v4428_v56  ;;  %v4451_v27 = vadd.f32 %v4450_v33, %v4449_v34  ;;  %v5231_v49 = vsel %vm5230_vm15, %v9039_v48, %v5229_v32  ;;  %v4226_v22 = vadd.s32 %v9022_v61, %v9020_v17  ;;  %v9746_v56 = vld [vmem:[#allocation37_spill] sm:$0xff] }
 0x227   : > { %v6113_v39 = vadd.s32 4294967294, %v4238_v42  ;;  %v4472_v62 = vadd.f32 %v4471_v44, %v4470_v38  ;;  %v4256_v17 = vsub.s32 4, %v9118_v60  ;;  %v9204_v42 = vmul.f32 %v7061_v20, %v9746_v56 }
 0x228   : > { %v9177_v47 = vadd.f32 %v4430_v57, %v8927_v28  ;;  %v9183_v5 = vadd.f32 %v4451_v27, %v8930_v30  ;;  %v9187_v28 = vsel %vm5232_vm1, %v5233_v9, %v5231_v49  ;;  %v9747_v57 = vld [vmem:[#allocation39_spill] sm:$0xff] }
 0x229   : > { %vm6114_vm0 = vcmp.lt.s32.totalorder %v6113_v39, 0  ;;  %v9192_v8 = vadd.f32 %v4472_v62, %v8934_v37  ;;  %v5243_v48 = vand.u32 2139095040, %v9187_v28  ;;  %v5240_v2 = vand.u32 2147483647, %v9187_v28 }
 0x22a   : > { %v4241_v16 = vsel %vm6114_vm0, 0, %v6113_v39  ;;  %6121 = vst [vmem:[%s8098_s21 + $0x90] sm:$0xff] %v9177_v47  ;;  %6125 = vst [vmem:[%s8098_s21 + $0x130] sm:$0xff] %v9183_v5  ;;  %v4257_v35 = vsel %vm4172_vm2, %v4256_v17, %v9118_v60  ;;  %v9209_v34 = vmul.f32 %v7061_v20, %v9747_v57 }
 0x22b   : > { %v4242_v29 = vsub.s32 32, %v4241_v16  ;;  %v4246_v53 = vsub.s32 4294967266, %v4241_v16  ;;  %v4243_v59 = vshll.u32 %v4234_v31, %v4241_v16  ;;  %6129 = vst [vmem:[%s8098_s21 + $0x1d0] sm:$0xff] %v9192_v8  ;;  %v5244_v43 = vshrl.u32 %v5243_v48, 23 }
 0x22c   : > { %v4259_v10 = vsel %vm4171_vm4, 0, %v4257_v35  ;;  %v5247_v39 = vand.u32 8388607, %v5240_v2 }
 0x22d   : > { %v4244_v30 = vshrl.u32 %v4226_v22, %v4242_v29  ;;  %v4247_v50 = vadd.s32 127, %v4246_v53  ;;  %v6132_v4 = vadd.s32 4294967169, %v5244_v43 }
 0x22e   : > { %v5248_v48 = vor.u32 8388608, %v5247_v39  ;;  %v4384_v39 = vmul.f32 %v9209_v34, %v9209_v34 }
 0x22f   : > { %v4245_v21 = vor.u32 %v4244_v30, %v4243_v59  ;;  %v4248_v13 = vshll.u32 %v4247_v50, 23  ;;  %v5250_v61 = vadd.s32 1, %v6132_v4 }
 0x231   : > { %v4249_v19 = vor.u32 4788187, %v4248_v13  ;;  %v4252_v37 = vcvt.s32.f32 %v4245_v21  ;;  %vm5251_vm3 = vcmp.gt.s32.totalorder %v5250_v61, 0 }
 0x232   : > { %v5252_v46 = vsel %vm5251_vm3, %v5250_v61, 0  ;;  %vm5241_vm3 = vcmp.le.f32.partialorder %v5240_v2, 0.7853982 }
 0x233   : > { %v4250_v54 = vand.u32 2147483647, %v4249_v19  ;;  %v5254_v33 = vand.u32 31, %v5252_v46  ;;  %v5253_v38 = vshrl.u32 %v5252_v46, 5 }
 0x235   : > { %v4253_v31 = vmul.f32 %v4252_v37, %v4250_v54  ;;  %v5255_v32 = vsub.s32 32, %v5254_v33  ;;  %v5257_v60 = vshll.u32 %v9685_v3, %v5254_v33  ;;  %v5260_v9 = vshll.u32 %v9686_v0, %v5254_v33 }
 0x236   : > { %v5263_v62 = vshll.u32 %v9693_v63, %v5254_v33  ;;  %v5266_v29 = vshll.u32 %v9723_v15, %v5254_v33  ;;  %v5269_v21 = vshll.u32 %v9724_v12, %v5254_v33  ;;  %vm5272_vm5 = vcmp.lt.s32.totalorder %v5253_v38, 1 }
 0x237   : > { %v4254_v44 = vxor.u32 2147483648, %v4253_v31  ;;  %v5258_v16 = vshrl.u32 %v9686_v0, %v5255_v32  ;;  %v5261_v1 = vshrl.u32 %v9693_v63, %v5255_v32  ;;  %v5264_v22 = vshrl.u32 %v9723_v15, %v5255_v32 }
 0x238   : > { %v5267_v53 = vshrl.u32 %v9724_v12, %v5255_v32  ;;  %v5270_v0 = vshrl.u32 %v9725_v6, %v5255_v32  ;;  %v5256_v13 = vshrl.u32 %v9685_v3, %v5255_v32  ;;  %vm5274_vm6 = vcmp.lt.s32.totalorder %v5253_v38, 3 }
 0x239   : > { %v4255_v27 = vsel %vm4172_vm2, %v4254_v44, %v4253_v31  ;;  %v5259_v59 = vor.u32 %v5258_v16, %v5257_v60  ;;  %v5262_v30 = vor.u32 %v5261_v1, %v5260_v9  ;;  %v5265_v50 = vor.u32 %v5264_v22, %v5263_v62  ;;  %v9748_v44 = vld [vmem:[#allocation38_spill] sm:$0xff] }
 0x23a   : > { %v4258_v49 = vsel %vm4171_vm4, %v8924_v36, %v4255_v27  ;;  %v5268_v43 = vor.u32 %v5267_v53, %v5266_v29  ;;  %vm5275_vm7 = vcmp.lt.s32.totalorder %v5253_v38, 4  ;;  %v5271_v63 = vor.u32 %v5270_v0, %v5269_v21 }
 0x23b   : > { %7062 = vcosq.f32 %v4258_v49  ;;  %v5277_v4 = vsel %vm5275_vm7, %v5265_v50, 2102212464  ;;  %v5280_v15 = vsel %vm5272_vm5, %v5259_v59, %v5262_v30  ;;  %vm5273_vm8 = vcmp.lt.s32.totalorder %v5253_v38, 2 }
 0x23c   : > { %7064 = vsinq.f32 %v4258_v49  ;;  %v5281_v19 = vsel %vm5275_vm7, %v5268_v43, 920167782  ;;  %v5284_v61 = vsel %vm5272_vm5, %v5262_v30, %v5265_v50  ;;  %v5288_v54 = vshll.u32 %v5248_v48, 8 }
 0x23d   : > { %v5282_v17 = vsel %vm5274_vm6, %v5265_v50, %v5281_v19  ;;  %v4263_v37 = vadd.s32 3, %v4259_v10  ;;  %v5276_v31 = vsel %vm5272_vm5, %v5256_v13, %v5259_v59  ;;  %v5285_v12 = vsel %vm5275_vm7, %v5271_v63, 1326507024 }
 0x23e   : > { %v5283_v35 = vsel %vm5273_vm8, %v5280_v15, %v5282_v17  ;;  %v5278_v46 = vsel %vm5274_vm6, %v5262_v30, %v5277_v4  ;;  %v5286_v6 = vsel %vm5274_vm6, %v5268_v43, %v5285_v12  ;;  %v4167_v57 = vmul.f32 %v7061_v20, %v9748_v44 }
 0x23f   : > { %v9226_v33 = vmul.u32.u64.low %v5288_v54, %v5283_v35  ;;  %v9227_v3 = vmul.u32.u64.high %v5288_v54, %v5283_v35, %v9226_v33  ;;  %v5287_v56 = vsel %vm5273_vm8, %v5284_v61, %v5286_v6  ;;  %v4367_v60 = vand.u32 3, %v4259_v10 }
 0x240   : > { %v9234_v32 = vmul.u32.u64.low %v5288_v54, %v5287_v56  ;;  %v9235_v27 = vmul.u32.u64.high %v5288_v54, %v5287_v56, %v9234_v32  ;;  %v4386_v9 = vmul.f32 %v9204_v42, %v9204_v42  ;;  %v5279_v49 = vsel %vm5273_vm8, %v5276_v31, %v5278_v46 }
 0x241   : > { %v4264_v16 = vand.u32 3, %v4263_v37  ;;  %v5298_v1 = vadd.s32 1, %v9227_v3  ;;  %v4378_v20 = vmul.f32 %v9204_v42, %v4167_v57  ;;  %v4385_v22 = vsub.f32 0.0, %v4384_v39 }
 0x242   : > { %v5295_v29 = vmul.u32 %v5288_v54, %v5279_v49  ;;  %vm5297_vm10 = vc.u32 %v9235_v27, %v9226_v33  ;;  %vm4368_vm11 = vcmp.lt.s32.totalorder %v4367_v60, 2  ;;  %v4407_v48 = vsub.f32 0.0, %v4386_v9 }
 0x243   : > { %v5299_v38 = vsel %vm5297_vm10, %v5298_v1, %v9227_v3  ;;  %vm4269_vm12 = vcmp.eq.s32.totalorder %v4264_v16, 2  ;;  %vm4372_vm13 = vcmp.eq.s32.totalorder %v4367_v60, 2  ;;  %vm4266_vm14 = vcmp.eq.s32.totalorder %v4264_v16, 0 }
 0x244   : > { %v9246_v30 = vadd.s32 %v5299_v38, %v5295_v29  ;;  %vm4369_vm15 = vcmp.eq.s32.totalorder %v4367_v60, 0  ;;  %vm4265_vm0 = vcmp.lt.s32.totalorder %v4264_v16, 2  ;;  %v4380_v15 = vmul.f32 %v9209_v34, %v4167_v57 }
 0x245   : > { %v4397_v19 = vmul.f32 %v4167_v57, %v4167_v57  ;;  %v4382_v54 = vmul.f32 %v9209_v34, %v9204_v42  ;;  %v4387_v35 = vsub.f32 %v4385_v22, %v4386_v9  ;;  %7066 = vrcp.f32 %v9187_v28 }
 0x246   : > { %v5301_v13 = vadd.s32 536870912, %v9246_v30  ;;  %vm5242_vm2 = vcmp.lt.s32.totalorder %v9187_v28, 0  ;;  %vm5332_vm4 = vweird.f32 %v9187_v28 }
 0x247   : > { %v4398_v46 = vsub.f32 %v4385_v22, %v4397_v19  ;;  %v4408_v44 = vsub.f32 %v4407_v48, %v4397_v19 }
 0x248   : > { %v7063_v62 = vpop.eup %7062  ;;  %v9257_v37 = vshrl.u32 %v5301_v13, 30 }
 0x249   : > { %v7065_v53 = vpop.eup %7064  ;;  %v4270_v10 = vxor.u32 2147483648, %v7063_v62 }
 0x24a   : > { %v4267_v59 = vxor.u32 2147483648, %v7065_v53 }
 0x24b   : > { %v4271_v50 = vsel %vm4269_vm12, %v4270_v10, %v7065_v53  ;;  %v4374_v43 = vsel %vm4372_vm13, %v4270_v10, %v7065_v53 }
 0x24c   : > { %v4268_v21 = vsel %vm4266_vm14, %v7063_v62, %v4267_v59  ;;  %v4371_v0 = vsel %vm4369_vm15, %v7063_v62, %v4267_v59  ;;  %v5303_v62 = vshll.u32 %v9257_v37, 30 }
 0x24d   : > { %v4272_v63 = vsel %vm4265_vm0, %v4268_v21, %v4271_v50  ;;  %v4375_v4 = vsel %vm4368_vm11, %v4371_v0, %v4374_v43 }
 0x24e   : > { %v4273_v17 = vsel %vm4262_vm9, nan, %v4272_v63  ;;  %v4376_v61 = vsel %vm4262_vm9, nan, %v4375_v4 }
 0x24f   : > { %v4377_v31 = vsub.f32 1.0, %v4376_v61  ;;  %v4390_v12 = vsub.f32 0.0, %v4273_v17  ;;  %v4393_v6 = vmul.f32 %v4273_v17, %v9204_v42  ;;  %v4395_v3 = vmul.f32 %v4273_v17, %v9209_v34 }
 0x250   : > { %v4405_v56 = vmul.f32 %v4273_v17, %v4167_v57 }
 0x251   : > { %v4379_v39 = vmul.f32 %v4378_v20, %v4377_v31  ;;  %v4381_v32 = vmul.f32 %v4380_v15, %v4377_v31  ;;  %v4383_v60 = vmul.f32 %v4382_v54, %v4377_v31  ;;  %v4388_v36 = vmul.f32 %v4387_v35, %v4377_v31  ;;  %v4486_v35 = vld [vmem:[#allocation3 + $0x18] sm:$0xff] }
 0x252   : > { %v4391_v49 = vmul.f32 %v4390_v12, %v9209_v34  ;;  %v4399_v16 = vmul.f32 %v4398_v46, %v4377_v31  ;;  %v4403_v1 = vmul.f32 %v4390_v12, %v9204_v42  ;;  %v4401_v22 = vmul.f32 %v4390_v12, %v4167_v57 }
 0x253   : > { %v4389_v9 = vadd.f32 1.0, %v4388_v36  ;;  %v4396_v29 = vadd.f32 %v4395_v3, %v4379_v39  ;;  %v4406_v53 = vadd.f32 %v4405_v56, %v4383_v60  ;;  %v9264_v38 = vadd.f32 %v4393_v6, %v4381_v32  ;;  %v6949_v36 = vpop.f32.mrf.mxu0 }
 0x254   : > { %v4392_v10 = vadd.f32 %v4391_v49, %v4379_v39  ;;  %v4400_v59 = vadd.f32 1.0, %v4399_v16  ;;  %v4404_v48 = vadd.f32 %v4403_v1, %v4381_v32  ;;  %v4409_v20 = vmul.f32 %v4408_v44, %v4377_v31 }
 0x255   : > { %v4419_v50 = vmul.f32 %v4406_v53, %v9151_v11  ;;  %v4440_v43 = vmul.f32 %v4406_v53, %v9155_v45  ;;  %v4461_v34 = vmul.f32 %v4406_v53, %v9163_v40  ;;  %v4411_v4 = vmul.f32 %v4389_v9, %v9093_v26 }
 0x256   : > { %v4416_v42 = vmul.f32 %v4392_v10, %v9093_v26  ;;  %v4417_v21 = vmul.f32 %v4400_v59, %v9085_v7  ;;  %v4437_v0 = vmul.f32 %v4392_v10, %v9110_v51  ;;  %v4438_v57 = vmul.f32 %v4400_v59, %v9087_v58 }
 0x257   : > { %v4458_v13 = vmul.f32 %v4392_v10, %v9116_v41  ;;  %v4459_v63 = vmul.f32 %v4400_v59, %v9091_v52  ;;  %v4412_v15 = vmul.f32 %v4396_v29, %v9085_v7  ;;  %v4414_v61 = vmul.f32 %v4404_v48, %v9151_v11 }
 0x258   : > { %v4418_v19 = vadd.f32 %v4417_v21, %v4416_v42  ;;  %v4439_v17 = vadd.f32 %v4438_v57, %v4437_v0  ;;  %v4432_v54 = vmul.f32 %v4389_v9, %v9110_v51  ;;  %v4433_v46 = vmul.f32 %v4396_v29, %v9087_v58  ;;  %v5105_v21 = vpop.f32.mrf.mxu0 }
 0x259   : > { %v4460_v31 = vadd.f32 %v4459_v63, %v4458_v13  ;;  %v4413_v12 = vadd.f32 %v4412_v15, %v4411_v4  ;;  %v4435_v6 = vmul.f32 %v4404_v48, %v9155_v45  ;;  %v4453_v44 = vmul.f32 %v4389_v9, %v9116_v41 }
 0x25a   : > { %v9281_v3 = vadd.f32 %v4419_v50, %v4418_v19  ;;  %v9283_v56 = vadd.f32 %v4440_v43, %v4439_v17  ;;  %v4454_v39 = vmul.f32 %v4396_v29, %v9091_v52  ;;  %v4434_v16 = vadd.f32 %v4433_v46, %v4432_v54 }
 0x25b   : > { %v9287_v32 = vadd.f32 %v4461_v34, %v4460_v31  ;;  %v9289_v49 = vadd.f32 %v4414_v61, %v4413_v12  ;;  %v4456_v1 = vmul.f32 %v4404_v48, %v9163_v40  ;;  %v9299_v29 = vsub.s32 %v9246_v30, %v5303_v62  ;;  %v6966_v34 = vpop.f32.mrf.mxu1 }
 0x25c   : > { %6119 = vst [vmem:[%s8098_s21 + $0x40] sm:$0xff] %v9281_v3  ;;  %6123 = vst [vmem:[%s8098_s21 + $0xe0] sm:$0xff] %v9283_v56  ;;  %v4487_v53 = vmul.f32 %v4486_v35, %v9281_v3  ;;  %v4490_v10 = vmul.f32 %v4486_v35, %v9283_v56  ;;  %v4455_v9 = vadd.f32 %v4454_v39, %v4453_v44  ;;  %v4410_v57 = vadd.f32 1.0, %v4409_v20 }
 0x25d   : > { %v4402_v59 = vadd.f32 %v4401_v22, %v4383_v60  ;;  %6127 = vst [vmem:[%s8098_s21 + $0x180] sm:$0xff] %v9287_v32  ;;  %v4493_v48 = vmul.f32 %v4486_v35, %v9287_v32  ;;  %v9304_v50 = vadd.f32 %v4435_v6, %v4434_v16  ;;  %4474 = vst [vmem:[%s8098_s21 + $0x18] sm:$0xff] %v9289_v49  ;;  %v5306_v22 = vsub.s32 0, %v9299_v29  ;;  %v5210_v17 = vpop.f32.mrf.mxu1 }
 0x25e   : > { %v5496_v43 = vmul.f32 %v8973_v55, %v9289_v49  ;;  %v4488_v30 = vadd.f32 %v4487_v53, %v9177_v47  ;;  %v4491_v60 = vadd.f32 %v4490_v10, %v9183_v5  ;;  %v9312_v62 = vadd.f32 %v4456_v1, %v4455_v9 }
 0x25f   : > { %v4494_v42 = vadd.f32 %v4493_v48, %v9192_v8  ;;  %6122 = vst [vmem:[%s8098_s21 + $0xb8] sm:$0xff] %v9304_v50  ;;  %v5517_v0 = vmul.f32 %v8973_v55, %v9304_v50  ;;  %v6133_v63 = vmin.u32 %v5306_v22, %v9299_v29  ;;  %v4421_v4 = vmul.f32 %v9264_v38, %v9093_v26 }
 0x260   : > { %4489 = vst [vmem:[%s8517_s25 + $0x18] sm:$0xff] %v4488_v30  ;;  %6130 = vst [vmem:[%s8517_s25 + $0x40] sm:$0xff] %v4491_v60  ;;  %v5538_v13 = vmul.f32 %v8973_v55, %v9312_v62  ;;  %v4422_v15 = vmul.f32 %v4402_v59, %v9085_v7  ;;  %v4442_v19 = vmul.f32 %v9264_v38, %v9110_v51 }
 0x261   : > { %6126 = vst [vmem:[%s8098_s21 + $0x158] sm:$0xff] %v9312_v62  ;;  %6131 = vst [vmem:[%s8517_s25 + $0x68] sm:$0xff] %v4494_v42  ;;  %v5112_v20 = vadd.f32 %v6949_v36, %v8964_v18  ;;  %v5106_v61 = vadd.f32 %v5105_v21, %v8967_v14  ;;  %v5308_v54 = vclz %v6133_v63  ;;  %v4424_v55 = vmul.f32 %v4410_v57, %v9151_v11 }
 0x262   : > { %v4423_v31 = vadd.f32 %v4422_v15, %v4421_v4  ;;  %v4443_v35 = vmul.f32 %v4402_v59, %v9087_v58  ;;  %v4445_v26 = vmul.f32 %v4410_v57, %v9155_v45  ;;  %v4463_v18 = vmul.f32 %v9264_v38, %v9116_v41 }
 0x263   : > { %v6134_v12 = vadd.s32 4294967294, %v5308_v54  ;;  %v5217_v46 = vadd.f32 %v6966_v34, %v5112_v20  ;;  %v5211_v7 = vadd.f32 %v5210_v17, %v5106_v61  ;;  %v4464_v14 = vmul.f32 %v4402_v59, %v9091_v52  ;;  %v7067_v17 = vpop.eup %7066 }
 0x264   : > { %v9338_v6 = vadd.f32 %v4424_v55, %v4423_v31  ;;  %v4444_v51 = vadd.f32 %v4443_v35, %v4442_v19  ;;  %v4466_v11 = vmul.f32 %v4410_v57, %v9163_v40  ;;  %v5296_v41 = vadd.s32 %v9226_v33, %v9235_v27 }
 0x265   : > { %vm6135_vm1 = vcmp.lt.s32.totalorder %v6134_v12, 0  ;;  %v5497_v58 = vmul.f32 %v5211_v7, %v9281_v3  ;;  %v5518_v44 = vmul.f32 %v5211_v7, %v9283_v56  ;;  %v4465_v36 = vadd.f32 %v4464_v14, %v4463_v18 }
 0x266   : > { %v5311_v39 = vsel %vm6135_vm1, 0, %v6134_v12  ;;  %v9346_v45 = vadd.f32 %v4445_v26, %v4444_v51  ;;  %6120 = vst [vmem:[%s8098_s21 + $0x68] sm:$0xff] %v9338_v6  ;;  %v5499_v16 = vmul.f32 %v5217_v46, %v9338_v6  ;;  %v5539_v9 = vmul.f32 %v5211_v7, %v9287_v32 }
 0x267   : > { %v5312_v52 = vsub.s32 32, %v5311_v39  ;;  %v5316_v38 = vsub.s32 4294967266, %v5311_v39  ;;  %v5498_v1 = vadd.f32 %v5497_v58, %v5496_v43  ;;  %v9353_v40 = vadd.f32 %v4466_v11, %v4465_v36 }
 0x268   : > { %6124 = vst [vmem:[%s8098_s21 + $0x108] sm:$0xff] %v9346_v45  ;;  %v5520_v53 = vmul.f32 %v5217_v46, %v9346_v45  ;;  %v5519_v10 = vadd.f32 %v5518_v44, %v5517_v0  ;;  %v5313_v59 = vshll.u32 %v9299_v29, %v5311_v39  ;;  %v5540_v43 = vadd.f32 %v5539_v9, %v5538_v13 }
 0x269   : > { %v5314_v48 = vshrl.u32 %v5296_v41, %v5312_v52  ;;  %v5317_v34 = vadd.s32 127, %v5316_v38  ;;  %v5500_v30 = vadd.f32 %v5499_v16, %v5498_v1  ;;  %6128 = vst [vmem:[%s8098_s21 + $0x1a8] sm:$0xff] %v9353_v40  ;;  %v5541_v33 = vmul.f32 %v5217_v46, %v9353_v40 }
 0x26a   : > { %v5521_v27 = vadd.f32 %v5520_v53, %v5519_v10  ;;  %v5239_v61 = vmul.f32 %v7067_v17, %v8998_v24  ;;  %v5238_v54 = vmul.f32 %v7067_v17, %v8992_v25  ;;  %v5237_v7 = vmul.f32 %v7067_v17, %v8994_v23 }
 0x26b   : > { %v5315_v60 = vor.u32 %v5314_v48, %v5313_v59  ;;  %v5318_v22 = vshll.u32 %v5317_v34, 23  ;;  %v9364_v42 = vadd.f32 %v5500_v30, %v9177_v47  ;;  %v5542_v29 = vadd.f32 %v5541_v33, %v5540_v43 }
 0x26c   : > { %v9367_v21 = vadd.f32 %v5521_v27, %v9183_v5  ;;  %v5326_v5 = vsub.s32 4, %v9257_v37  ;;  %v5454_v55 = vmul.f32 %v5239_v61, %v5239_v61  ;;  %v5456_v26 = vmul.f32 %v5238_v54, %v5238_v54 }
 0x26d   : > { %v5319_v0 = vor.u32 4788187, %v5318_v22  ;;  %6142 = vst [vmem:[%s8098_s21 + $0x98] sm:$0xff] %v9364_v42  ;;  %v9373_v57 = vadd.f32 %v5542_v29, %v9192_v8  ;;  %v5322_v63 = vcvt.s32.f32 %v5315_v60  ;;  %v5448_v36 = vmul.f32 %v5238_v54, %v5237_v7 }
 0x26e   : > { %6146 = vst [vmem:[%s8098_s21 + $0x138] sm:$0xff] %v9367_v21  ;;  %v5327_v8 = vsel %vm5242_vm2, %v5326_v5, %v9257_v37  ;;  %v5455_v37 = vsub.f32 0.0, %v5454_v55  ;;  %v5477_v14 = vsub.f32 0.0, %v5456_v26  ;;  %v5467_v23 = vmul.f32 %v5237_v7, %v5237_v7 }
 0x26f   : > { %v5320_v13 = vand.u32 2147483647, %v5319_v0  ;;  %6150 = vst [vmem:[%s8098_s21 + $0x1d8] sm:$0xff] %v9373_v57  ;;  %v5329_v20 = vsel %vm5241_vm3, 0, %v5327_v8  ;;  %v5450_v52 = vmul.f32 %v5239_v61, %v5237_v7  ;;  %v5452_v38 = vmul.f32 %v5239_v61, %v5238_v54 }
 0x270   : > { %v5333_v31 = vadd.s32 3, %v5329_v20  ;;  %v5437_v12 = vand.u32 3, %v5329_v20  ;;  %v5457_v53 = vsub.f32 %v5455_v37, %v5456_v26  ;;  %v5468_v9 = vsub.f32 %v5455_v37, %v5467_v23 }
 0x271   : > { %v5323_v47 = vmul.f32 %v5322_v63, %v5320_v13  ;;  %v5478_v30 = vsub.f32 %v5477_v14, %v5467_v23 }
 0x272   : > { %v5334_v35 = vand.u32 3, %v5333_v31  ;;  %vm5442_vm6 = vcmp.eq.s32.totalorder %v5437_v12, 2  ;;  %vm5439_vm8 = vcmp.eq.s32.totalorder %v5437_v12, 0  ;;  %vm5438_vm10 = vcmp.lt.s32.totalorder %v5437_v12, 2 }
 0x273   : > { %v5324_v4 = vxor.u32 2147483648, %v5323_v47 }
 0x274   : > { %vm5339_vm5 = vcmp.eq.s32.totalorder %v5334_v35, 2  ;;  %vm5336_vm7 = vcmp.eq.s32.totalorder %v5334_v35, 0  ;;  %vm5335_vm9 = vcmp.lt.s32.totalorder %v5334_v35, 2 }
 0x275   : > { %v5325_v15 = vsel %vm5242_vm2, %v5324_v4, %v5323_v47 }
 0x276   : > { %v5328_v19 = vsel %vm5241_vm3, %v9187_v28, %v5325_v15 }
 0x277   : > { %7068 = vcosq.f32 %v5328_v19 }
 0x278   : > { %7070 = vsinq.f32 %v5328_v19 }
 0x284   : > { %v7069_v46 = vpop.eup %7068 }
 0x285   : > { %v7071_v2 = vpop.eup %7070  ;;  %v5340_v51 = vxor.u32 2147483648, %v7069_v46 }
 0x286   : > { %v5337_v18 = vxor.u32 2147483648, %v7071_v2 }
 0x287   : > { %v5341_v24 = vsel %vm5339_vm5, %v5340_v51, %v7071_v2  ;;  %v5444_v25 = vsel %vm5442_vm6, %v5340_v51, %v7071_v2 }
 0x288   : > { %v5338_v11 = vsel %vm5336_vm7, %v7069_v46, %v5337_v18  ;;  %v5441_v58 = vsel %vm5439_vm8, %v7069_v46, %v5337_v18 }
 0x289   : > { %v5342_v44 = vsel %vm5335_vm9, %v5338_v11, %v5341_v24  ;;  %v5445_v39 = vsel %vm5438_vm10, %v5441_v58, %v5444_v25 }
 0x28a   : > { %v5343_v16 = vsel %vm5332_vm4, nan, %v5342_v44  ;;  %v5446_v41 = vsel %vm5332_vm4, nan, %v5445_v39 }
 0x28b   : > { %v5447_v1 = vsub.f32 1.0, %v5446_v41  ;;  %v5460_v10 = vsub.f32 0.0, %v5343_v16  ;;  %v5463_v59 = vmul.f32 %v5343_v16, %v5238_v54  ;;  %v5465_v48 = vmul.f32 %v5343_v16, %v5239_v61 }
 0x28c   : > { %v5475_v34 = vmul.f32 %v5343_v16, %v5237_v7 }
 0x28d   : > { %v5449_v33 = vmul.f32 %v5448_v36, %v5447_v1  ;;  %v5451_v27 = vmul.f32 %v5450_v52, %v5447_v1  ;;  %v5453_v43 = vmul.f32 %v5452_v38, %v5447_v1  ;;  %v5458_v60 = vmul.f32 %v5457_v53, %v5447_v1 }
 0x28e   : > { %v5461_v22 = vmul.f32 %v5460_v10, %v5239_v61  ;;  %v5469_v29 = vmul.f32 %v5468_v9, %v5447_v1  ;;  %v5471_v0 = vmul.f32 %v5460_v10, %v5237_v7  ;;  %v5473_v13 = vmul.f32 %v5460_v10, %v5238_v54 }
 0x28f   : > { %v5459_v28 = vadd.f32 1.0, %v5458_v60  ;;  %v5464_v63 = vadd.f32 %v5463_v59, %v5451_v27  ;;  %v5466_v47 = vadd.f32 %v5465_v48, %v5449_v33  ;;  %v5476_v4 = vadd.f32 %v5475_v34, %v5453_v43 }
 0x290   : > { %v5462_v5 = vadd.f32 %v5461_v22, %v5449_v33  ;;  %v5470_v15 = vadd.f32 1.0, %v5469_v29  ;;  %v5472_v19 = vadd.f32 %v5471_v0, %v5453_v43  ;;  %v5474_v8 = vadd.f32 %v5473_v13, %v5451_v27 }
 0x291   : > { %v5479_v17 = vmul.f32 %v5478_v30, %v5447_v1  ;;  %v5481_v20 = vmul.f32 %v5459_v28, %v9289_v49  ;;  %v5482_v31 = vmul.f32 %v5466_v47, %v9281_v3  ;;  %v5491_v55 = vmul.f32 %v5464_v63, %v9289_v49 }
 0x292   : > { %v5492_v61 = vmul.f32 %v5472_v19, %v9281_v3  ;;  %v5502_v35 = vmul.f32 %v5459_v28, %v9304_v50  ;;  %v5503_v54 = vmul.f32 %v5466_v47, %v9283_v56  ;;  %v5512_v12 = vmul.f32 %v5464_v63, %v9304_v50 }
 0x293   : > { %v5480_v26 = vadd.f32 1.0, %v5479_v17  ;;  %v5483_v46 = vadd.f32 %v5482_v31, %v5481_v20  ;;  %v5513_v2 = vmul.f32 %v5472_v19, %v9283_v56  ;;  %v5523_v7 = vmul.f32 %v5459_v28, %v9312_v62  ;;  %v5655_v17 = vld [vmem:[%s8517_s25 + $0x50] sm:$0xff] (%p9749_p4)  ;;  %v5657_v20 = vld [vmem:[%s8517_s25 + $0x58] sm:$0xff] (%p9749_p4)  ;;  %v5659_v31 = vld [vmem:[%s8517_s25 + $0x60] sm:$0xff] (%p9749_p4) }
 0x294   : > { %v5493_v51 = vadd.f32 %v5492_v61, %v5491_v55  ;;  %v5504_v37 = vadd.f32 %v5503_v54, %v5502_v35  ;;  %v5524_v18 = vmul.f32 %v5466_v47, %v9287_v32  ;;  %v5533_v14 = vmul.f32 %v5464_v63, %v9312_v62  ;;  %5656 = vst [vmem:[%s5578_s28 + $0xa0] sm:$0xff] (%p9749_p4), %v5655_v17  ;;  %v5661_v55 = vld [vmem:[%s8517_s25 + $0x68] sm:$0xff] (%p9749_p4) }
 0x295   : > { %v5514_v24 = vadd.f32 %v5513_v2, %v5512_v12  ;;  %v5534_v25 = vmul.f32 %v5472_v19, %v9287_v32  ;;  %v5484_v11 = vmul.f32 %v5474_v8, %v9338_v6  ;;  %v5494_v58 = vmul.f32 %v5480_v26, %v9338_v6  ;;  %v5651_v19 = vld [vmem:[%s8517_s25 + $0x40] sm:$0xff] (%p9749_p4)  ;;  %5658 = vst [vmem:[%s5578_s28 + $0xb0] sm:$0xff] (%p9749_p4), %v5657_v20 }
 0x296   : > { %v5525_v44 = vadd.f32 %v5524_v18, %v5523_v7  ;;  %v5505_v39 = vmul.f32 %v5474_v8, %v9346_v45  ;;  %v5515_v36 = vmul.f32 %v5480_v26, %v9346_v45  ;;  %v5526_v23 = vmul.f32 %v5474_v8, %v9353_v40  ;;  %5652 = vst [vmem:[%s5578_s28 + $0x80] sm:$0xff] (%p9749_p4), %v5651_v19 }
 0x297   : > { %v5535_v16 = vadd.f32 %v5534_v25, %v5533_v14  ;;  %v5485_v41 = vadd.f32 %v5484_v11, %v5483_v46  ;;  %v5495_v52 = vadd.f32 %v5494_v58, %v5493_v51  ;;  %v5536_v38 = vmul.f32 %v5480_v26, %v9353_v40  ;;  %5660 = vst [vmem:[%s5578_s28 + $0xc0] sm:$0xff] (%p9749_p4), %v5659_v31 }
 0x298   : > { %v5506_v1 = vadd.f32 %v5505_v39, %v5504_v37  ;;  %v5516_v53 = vadd.f32 %v5515_v36, %v5514_v24  ;;  %v5527_v10 = vadd.f32 %v5526_v23, %v5525_v44  ;;  %v5486_v9 = vmul.f32 %v5462_v5, %v9289_v49  ;;  %5662 = vst [vmem:[%s5578_s28 + $0xd0] sm:$0xff] (%p9749_p4), %v5661_v55 }
 0x299   : > { %v5537_v59 = vadd.f32 %v5536_v38, %v5535_v16  ;;  %5544 = vst [vmem:[%s8098_s21 + $0x20] sm:$0xff] %v5485_v41  ;;  %6141 = vst [vmem:[%s8098_s21 + $0x70] sm:$0xff] %v5495_v52  ;;  %v5487_v48 = vmul.f32 %v5470_v15, %v9281_v3  ;;  %v5507_v34 = vmul.f32 %v5462_v5, %v9304_v50 }
 0x29a   : > { %6143 = vst [vmem:[%s8098_s21 + $0xc0] sm:$0xff] %v5506_v1  ;;  %6145 = vst [vmem:[%s8098_s21 + $0x110] sm:$0xff] %v5516_v53  ;;  %v5508_v30 = vmul.f32 %v5470_v15, %v9283_v56  ;;  %v5528_v33 = vmul.f32 %v5462_v5, %v9312_v62  ;;  %v5529_v27 = vmul.f32 %v5470_v15, %v9287_v32  ;;  %v5556_v56 = vld [vmem:[#allocation3 + $0x20] sm:$0xff]  ;;  %v5647_v5 = vld [vmem:[%s8517_s25 + $0x30] sm:$0xff] (%p9749_p4) }
 0x29b   : > { %6147 = vst [vmem:[%s8098_s21 + $0x160] sm:$0xff] %v5527_v10  ;;  %6149 = vst [vmem:[%s8098_s21 + $0x1b0] sm:$0xff] %v5537_v59  ;;  %v5488_v49 = vadd.f32 %v5487_v48, %v5486_v9  ;;  %v5489_v43 = vmul.f32 %v5476_v4, %v9338_v6  ;;  %v5510_v3 = vmul.f32 %v5476_v4, %v9346_v45  ;;  %v5649_v15 = vld [vmem:[%s8517_s25 + $0x38] sm:$0xff] (%p9749_p4) }
 0x29c   : > { %v5509_v60 = vadd.f32 %v5508_v30, %v5507_v34  ;;  %v5530_v50 = vadd.f32 %v5529_v27, %v5528_v33  ;;  %v5531_v22 = vmul.f32 %v5476_v4, %v9353_v40  ;;  %v5635_v40 = vld [vmem:[%s8517_s25] sm:$0xff] (%p9749_p4)  ;;  %v5645_v4 = vld [vmem:[%s8517_s25 + $0x28] sm:$0xff] (%p9749_p4)  ;;  %5648 = vst [vmem:[%s5578_s28 + $0x60] sm:$0xff] (%p9749_p4), %v5647_v5  ;;  %5650 = vst [vmem:[%s5578_s28 + $0x70] sm:$0xff] (%p9749_p4), %v5649_v15 }
 0x29d   : > { %v5490_v29 = vadd.f32 %v5489_v43, %v5488_v49  ;;  %5636 = vst [vmem:[%s5578_s28] sm:$0xff] (%p9749_p4), %v5635_v40  ;;  %5646 = vst [vmem:[%s5578_s28 + $0x50] sm:$0xff] (%p9749_p4), %v5645_v4 }
 0x29e   : > { %v5511_v0 = vadd.f32 %v5510_v3, %v5509_v60  ;;  %v5532_v62 = vadd.f32 %v5531_v22, %v5530_v50 }
 0x29f   : > { %6140 = vst [vmem:[%s8098_s21 + $0x48] sm:$0xff] %v5490_v29  ;;  %v5557_v13 = vmul.f32 %v5556_v56, %v5490_v29 }
 0x2a0   : > { %6144 = vst [vmem:[%s8098_s21 + $0xe8] sm:$0xff] %v5511_v0  ;;  %6148 = vst [vmem:[%s8098_s21 + $0x188] sm:$0xff] %v5532_v62  ;;  %v5560_v32 = vmul.f32 %v5556_v56, %v5511_v0  ;;  %v5563_v28 = vmul.f32 %v5556_v56, %v5532_v62  ;;  %5576 = sbr.rel (!%p9749_p4) target bundleno = 685 (0x2ad), region = 78 }
 0x2a1   : > { %v5558_v6 = vadd.f32 %v5557_v13, %v9364_v42  ;;  %v5637_v42 = vld [vmem:[%s8517_s25 + $0x8] sm:$0xff] (%p9749_p4) }
 0x2a2   : > { %v5561_v45 = vadd.f32 %v5560_v32, %v9367_v21  ;;  %v5564_v63 = vadd.f32 %v5563_v28, %v9373_v57  ;;  %v5639_v21 = vld [vmem:[%s8517_s25 + $0x10] sm:$0xff] (%p9749_p4)  ;;  %v5641_v57 = vld [vmem:[%s8517_s25 + $0x18] sm:$0xff] (%p9749_p4)  ;;  %5638 = vst [vmem:[%s5578_s28 + $0x10] sm:$0xff] (%p9749_p4), %v5637_v42 }
 0x2a3   : > { %5559 = vst [vmem:[%s8517_s25 + $0x20] sm:$0xff] %v5558_v6  ;;  %5640 = vst [vmem:[%s5578_s28 + $0x20] sm:$0xff] (%p9749_p4), %v5639_v21 }
 0x2a4   : > { %6151 = vst [vmem:[%s8517_s25 + $0x48] sm:$0xff] %v5561_v45  ;;  %6152 = vst [vmem:[%s8517_s25 + $0x70] sm:$0xff] %v5564_v63 }
 0x2a5   : > { %5642 = vst [vmem:[%s5578_s28 + $0x30] sm:$0xff] %v5641_v57 }
 0x2aa   : > { %v5643_v47 = vld [vmem:[%s8517_s25 + $0x20] sm:$0xff] }
 0x2ab   : > { %5644 = vst [vmem:[%s5578_s28 + $0x40] sm:$0xff] %v5643_v47  ;;  %v5653_v8 = vld [vmem:[%s8517_s25 + $0x48] sm:$0xff]  ;;  %v5663_v61 = vld [vmem:[%s8517_s25 + $0x70] sm:$0xff] }
 0x2ac   : > { %5654 = vst [vmem:[%s5578_s28 + $0x90] sm:$0xff] %v5653_v8  ;;  %5664 = vst [vmem:[%s5578_s28 + $0xe0] sm:$0xff] %v5663_v61 }
 0x2ad PF: > { %p9750_p5 = scmp.ne.s32.totalorder %s9643_s24, 0 }
 0x2ae   : > { %s6154_s29 = sshll.u32 (%p9750_p5), %s7176_s18, 3  ;;  %v5819_v35 = vld [vmem:[%s8098_s21] sm:$0xff] (%p9750_p5)  ;;  %v5821_v54 = vld [vmem:[%s8098_s21 + $0x8] sm:$0xff] (%p9750_p5)  ;;  %v5823_v12 = vld [vmem:[%s8098_s21 + $0x10] sm:$0xff] (%p9750_p5) }
 0x2af   : > { %5670 = sbr.rel (!%p9750_p5) target bundleno = 718 (0x2ce), region = 116  ;;  %s9465_s6 = scalar_lea.vmem (%p9750_p5), %s9598_s4, %s6154_s29  ;;  %v5825_v26 = vld [vmem:[%s8098_s21 + $0x18] sm:$0xff] (%p9750_p5)  ;;  %v5827_v46 = vld [vmem:[%s8098_s21 + $0x20] sm:$0xff] (%p9750_p5)  ;;  %v5829_v2 = vld [vmem:[%s8098_s21 + $0x28] sm:$0xff] (%p9750_p5) }
 0x2b0   : > { %5820 = vst [vmem:[%s9465_s6] sm:$0xff] (%p9750_p5), %v5819_v35  ;;  %5822 = vst [vmem:[%s9465_s6 + $0x10] sm:$0xff] (%p9750_p5), %v5821_v54  ;;  %v5831_v7 = vld [vmem:[%s8098_s21 + $0x30] sm:$0xff] (%p9750_p5)  ;;  %v5833_v51 = vld [vmem:[%s8098_s21 + $0x38] sm:$0xff] (%p9750_p5) }
 0x2b1   : > { %5824 = vst [vmem:[%s9465_s6 + $0x20] sm:$0xff] (%p9750_p5), %v5823_v12  ;;  %5826 = vst [vmem:[%s9465_s6 + $0x30] sm:$0xff] (%p9750_p5), %v5825_v26  ;;  %v5835_v37 = vld [vmem:[%s8098_s21 + $0x40] sm:$0xff] (%p9750_p5)  ;;  %v5837_v18 = vld [vmem:[%s8098_s21 + $0x48] sm:$0xff] (%p9750_p5) }
 0x2b2   : > { %5828 = vst [vmem:[%s9465_s6 + $0x40] sm:$0xff] (%p9750_p5), %v5827_v46  ;;  %5830 = vst [vmem:[%s9465_s6 + $0x50] sm:$0xff] (%p9750_p5), %v5829_v2  ;;  %v5839_v14 = vld [vmem:[%s8098_s21 + $0x50] sm:$0xff] (%p9750_p5)  ;;  %v5841_v24 = vld [vmem:[%s8098_s21 + $0x58] sm:$0xff] (%p9750_p5) }
 0x2b3   : > { %5832 = vst [vmem:[%s9465_s6 + $0x60] sm:$0xff] (%p9750_p5), %v5831_v7  ;;  %5834 = vst [vmem:[%s9465_s6 + $0x70] sm:$0xff] (%p9750_p5), %v5833_v51  ;;  %v5843_v25 = vld [vmem:[%s8098_s21 + $0x60] sm:$0xff] (%p9750_p5)  ;;  %v5845_v11 = vld [vmem:[%s8098_s21 + $0x68] sm:$0xff] (%p9750_p5) }
 0x2b4   : > { %5836 = vst [vmem:[%s9465_s6 + $0x80] sm:$0xff] %v5835_v37  ;;  %5838 = vst [vmem:[%s9465_s6 + $0x90] sm:$0xff] %v5837_v18  ;;  %v5847_v58 = vld [vmem:[%s8098_s21 + $0x70] sm:$0xff]  ;;  %v5849_v44 = vld [vmem:[%s8098_s21 + $0x78] sm:$0xff] }
 0x2b5   : > { %5840 = vst [vmem:[%s9465_s6 + $0xa0] sm:$0xff] %v5839_v14  ;;  %5842 = vst [vmem:[%s9465_s6 + $0xb0] sm:$0xff] %v5841_v24  ;;  %v5851_v39 = vld [vmem:[%s8098_s21 + $0x80] sm:$0xff]  ;;  %v5853_v36 = vld [vmem:[%s8098_s21 + $0x88] sm:$0xff] }
 0x2b6   : > { %5844 = vst [vmem:[%s9465_s6 + $0xc0] sm:$0xff] %v5843_v25  ;;  %5846 = vst [vmem:[%s9465_s6 + $0xd0] sm:$0xff] %v5845_v11  ;;  %v5855_v23 = vld [vmem:[%s8098_s21 + $0x90] sm:$0xff]  ;;  %v5857_v16 = vld [vmem:[%s8098_s21 + $0x98] sm:$0xff] }
 0x2b7   : > { %5848 = vst [vmem:[%s9465_s6 + $0xe0] sm:$0xff] %v5847_v58  ;;  %5850 = vst [vmem:[%s9465_s6 + $0xf0] sm:$0xff] %v5849_v44  ;;  %v5859_v41 = vld [vmem:[%s8098_s21 + $0xa0] sm:$0xff]  ;;  %v5861_v52 = vld [vmem:[%s8098_s21 + $0xa8] sm:$0xff] }
 0x2b8   : > { %5852 = vst [vmem:[%s9465_s6 + $0x100] sm:$0xff] %v5851_v39  ;;  %5854 = vst [vmem:[%s9465_s6 + $0x110] sm:$0xff] %v5853_v36  ;;  %v5863_v38 = vld [vmem:[%s8098_s21 + $0xb0] sm:$0xff]  ;;  %v5865_v1 = vld [vmem:[%s8098_s21 + $0xb8] sm:$0xff] }
 0x2b9   : > { %5856 = vst [vmem:[%s9465_s6 + $0x120] sm:$0xff] %v5855_v23  ;;  %5858 = vst [vmem:[%s9465_s6 + $0x130] sm:$0xff] %v5857_v16  ;;  %v5867_v53 = vld [vmem:[%s8098_s21 + $0xc0] sm:$0xff]  ;;  %v5869_v10 = vld [vmem:[%s8098_s21 + $0xc8] sm:$0xff] }
 0x2ba   : > { %5860 = vst [vmem:[%s9465_s6 + $0x140] sm:$0xff] %v5859_v41  ;;  %5862 = vst [vmem:[%s9465_s6 + $0x150] sm:$0xff] %v5861_v52  ;;  %v5871_v9 = vld [vmem:[%s8098_s21 + $0xd0] sm:$0xff]  ;;  %v5873_v59 = vld [vmem:[%s8098_s21 + $0xd8] sm:$0xff] }
 0x2bb   : > { %5864 = vst [vmem:[%s9465_s6 + $0x160] sm:$0xff] %v5863_v38  ;;  %5866 = vst [vmem:[%s9465_s6 + $0x170] sm:$0xff] %v5865_v1  ;;  %v5875_v48 = vld [vmem:[%s8098_s21 + $0xe0] sm:$0xff]  ;;  %v5877_v34 = vld [vmem:[%s8098_s21 + $0xe8] sm:$0xff] }
 0x2bc   : > { %5868 = vst [vmem:[%s9465_s6 + $0x180] sm:$0xff] %v5867_v53  ;;  %5870 = vst [vmem:[%s9465_s6 + $0x190] sm:$0xff] %v5869_v10  ;;  %v5879_v30 = vld [vmem:[%s8098_s21 + $0xf0] sm:$0xff]  ;;  %v5881_v33 = vld [vmem:[%s8098_s21 + $0xf8] sm:$0xff] }
 0x2bd   : > { %5872 = vst [vmem:[%s9465_s6 + $0x1a0] sm:$0xff] %v5871_v9  ;;  %5874 = vst [vmem:[%s9465_s6 + $0x1b0] sm:$0xff] %v5873_v59  ;;  %v5883_v27 = vld [vmem:[%s8098_s21 + $0x100] sm:$0xff]  ;;  %v5885_v49 = vld [vmem:[%s8098_s21 + $0x108] sm:$0xff] }
 0x2be   : > { %5876 = vst [vmem:[%s9465_s6 + $0x1c0] sm:$0xff] %v5875_v48  ;;  %5878 = vst [vmem:[%s9465_s6 + $0x1d0] sm:$0xff] %v5877_v34  ;;  %v5887_v43 = vld [vmem:[%s8098_s21 + $0x110] sm:$0xff]  ;;  %v5889_v60 = vld [vmem:[%s8098_s21 + $0x118] sm:$0xff] }
 0x2bf   : > { %5880 = vst [vmem:[%s9465_s6 + $0x1e0] sm:$0xff] %v5879_v30  ;;  %5882 = vst [vmem:[%s9465_s6 + $0x1f0] sm:$0xff] %v5881_v33  ;;  %v5891_v3 = vld [vmem:[%s8098_s21 + $0x120] sm:$0xff]  ;;  %v5893_v50 = vld [vmem:[%s8098_s21 + $0x128] sm:$0xff] }
 0x2c0   : > { %5884 = vst [vmem:[%s9465_s6 + $0x200] sm:$0xff] %v5883_v27  ;;  %5886 = vst [vmem:[%s9465_s6 + $0x210] sm:$0xff] %v5885_v49  ;;  %v5895_v22 = vld [vmem:[%s8098_s21 + $0x130] sm:$0xff]  ;;  %v5897_v56 = vld [vmem:[%s8098_s21 + $0x138] sm:$0xff] }
 0x2c1   : > { %5888 = vst [vmem:[%s9465_s6 + $0x220] sm:$0xff] %v5887_v43  ;;  %5890 = vst [vmem:[%s9465_s6 + $0x230] sm:$0xff] %v5889_v60  ;;  %v5899_v29 = vld [vmem:[%s8098_s21 + $0x140] sm:$0xff]  ;;  %v5901_v0 = vld [vmem:[%s8098_s21 + $0x148] sm:$0xff] }
 0x2c2   : > { %5892 = vst [vmem:[%s9465_s6 + $0x240] sm:$0xff] %v5891_v3  ;;  %5894 = vst [vmem:[%s9465_s6 + $0x250] sm:$0xff] %v5893_v50  ;;  %v5903_v62 = vld [vmem:[%s8098_s21 + $0x150] sm:$0xff]  ;;  %v5905_v13 = vld [vmem:[%s8098_s21 + $0x158] sm:$0xff] }
 0x2c3   : > { %5896 = vst [vmem:[%s9465_s6 + $0x260] sm:$0xff] %v5895_v22  ;;  %5898 = vst [vmem:[%s9465_s6 + $0x270] sm:$0xff] %v5897_v56  ;;  %v5907_v32 = vld [vmem:[%s8098_s21 + $0x160] sm:$0xff]  ;;  %v5909_v28 = vld [vmem:[%s8098_s21 + $0x168] sm:$0xff] }
 0x2c4   : > { %5900 = vst [vmem:[%s9465_s6 + $0x280] sm:$0xff] %v5899_v29  ;;  %5902 = vst [vmem:[%s9465_s6 + $0x290] sm:$0xff] %v5901_v0  ;;  %v5911_v6 = vld [vmem:[%s8098_s21 + $0x170] sm:$0xff]  ;;  %v5913_v45 = vld [vmem:[%s8098_s21 + $0x178] sm:$0xff] }
 0x2c5   : > { %5904 = vst [vmem:[%s9465_s6 + $0x2a0] sm:$0xff] %v5903_v62  ;;  %5906 = vst [vmem:[%s9465_s6 + $0x2b0] sm:$0xff] %v5905_v13  ;;  %v5915_v63 = vld [vmem:[%s8098_s21 + $0x180] sm:$0xff]  ;;  %v5917_v40 = vld [vmem:[%s8098_s21 + $0x188] sm:$0xff] }
 0x2c6   : > { %5908 = vst [vmem:[%s9465_s6 + $0x2c0] sm:$0xff] %v5907_v32  ;;  %5910 = vst [vmem:[%s9465_s6 + $0x2d0] sm:$0xff] %v5909_v28  ;;  %v5919_v42 = vld [vmem:[%s8098_s21 + $0x190] sm:$0xff]  ;;  %v5921_v21 = vld [vmem:[%s8098_s21 + $0x198] sm:$0xff] }
 0x2c7   : > { %5912 = vst [vmem:[%s9465_s6 + $0x2e0] sm:$0xff] %v5911_v6  ;;  %5914 = vst [vmem:[%s9465_s6 + $0x2f0] sm:$0xff] %v5913_v45  ;;  %v5923_v57 = vld [vmem:[%s8098_s21 + $0x1a0] sm:$0xff]  ;;  %v5925_v47 = vld [vmem:[%s8098_s21 + $0x1a8] sm:$0xff] }
 0x2c8   : > { %5916 = vst [vmem:[%s9465_s6 + $0x300] sm:$0xff] %v5915_v63  ;;  %5918 = vst [vmem:[%s9465_s6 + $0x310] sm:$0xff] %v5917_v40  ;;  %v5927_v4 = vld [vmem:[%s8098_s21 + $0x1b0] sm:$0xff]  ;;  %v5929_v5 = vld [vmem:[%s8098_s21 + $0x1b8] sm:$0xff] }
 0x2c9   : > { %5920 = vst [vmem:[%s9465_s6 + $0x320] sm:$0xff] %v5919_v42  ;;  %5922 = vst [vmem:[%s9465_s6 + $0x330] sm:$0xff] %v5921_v21  ;;  %v5931_v15 = vld [vmem:[%s8098_s21 + $0x1c0] sm:$0xff]  ;;  %v5933_v19 = vld [vmem:[%s8098_s21 + $0x1c8] sm:$0xff] }
 0x2ca   : > { %5924 = vst [vmem:[%s9465_s6 + $0x340] sm:$0xff] %v5923_v57  ;;  %5926 = vst [vmem:[%s9465_s6 + $0x350] sm:$0xff] %v5925_v47  ;;  %v5935_v8 = vld [vmem:[%s8098_s21 + $0x1d0] sm:$0xff]  ;;  %v5937_v17 = vld [vmem:[%s8098_s21 + $0x1d8] sm:$0xff] }
 0x2cb   : > { %5928 = vst [vmem:[%s9465_s6 + $0x360] sm:$0xff] %v5927_v4  ;;  %5930 = vst [vmem:[%s9465_s6 + $0x370] sm:$0xff] %v5929_v5 }
 0x2cc   : > { %5932 = vst [vmem:[%s9465_s6 + $0x380] sm:$0xff] %v5931_v15  ;;  %5934 = vst [vmem:[%s9465_s6 + $0x390] sm:$0xff] %v5933_v19 }
 0x2cd   : > { %5936 = vst [vmem:[%s9465_s6 + $0x3a0] sm:$0xff] %v5935_v8  ;;  %5938 = vst [vmem:[%s9465_s6 + $0x3b0] sm:$0xff] %v5937_v17 }
 0x2ce PF: > { %p13_p8 = scmp.ge.s32.totalorder %s7179_s19, 4   ;;  %s9751_s15 = smov %s7120_s16 }
 0x2cf   : > { %s9752_s16 = smov %s7189_s22  ;;  %s9753_s17 = smov %s7179_s19 }
 0x2d0   :  { %15 = sbr.rel (!%p13_p8) target bundleno = 2 (0x2), region = 211 }
 0x2d5   :  { %5961 = vsyncpa [#allocation4], 1 }
 0x2d6   :  { %5963 = vsyncpa [#allocation4 + $0x1], 1 }

</bundles_post_ra>
